<compile_context>
chip_gen: v6e
topology: v6e:2x2x1
jax: 0.10.0
libtpu: 0.0.40
codegen_flags: <defaults>
</compile_context>

<pallas_src>
import functools

import jax
import jax.numpy as jnp
from jax.experimental import pallas as pl
from jax.experimental.pallas import tpu as pltpu

EPS = 1e-5                       # nn.BatchNorm2d default
SLOPE = 0.01                     # nn.LeakyReLU default negative_slope
VMEM_LIMIT = 48 * 1024 * 1024    # < v7x 64 MiB VMEM, > default scoped limits


# ---------------------------------------------------------------------------
# Kernel 1: stride-1 "same" conv on a column-parity-split image + BN1 sums.
# ---------------------------------------------------------------------------
def _conv1_kernel(x_ref, w_ref, y_ref, sq_ref, *, H, W, Cin, Cout, K):
    """x_ref : (1, H+2p, (W+2p)/2, 2*Cin) bf16 padded input, cols split even/odd
       w_ref : (K*(K+1)*Cin, 2*Cout)      bf16 taps duplicated for even/odd out col
       y_ref : (1, H*(W//2), 2*Cout)      bf16 flat conv output, row = (h, w//2)
       sq_ref: (1, 2, 2*Cout)             f32 per-image [sum ; sum-of-squares]."""
    W2h = W // 2
    ndu = (K + 1) // 2
    # Full im2col: one (H*W2h, K*(K+1)*Cin) patch matrix -> ONE MXU dot
    # (deep contraction, no per-ky VPU accumulation or extra result drains).
    taps = []
    for ky in range(K):
        for du in range(ndu):
            taps.append(x_ref[0, ky:ky + H, du:du + W2h, :])
    patches = jnp.concatenate(taps, axis=-1).reshape(H * W2h, K * (K + 1) * Cin)
    acc = jnp.dot(patches, w_ref[...], preferred_element_type=jnp.float32)
    # conv bias skipped: zero-initialised and cancelled by the following BatchNorm.
    sums = jnp.concatenate(
        [jnp.sum(acc, axis=0, keepdims=True),
         jnp.sum(acc * acc, axis=0, keepdims=True)], axis=0)      # (2, 2*Cout)
    sq_ref[...] = sums.reshape(1, 2, 2 * Cout)
    y_ref[...] = acc.astype(y_ref.dtype).reshape(1, H * W2h, 2 * Cout)


# ---------------------------------------------------------------------------
# Kernel 2: fused BN1-apply + LeakyReLU + zero-pad + stride-2 conv + BN2 sums.
# ---------------------------------------------------------------------------
def _bn_act_conv2_kernel(y1_ref, w_ref, sc_ref, sh_ref, y_ref, sq_ref,
                         pad_ref, *, H, W, C, Cout, K):
    """y1_ref: (1, H//2, 2, W//2, 2*C) bf16 layer-1 conv out, rows+cols parity split
       w_ref : (K*(K+1)*C, Cout)       bf16 zero-padded taps
       sc_ref, sh_ref: (1, 1, 1, 2*C)  bf16 BN1 scale / shift (per channel, x2)
       y_ref : (1, H2*W2, Cout)        bf16 layer-2 pre-BN conv output
       sq_ref: (1, 2, Cout)            f32 BN2 [sum ; sum-of-squares]
       pad_ref: VMEM scratch (H//2+p, 2, W//2+p, 2*C) bf16 padded activation."""
    p = K // 2
    Hh, W2h = H // 2, W // 2
    H2 = (H + 2 * p - K) // 2 + 1
    W2 = (W + 2 * p - K) // 2 + 1
    ndu = (K + 1) // 2

    # BN1 + LeakyReLU in bf16 (bf16 VALUs on v6e/v7x; stats stay f32 host-side),
    # already in the MXU input dtype.
    z = y1_ref[0] * sc_ref[0] + sh_ref[0]
    a = jnp.where(z > 0, z, SLOPE * z)                   # (Hh, 2, W2h, 2C) bf16

    # Zero only the p-wide halo of the padded scratch: the interior is fully
    # overwritten by the parity scatter below (over-zeroed strips get rewritten).
    if p > 0:
        hz = (p + 1) // 2
        pad_ref[0:hz] = jnp.zeros((hz, 2, W2h + p, 2 * C), pad_ref.dtype)
        pad_ref[Hh + p // 2:Hh + p] = jnp.zeros((p - p // 2, 2, W2h + p, 2 * C),
                                                pad_ref.dtype)
        pad_ref[:, :, 0:hz, :] = jnp.zeros((Hh + p, 2, hz, 2 * C), pad_ref.dtype)
        pad_ref[:, :, W2h + p // 2:W2h + p, :] = jnp.zeros(
            (Hh + p, 2, p - p // 2, 2 * C), pad_ref.dtype)

    # Scatter the activation into the zero-padded, row+col parity-split scratch
    # (no XLA pad op, no HBM round trip between the two conv layers).
    for rp in range(2):                 # parity of the un-padded row index
        for ph in range(2):             # parity of the un-padded column index
            q0, rpar = (p + rp) // 2, (p + rp) % 2
            u0, cpar = (p + ph) // 2, (p + ph) % 2
            pad_ref[q0:q0 + Hh, rpar, u0:u0 + W2h,
                    cpar * C:(cpar + 1) * C] = a[:, rp, :, ph * C:(ph + 1) * C]

    # Stride-2 conv: full im2col (every tap a static slice) -> ONE MXU dot.
    taps = []
    for ky in range(K):
        rows = pad_ref[ky // 2:ky // 2 + H2, ky % 2, :, :]   # (H2, W//2+p, 2C)
        for du in range(ndu):
            taps.append(rows[:, du:du + W2, :])
    patches = jnp.concatenate(taps, axis=-1).reshape(H2 * W2, K * (K + 1) * C)
    acc = jnp.dot(patches, w_ref[...], preferred_element_type=jnp.float32)

    sums = jnp.concatenate(
        [jnp.sum(acc, axis=0, keepdims=True),
         jnp.sum(acc * acc, axis=0, keepdims=True)], axis=0)     # (2, Cout)
    sq_ref[...] = sums.reshape(1, 2, Cout)
    y_ref[...] = acc.astype(y_ref.dtype).reshape(1, H2 * W2, Cout)


# ---------------------------------------------------------------------------
# Kernel 3: BN2-apply + LeakyReLU (elementwise, lane-dense (H2, W2*C) blocks).
# ---------------------------------------------------------------------------
def _bn_act_kernel(y_ref, sc_ref, sh_ref, o_ref):
    z = y_ref[...].astype(jnp.float32) * sc_ref[...] + sh_ref[...]
    o_ref[...] = jnp.where(z > 0, z, SLOPE * z)


# ---------------------------------------------------------------------------
# Host-side weight preparation (done once, outside the hot path).
# ---------------------------------------------------------------------------
def _prep_w1(w, dtype=jnp.bfloat16):
    """(Cout, Cin, K, K) torch layout -> (K*(K+1)*Cin, 2*Cout): taps duplicated
    (and zero-padded) for the even / odd output-column phases, flattened so the
    whole conv is a single matmul."""
    Cout, Cin, K, _ = w.shape
    wt = jnp.transpose(w, (2, 3, 1, 0))                    # (K, K, Cin, Cout)
    wd = jnp.zeros((K, K + 1, Cin, 2, Cout), w.dtype)
    wd = wd.at[:, 0:K, :, 0, :].set(wt)                    # even output columns
    wd = wd.at[:, 1:K + 1, :, 1, :].set(wt)                # odd output columns
    return wd.reshape(K * (K + 1) * Cin, 2 * Cout).astype(dtype)


def _prep_w2(w, dtype=jnp.bfloat16):
    """(Cout, Cin, K, K) torch layout -> (K*(K+1)*Cin, Cout) zero-padded taps."""
    Cout, Cin, K, _ = w.shape
    wt = jnp.transpose(w, (2, 3, 1, 0))                    # (K, K, Cin, Cout)
    wd = jnp.zeros((K, K + 1, Cin, Cout), w.dtype)
    wd = wd.at[:, 0:K].set(wt)
    return wd.reshape(K * (K + 1) * Cin, Cout).astype(dtype)


# ---------------------------------------------------------------------------
# discrim_block forward (NCHW in / NCHW out, like the PyTorch module).
# ---------------------------------------------------------------------------
def discrim_block_forward(x_nchw, w1, w2):
    """x_nchw: (N, Cin, H, W) f32;  w1: (Cf, Cin, K, K);  w2: (Cf, Cf, K, K)."""
    N, Cin, H, W = x_nchw.shape
    Cf, K = w1.shape[0], w1.shape[-1]
    p = K // 2
    assert K % 2 == 1 and H % 2 == 0 and W % 2 == 0
    Hh, W2h = H // 2, W // 2
    Hp, Wp = H + 2 * p, W + 2 * p
    Wp2 = Wp // 2
    H2 = (H + 2 * p - K) // 2 + 1
    W2 = (W + 2 * p - K) // 2 + 1

    cparams = pltpu.CompilerParams(
        dimension_semantics=("parallel",),          # shard batch across v7x's 2 TCs
        vmem_limit_bytes=VMEM_LIMIT,
    )

    # boundary layout: NCHW -> padded, column-parity-split NHWC, bf16.
    x = jnp.transpose(x_nchw, (0, 2, 3, 1))
    x = jnp.pad(x, ((0, 0), (p, p), (p, p), (0, 0)))
    x = x.reshape(N, Hp, Wp2, 2 * Cin).astype(jnp.bfloat16)

    w1d = _prep_w1(w1)               # (K*(K+1)*Cin, 2*Cf)
    w2d = _prep_w2(w2)               # (K*(K+1)*Cf, Cf)

    # ---- layer 1: conv (stride 1) + BN1 partial sums -------------------------
    flops1 = 2 * N * (H * W2h) * (K * (K + 1) * Cin) * (2 * Cf)
    bytes1 = (x.size * 2 + w1d.size * 2
              + N * H * W2h * 2 * Cf * 2 + N * 2 * 2 * Cf * 4)
    y1, s1 = pl.pallas_call(
        functools.partial(_conv1_kernel, H=H, W=W, Cin=Cin, Cout=Cf, K=K),
        grid=(N,),
        in_specs=[
            pl.BlockSpec((1, Hp, Wp2, 2 * Cin), lambda n: (n, 0, 0, 0)),
            pl.BlockSpec((K * (K + 1) * Cin, 2 * Cf), lambda n: (0, 0)),
        ],
        out_specs=(
            pl.BlockSpec((1, H * W2h, 2 * Cf), lambda n: (n, 0, 0)),
            pl.BlockSpec((1, 2, 2 * Cf), lambda n: (n, 0, 0)),
        ),
        out_shape=(
            jax.ShapeDtypeStruct((N, H * W2h, 2 * Cf), jnp.bfloat16),
            jax.ShapeDtypeStruct((N, 2, 2 * Cf), jnp.float32),
        ),
        compiler_params=cparams,
        cost_estimate=pl.CostEstimate(flops=flops1, transcendentals=0,
                                      bytes_accessed=bytes1),
    )(x, w1d)

    # ---- BN1 batch statistics (training mode, gamma=1, beta=0) ---------------
    # (a global batch reduction cannot live inside a "parallel" grid -> JAX glue)
    cnt1 = N * H * W
    t1 = jnp.sum(s1, axis=0)                                  # (2, 2*Cf)
    s = t1[0].reshape(2, Cf).sum(axis=0)
    q = t1[1].reshape(2, Cf).sum(axis=0)
    mean1 = s / cnt1
    var1 = jnp.maximum(q / cnt1 - mean1 * mean1, 0.0)
    inv1 = jax.lax.rsqrt(var1 + EPS)
    sc1 = jnp.tile(inv1, 2).astype(jnp.bfloat16).reshape(1, 1, 1, 2 * Cf)
    sh1 = jnp.tile(-mean1 * inv1, 2).astype(jnp.bfloat16).reshape(1, 1, 1, 2 * Cf)

    # ---- layer 2: fused BN1-apply + LeakyReLU + pad + conv (stride 2) --------
    y1r = y1.reshape(N, Hh, 2, W2h, 2 * Cf)          # same bytes, free reshape
    flops2 = (2 * N * (H2 * W2) * (K * (K + 1) * Cf) * Cf
              + 4 * N * H * W2h * 2 * Cf)
    bytes2 = (y1.size * 2 + w2d.size * 2 + 2 * 2 * Cf * 2 * 2
              + N * H2 * W2 * Cf * 2 + N * 2 * Cf * 4)
    y2, s2 = pl.pallas_call(
        functools.partial(_bn_act_conv2_kernel, H=H, W=W, C=Cf, Cout=Cf, K=K),
        grid=(N,),
        in_specs=[
            pl.BlockSpec((1, Hh, 2, W2h, 2 * Cf), lambda n: (n, 0, 0, 0, 0)),
            pl.BlockSpec((K * (K + 1) * Cf, Cf), lambda n: (0, 0)),
            pl.BlockSpec((1, 1, 1, 2 * Cf), lambda n: (0, 0, 0, 0)),
            pl.BlockSpec((1, 1, 1, 2 * Cf), lambda n: (0, 0, 0, 0)),
        ],
        out_specs=(
            pl.BlockSpec((1, H2 * W2, Cf), lambda n: (n, 0, 0)),
            pl.BlockSpec((1, 2, Cf), lambda n: (n, 0, 0)),
        ),
        out_shape=(
            jax.ShapeDtypeStruct((N, H2 * W2, Cf), jnp.bfloat16),
            jax.ShapeDtypeStruct((N, 2, Cf), jnp.float32),
        ),
        scratch_shapes=[pltpu.VMEM((Hh + p, 2, W2h + p, 2 * Cf), jnp.bfloat16)],
        compiler_params=cparams,
        cost_estimate=pl.CostEstimate(flops=flops2, transcendentals=0,
                                      bytes_accessed=bytes2),
    )(y1r, w2d, sc1, sh1)

    # ---- BN2 batch statistics -------------------------------------------------
    cnt2 = N * H2 * W2
    t2 = jnp.sum(s2, axis=0)                                  # (2, Cf)
    mean2 = t2[0] / cnt2
    var2 = jnp.maximum(t2[1] / cnt2 - mean2 * mean2, 0.0)
    inv2 = jax.lax.rsqrt(var2 + EPS)
    # pre-tile scale/shift to the lane-dense (W2*Cf) layout used by kernel 3
    sc2 = jnp.tile(inv2, W2).reshape(1, 1, W2 * Cf)
    sh2 = jnp.tile(-mean2 * inv2, W2).reshape(1, 1, W2 * Cf)

    # ---- BN2-apply + LeakyReLU on a lane-dense (N, H2, W2*Cf) view of y2 ------
    y2v = y2.reshape(N, H2, W2 * Cf)                 # same bytes, free reshape
    flops3 = 4 * N * H2 * W2 * Cf
    bytes3 = N * H2 * W2 * Cf * (2 + 4) + 2 * W2 * Cf * 4
    out = pl.pallas_call(
        _bn_act_kernel,
        grid=(N,),
        in_specs=[
            pl.BlockSpec((1, H2, W2 * Cf), lambda n: (n, 0, 0)),
            pl.BlockSpec((1, 1, W2 * Cf), lambda n: (0, 0, 0)),
            pl.BlockSpec((1, 1, W2 * Cf), lambda n: (0, 0, 0)),
        ],
        out_specs=pl.BlockSpec((1, H2, W2 * Cf), lambda n: (n, 0, 0)),
        out_shape=jax.ShapeDtypeStruct((N, H2, W2 * Cf), jnp.float32),
        compiler_params=cparams,
        cost_estimate=pl.CostEstimate(flops=flops3, transcendentals=0,
                                      bytes_accessed=bytes3),
    )(y2v, sc2, sh2)

    # NCHW to match the PyTorch module (when chaining blocks, keep NHWC instead).
    return out.reshape(N, H2, W2, Cf).transpose(0, 3, 1, 2)


# ---------------------------------------------------------------------------
# Pure-JAX reference (f32) of the PyTorch module, for a loose numerical check.
# ---------------------------------------------------------------------------
def _reference(x_nchw, w1, w2):
    K = w1.shape[-1]
    p = K // 2

    def conv(x, w, stride):
        return jax.lax.conv_general_dilated(
            x, w, window_strides=(stride, stride), padding=[(p, p), (p, p)],
            dimension_numbers=("NCHW", "OIHW", "NCHW"))

    def bn_act(y):
        mean = y.mean(axis=(0, 2, 3), keepdims=True)
        var = ((y - mean) ** 2).mean(axis=(0, 2, 3), keepdims=True)
        z = (y - mean) * jax.lax.rsqrt(var + EPS)
        return jnp.where(z > 0, z, SLOPE * z)

    return bn_act(conv(bn_act(conv(x_nchw, w1, 1)), w2, 2))


if __name__ == "__main__":
    key = jax.random.PRNGKey(0)
    k1, k2, kx = jax.random.split(key, 3)

    N, IN_FEATS, OUT_FEATS, H, W, K = 2, 4, 8, 16, 16, 3

    # _conv init: weight ~ N(0, 0.02), bias = 0 (bias omitted: cancelled by BN).
    w1 = 0.02 * jax.random.normal(k1, (OUT_FEATS, IN_FEATS, K, K), jnp.float32)
    w2 = 0.02 * jax.random.normal(k2, (OUT_FEATS, OUT_FEATS, K, K), jnp.float32)
    x = jax.random.normal(kx, (N, IN_FEATS, H, W), jnp.float32)

    fwd = jax.jit(discrim_block_forward)
    out = fwd(x, w1, w2)
    jax.block_until_ready(out)
    assert out.shape == (N, OUT_FEATS, H // 2, W // 2)

    # loose tolerance: matmul inputs, y2 storage and BN1-apply are bf16
    # (f32 accumulation and f32 statistics).
    ref = _reference(x, w1, w2)
    err = float(jnp.max(jnp.abs(out - ref)))
    assert err < 0.25, f"max abs error vs reference: {err}"

    print("KERNEL_OK")
</pallas_src>

<mosaic_0001>
module attributes {stable_mosaic.version = 11 : i64} {
  func.func @_conv1_kernel(%arg0: i32, %arg1: memref<1x18x9x8xbf16, #tpu.memory_space<vmem>>, %arg2: memref<48x16xbf16, #tpu.memory_space<vmem>>, %arg3: memref<1x128x16xbf16, #tpu.memory_space<vmem>>, %arg4: memref<1x2x16xf32, #tpu.memory_space<vmem>>) attributes {dimension_semantics = [#tpu.dimension_semantics<parallel>], iteration_bounds = array<i64: 2>, scalar_prefetch = 0 : i64, scratch_operands = 0 : i64, tpu.core_type = #tpu.core_type<tc>, window_params = [{transform_indices = @transform_0, window_bounds = array<i64: 1, 18, 9, 8>}, {pipeline_mode = #tpu.pipeline_mode<synchronous>, transform_indices = @transform_1, window_bounds = array<i64: 48, 16>}, {transform_indices = @transform_2, window_bounds = array<i64: 1, 128, 16>}, {transform_indices = @transform_3, window_bounds = array<i64: 1, 2, 16>}]} {
    %c0 = arith.constant 0 : index
    %c0_0 = arith.constant 0 : index
    %c0_1 = arith.constant 0 : index
    %c0_2 = arith.constant 0 : index
    %0 = vector.load %arg1[%c0, %c0_0, %c0_1, %c0_2] : memref<1x18x9x8xbf16, #tpu.memory_space<vmem>>, vector<1x16x8x8xbf16>
    %1 = vector.shape_cast %0 : vector<1x16x8x8xbf16> to vector<16x8x8xbf16>
    %c0_3 = arith.constant 0 : index
    %c0_4 = arith.constant 0 : index
    %c1 = arith.constant 1 : index
    %c0_5 = arith.constant 0 : index
    %2 = vector.load %arg1[%c0_3, %c0_4, %c1, %c0_5] : memref<1x18x9x8xbf16, #tpu.memory_space<vmem>>, vector<1x16x8x8xbf16>
    %3 = vector.shape_cast %2 : vector<1x16x8x8xbf16> to vector<16x8x8xbf16>
    %c0_6 = arith.constant 0 : index
    %c1_7 = arith.constant 1 : index
    %c0_8 = arith.constant 0 : index
    %c0_9 = arith.constant 0 : index
    %4 = vector.load %arg1[%c0_6, %c1_7, %c0_8, %c0_9] : memref<1x18x9x8xbf16, #tpu.memory_space<vmem>>, vector<1x16x8x8xbf16>
    %5 = vector.shape_cast %4 : vector<1x16x8x8xbf16> to vector<16x8x8xbf16>
    %c0_10 = arith.constant 0 : index
    %c1_11 = arith.constant 1 : index
    %c1_12 = arith.constant 1 : index
    %c0_13 = arith.constant 0 : index
    %6 = vector.load %arg1[%c0_10, %c1_11, %c1_12, %c0_13] : memref<1x18x9x8xbf16, #tpu.memory_space<vmem>>, vector<1x16x8x8xbf16>
    %7 = vector.shape_cast %6 : vector<1x16x8x8xbf16> to vector<16x8x8xbf16>
    %c0_14 = arith.constant 0 : index
    %c2 = arith.constant 2 : index
    %c0_15 = arith.constant 0 : index
    %c0_16 = arith.constant 0 : index
    %8 = vector.load %arg1[%c0_14, %c2, %c0_15, %c0_16] : memref<1x18x9x8xbf16, #tpu.memory_space<vmem>>, vector<1x16x8x8xbf16>
    %9 = vector.shape_cast %8 : vector<1x16x8x8xbf16> to vector<16x8x8xbf16>
    %c0_17 = arith.constant 0 : index
    %c2_18 = arith.constant 2 : index
    %c1_19 = arith.constant 1 : index
    %c0_20 = arith.constant 0 : index
    %10 = vector.load %arg1[%c0_17, %c2_18, %c1_19, %c0_20] : memref<1x18x9x8xbf16, #tpu.memory_space<vmem>>, vector<1x16x8x8xbf16>
    %11 = vector.shape_cast %10 : vector<1x16x8x8xbf16> to vector<16x8x8xbf16>
    %12 = tpu.concatenate %1, %3, %5, %7, %9, %11 in 2 : vector<16x8x8xbf16>, vector<16x8x8xbf16>, vector<16x8x8xbf16>, vector<16x8x8xbf16>, vector<16x8x8xbf16>, vector<16x8x8xbf16> -> vector<16x8x48xbf16>
    %13 = vector.shape_cast %12 : vector<16x8x48xbf16> to vector<128x48xbf16>
    %c0_21 = arith.constant 0 : index
    %c0_22 = arith.constant 0 : index
    %14 = vector.load %arg2[%c0_21, %c0_22] : memref<48x16xbf16, #tpu.memory_space<vmem>>, vector<48x16xbf16>
    %cst = arith.constant dense<0.000000e+00> : vector<128x16xf32>
    %15 = tpu.matmul %13, %14, %cst {dimension_numbers = #tpu.dot_dimension_numbers<[1], [0], [0], [1], [0, 0, 1, 1], [], []>} : vector<128x48xbf16>, vector<48x16xbf16>, vector<128x16xf32> -> vector<128x16xf32>
    %cst_23 = arith.constant dense<0.000000e+00> : vector<16xf32>
    %16 = vector.multi_reduction <add>, %15, %cst_23 [0] : vector<128x16xf32> to vector<16xf32>
    %17 = vector.shape_cast %16 : vector<16xf32> to vector<1x16xf32>
    %18 = arith.mulf %15, %15 : vector<128x16xf32>
    %cst_24 = arith.constant dense<0.000000e+00> : vector<16xf32>
    %19 = vector.multi_reduction <add>, %18, %cst_24 [0] : vector<128x16xf32> to vector<16xf32>
    %20 = vector.shape_cast %19 : vector<16xf32> to vector<1x16xf32>
    %21 = tpu.concatenate %17, %20 in 0 : vector<1x16xf32>, vector<1x16xf32> -> vector<2x16xf32>
    %22 = vector.shape_cast %21 : vector<2x16xf32> to vector<1x2x16xf32>
    %c0_25 = arith.constant 0 : index
    %c0_26 = arith.constant 0 : index
    %c0_27 = arith.constant 0 : index
    %23 = vector.load %arg4[%c0_25, %c0_26, %c0_27] : memref<1x2x16xf32, #tpu.memory_space<vmem>>, vector<1x2x16xf32>
    tpu.vector_store %arg4[%c0_25, %c0_26, %c0_27], %22 {strides = array<i32>} : memref<1x2x16xf32, #tpu.memory_space<vmem>>, vector<1x2x16xf32>,
    %24 = arith.truncf %15 : vector<128x16xf32> to vector<128x16xbf16>
    %25 = vector.shape_cast %24 : vector<128x16xbf16> to vector<1x128x16xbf16>
    %c0_28 = arith.constant 0 : index
    %c0_29 = arith.constant 0 : index
    %c0_30 = arith.constant 0 : index
    %26 = vector.load %arg3[%c0_28, %c0_29, %c0_30] : memref<1x128x16xbf16, #tpu.memory_space<vmem>>, vector<1x128x16xbf16>
    tpu.vector_store %arg3[%c0_28, %c0_29, %c0_30], %25 {strides = array<i32>} : memref<1x128x16xbf16, #tpu.memory_space<vmem>>, vector<1x128x16xbf16>,
    return
  }
  func.func @transform_0(%arg0: i32) -> (i32, i32, i32, i32) {
    %c0_i32 = arith.constant 0 : i32
    %c0_i32_0 = arith.constant 0 : i32
    %c0_i32_1 = arith.constant 0 : i32
    %c0_i32_2 = arith.constant 0 : i32
    return %arg0, %c0_i32, %c0_i32_0, %c0_i32_1 : i32, i32, i32, i32
  }
  func.func @transform_1(%arg0: i32) -> (i32, i32) {
    %c0_i32 = arith.constant 0 : i32
    %c0_i32_0 = arith.constant 0 : i32
    %c0_i32_1 = arith.constant 0 : i32
    return %c0_i32, %c0_i32_0 : i32, i32
  }
  func.func @transform_2(%arg0: i32) -> (i32, i32, i32) {
    %c0_i32 = arith.constant 0 : i32
    %c0_i32_0 = arith.constant 0 : i32
    %c0_i32_1 = arith.constant 0 : i32
    return %arg0, %c0_i32, %c0_i32_0 : i32, i32, i32
  }
  func.func @transform_3(%arg0: i32) -> (i32, i32, i32) {
    %c0_i32 = arith.constant 0 : i32
    %c0_i32_0 = arith.constant 0 : i32
    %c0_i32_1 = arith.constant 0 : i32
    return %arg0, %c0_i32, %c0_i32_0 : i32, i32, i32
  }
}

module attributes {stable_mosaic.version = 11 : i64} {
  func.func @_bn_act_conv2_kernel(%arg0: i32, %arg1: memref<1x8x2x8x16xbf16, #tpu.memory_space<vmem>>, %arg2: memref<96x8xbf16, #tpu.memory_space<vmem>>, %arg3: memref<1x1x1x16xbf16, #tpu.memory_space<vmem>>, %arg4: memref<1x1x1x16xbf16, #tpu.memory_space<vmem>>, %arg5: memref<1x64x8xbf16, #tpu.memory_space<vmem>>, %arg6: memref<1x2x8xf32, #tpu.memory_space<vmem>>, %arg7: memref<9x2x9x16xbf16, #tpu.memory_space<vmem>>) attributes {dimension_semantics = [#tpu.dimension_semantics<parallel>], iteration_bounds = array<i64: 2>, scalar_prefetch = 0 : i64, scratch_operands = 1 : i64, tpu.core_type = #tpu.core_type<tc>, window_params = [{transform_indices = @transform_0, window_bounds = array<i64: 1, 8, 2, 8, 16>}, {pipeline_mode = #tpu.pipeline_mode<synchronous>, transform_indices = @transform_1, window_bounds = array<i64: 96, 8>}, {pipeline_mode = #tpu.pipeline_mode<synchronous>, transform_indices = @transform_2, window_bounds = array<i64: 1, 1, 1, 16>}, {pipeline_mode = #tpu.pipeline_mode<synchronous>, transform_indices = @transform_3, window_bounds = array<i64: 1, 1, 1, 16>}, {transform_indices = @transform_4, window_bounds = array<i64: 1, 64, 8>}, {transform_indices = @transform_5, window_bounds = array<i64: 1, 2, 8>}]} {
    %c0 = arith.constant 0 : index
    %c0_0 = arith.constant 0 : index
    %c0_1 = arith.constant 0 : index
    %c0_2 = arith.constant 0 : index
    %c0_3 = arith.constant 0 : index
    %0 = vector.load %arg1[%c0, %c0_0, %c0_1, %c0_2, %c0_3] : memref<1x8x2x8x16xbf16, #tpu.memory_space<vmem>>, vector<1x8x2x8x16xbf16>
    %1 = vector.shape_cast %0 : vector<1x8x2x8x16xbf16> to vector<8x2x8x16xbf16>
    %c0_4 = arith.constant 0 : index
    %c0_5 = arith.constant 0 : index
    %c0_6 = arith.constant 0 : index
    %c0_7 = arith.constant 0 : index
    %2 = vector.load %arg3[%c0_4, %c0_5, %c0_6, %c0_7] : memref<1x1x1x16xbf16, #tpu.memory_space<vmem>>, vector<1x1x1x16xbf16>
    %3 = vector.shape_cast %2 : vector<1x1x1x16xbf16> to vector<1x1x16xbf16>
    %4 = vector.shape_cast %3 : vector<1x1x16xbf16> to vector<1x1x1x16xbf16>
    %5 = vector.broadcast %4 : vector<1x1x1x16xbf16> to vector<8x2x8x16xbf16>
    %6 = arith.mulf %1, %5 : vector<8x2x8x16xbf16>
    %c0_8 = arith.constant 0 : index
    %c0_9 = arith.constant 0 : index
    %c0_10 = arith.constant 0 : index
    %c0_11 = arith.constant 0 : index
    %7 = vector.load %arg4[%c0_8, %c0_9, %c0_10, %c0_11] : memref<1x1x1x16xbf16, #tpu.memory_space<vmem>>, vector<1x1x1x16xbf16>
    %8 = vector.shape_cast %7 : vector<1x1x1x16xbf16> to vector<1x1x16xbf16>
    %9 = vector.shape_cast %8 : vector<1x1x16xbf16> to vector<1x1x1x16xbf16>
    %10 = vector.broadcast %9 : vector<1x1x1x16xbf16> to vector<8x2x8x16xbf16>
    %11 = arith.addf %6, %10 : vector<8x2x8x16xbf16>
    %cst = arith.constant 0.000000e+00 : bf16
    %12 = vector.broadcast %cst : bf16 to vector<8x2x8x16xbf16>
    %13 = arith.cmpf ogt, %11, %12 : vector<8x2x8x16xbf16>
    %cst_12 = arith.constant 1.000980e-02 : bf16
    %14 = vector.broadcast %cst_12 : bf16 to vector<8x2x8x16xbf16>
    %15 = arith.mulf %14, %11 : vector<8x2x8x16xbf16>
    %16 = arith.select %13, %11, %15 : vector<8x2x8x16xi1>, vector<8x2x8x16xbf16>
    %cst_13 = arith.constant 0.000000e+00 : bf16
    %17 = vector.broadcast %cst_13 : bf16 to vector<1x2x9x16xbf16>
    %c0_14 = arith.constant 0 : index
    %c0_15 = arith.constant 0 : index
    %c0_16 = arith.constant 0 : index
    %c0_17 = arith.constant 0 : index
    %18 = vector.load %arg7[%c0_14, %c0_15, %c0_16, %c0_17] : memref<9x2x9x16xbf16, #tpu.memory_space<vmem>>, vector<1x2x9x16xbf16>
    tpu.vector_store %arg7[%c0_14, %c0_15, %c0_16, %c0_17], %17 {strides = array<i32>} : memref<9x2x9x16xbf16, #tpu.memory_space<vmem>>, vector<1x2x9x16xbf16>,
    %cst_18 = arith.constant 0.000000e+00 : bf16
    %19 = vector.broadcast %cst_18 : bf16 to vector<1x2x9x16xbf16>
    %c8 = arith.constant 8 : index
    %c0_19 = arith.constant 0 : index
    %c0_20 = arith.constant 0 : index
    %c0_21 = arith.constant 0 : index
    %20 = vector.load %arg7[%c8, %c0_19, %c0_20, %c0_21] : memref<9x2x9x16xbf16, #tpu.memory_space<vmem>>, vector<1x2x9x16xbf16>
    tpu.vector_store %arg7[%c8, %c0_19, %c0_20, %c0_21], %19 {strides = array<i32>} : memref<9x2x9x16xbf16, #tpu.memory_space<vmem>>, vector<1x2x9x16xbf16>,
    %cst_22 = arith.constant 0.000000e+00 : bf16
    %21 = vector.broadcast %cst_22 : bf16 to vector<9x2x1x16xbf16>
    %c0_23 = arith.constant 0 : index
    %c0_24 = arith.constant 0 : index
    %c0_25 = arith.constant 0 : index
    %c0_26 = arith.constant 0 : index
    %22 = vector.load %arg7[%c0_23, %c0_24, %c0_25, %c0_26] : memref<9x2x9x16xbf16, #tpu.memory_space<vmem>>, vector<9x2x1x16xbf16>
    tpu.vector_store %arg7[%c0_23, %c0_24, %c0_25, %c0_26], %21 {strides = array<i32>} : memref<9x2x9x16xbf16, #tpu.memory_space<vmem>>, vector<9x2x1x16xbf16>,
    %cst_27 = arith.constant 0.000000e+00 : bf16
    %23 = vector.broadcast %cst_27 : bf16 to vector<9x2x1x16xbf16>
    %c0_28 = arith.constant 0 : index
    %c0_29 = arith.constant 0 : index
    %c8_30 = arith.constant 8 : index
    %c0_31 = arith.constant 0 : index
    %24 = vector.load %arg7[%c0_28, %c0_29, %c8_30, %c0_31] : memref<9x2x9x16xbf16, #tpu.memory_space<vmem>>, vector<9x2x1x16xbf16>
    tpu.vector_store %arg7[%c0_28, %c0_29, %c8_30, %c0_31], %23 {strides = array<i32>} : memref<9x2x9x16xbf16, #tpu.memory_space<vmem>>, vector<9x2x1x16xbf16>,
    %25 = vector.extract_strided_slice %16 {offsets = [0, 0, 0, 0], sizes = [8, 1, 8, 8], strides = [1, 1, 1, 1]} : vector<8x2x8x16xbf16> to vector<8x1x8x8xbf16>
    %26 = vector.shape_cast %25 : vector<8x1x8x8xbf16> to vector<8x8x8xbf16>
    %c0_32 = arith.constant 0 : index
    %c1 = arith.constant 1 : index
    %c0_33 = arith.constant 0 : index
    %c8_34 = arith.constant 8 : index
    %27 = vector.load %arg7[%c0_32, %c1, %c0_33, %c8_34] : memref<9x2x9x16xbf16, #tpu.memory_space<vmem>>, vector<8x1x8x8xbf16>
    %28 = vector.shape_cast %27 : vector<8x1x8x8xbf16> to vector<8x8x8xbf16>
    %29 = vector.shape_cast %26 : vector<8x8x8xbf16> to vector<8x1x8x8xbf16>
    tpu.vector_store %arg7[%c0_32, %c1, %c0_33, %c8_34], %29 {strides = array<i32>} : memref<9x2x9x16xbf16, #tpu.memory_space<vmem>>, vector<8x1x8x8xbf16>,
    %30 = vector.extract_strided_slice %16 {offsets = [0, 0, 0, 8], sizes = [8, 1, 8, 8], strides = [1, 1, 1, 1]} : vector<8x2x8x16xbf16> to vector<8x1x8x8xbf16>
    %31 = vector.shape_cast %30 : vector<8x1x8x8xbf16> to vector<8x8x8xbf16>
    %c0_35 = arith.constant 0 : index
    %c1_36 = arith.constant 1 : index
    %c1_37 = arith.constant 1 : index
    %c0_38 = arith.constant 0 : index
    %32 = vector.load %arg7[%c0_35, %c1_36, %c1_37, %c0_38] : memref<9x2x9x16xbf16, #tpu.memory_space<vmem>>, vector<8x1x8x8xbf16>
    %33 = vector.shape_cast %32 : vector<8x1x8x8xbf16> to vector<8x8x8xbf16>
    %34 = vector.shape_cast %31 : vector<8x8x8xbf16> to vector<8x1x8x8xbf16>
    tpu.vector_store %arg7[%c0_35, %c1_36, %c1_37, %c0_38], %34 {strides = array<i32>} : memref<9x2x9x16xbf16, #tpu.memory_space<vmem>>, vector<8x1x8x8xbf16>,
    %35 = vector.extract_strided_slice %16 {offsets = [0, 1, 0, 0], sizes = [8, 1, 8, 8], strides = [1, 1, 1, 1]} : vector<8x2x8x16xbf16> to vector<8x1x8x8xbf16>
    %36 = vector.shape_cast %35 : vector<8x1x8x8xbf16> to vector<8x8x8xbf16>
    %c1_39 = arith.constant 1 : index
    %c0_40 = arith.constant 0 : index
    %c0_41 = arith.constant 0 : index
    %c8_42 = arith.constant 8 : index
    %37 = vector.load %arg7[%c1_39, %c0_40, %c0_41, %c8_42] : memref<9x2x9x16xbf16, #tpu.memory_space<vmem>>, vector<8x1x8x8xbf16>
    %38 = vector.shape_cast %37 : vector<8x1x8x8xbf16> to vector<8x8x8xbf16>
    %39 = vector.shape_cast %36 : vector<8x8x8xbf16> to vector<8x1x8x8xbf16>
    tpu.vector_store %arg7[%c1_39, %c0_40, %c0_41, %c8_42], %39 {strides = array<i32>} : memref<9x2x9x16xbf16, #tpu.memory_space<vmem>>, vector<8x1x8x8xbf16>,
    %40 = vector.extract_strided_slice %16 {offsets = [0, 1, 0, 8], sizes = [8, 1, 8, 8], strides = [1, 1, 1, 1]} : vector<8x2x8x16xbf16> to vector<8x1x8x8xbf16>
    %41 = vector.shape_cast %40 : vector<8x1x8x8xbf16> to vector<8x8x8xbf16>
    %c1_43 = arith.constant 1 : index
    %c0_44 = arith.constant 0 : index
    %c1_45 = arith.constant 1 : index
    %c0_46 = arith.constant 0 : index
    %42 = vector.load %arg7[%c1_43, %c0_44, %c1_45, %c0_46] : memref<9x2x9x16xbf16, #tpu.memory_space<vmem>>, vector<8x1x8x8xbf16>
    %43 = vector.shape_cast %42 : vector<8x1x8x8xbf16> to vector<8x8x8xbf16>
    %44 = vector.shape_cast %41 : vector<8x8x8xbf16> to vector<8x1x8x8xbf16>
    tpu.vector_store %arg7[%c1_43, %c0_44, %c1_45, %c0_46], %44 {strides = array<i32>} : memref<9x2x9x16xbf16, #tpu.memory_space<vmem>>, vector<8x1x8x8xbf16>,
    %c0_47 = arith.constant 0 : index
    %c0_48 = arith.constant 0 : index
    %c0_49 = arith.constant 0 : index
    %c0_50 = arith.constant 0 : index
    %45 = vector.load %arg7[%c0_47, %c0_48, %c0_49, %c0_50] : memref<9x2x9x16xbf16, #tpu.memory_space<vmem>>, vector<8x1x9x16xbf16>
    %46 = vector.shape_cast %45 : vector<8x1x9x16xbf16> to vector<8x9x16xbf16>
    %47 = vector.extract_strided_slice %46 {offsets = [0, 0, 0], sizes = [8, 8, 16], strides = [1, 1, 1]} : vector<8x9x16xbf16> to vector<8x8x16xbf16>
    %48 = vector.extract_strided_slice %46 {offsets = [0, 1, 0], sizes = [8, 8, 16], strides = [1, 1, 1]} : vector<8x9x16xbf16> to vector<8x8x16xbf16>
    %c0_51 = arith.constant 0 : index
    %c1_52 = arith.constant 1 : index
    %c0_53 = arith.constant 0 : index
    %c0_54 = arith.constant 0 : index
    %49 = vector.load %arg7[%c0_51, %c1_52, %c0_53, %c0_54] : memref<9x2x9x16xbf16, #tpu.memory_space<vmem>>, vector<8x1x9x16xbf16>
    %50 = vector.shape_cast %49 : vector<8x1x9x16xbf16> to vector<8x9x16xbf16>
    %51 = vector.extract_strided_slice %50 {offsets = [0, 0, 0], sizes = [8, 8, 16], strides = [1, 1, 1]} : vector<8x9x16xbf16> to vector<8x8x16xbf16>
    %52 = vector.extract_strided_slice %50 {offsets = [0, 1, 0], sizes = [8, 8, 16], strides = [1, 1, 1]} : vector<8x9x16xbf16> to vector<8x8x16xbf16>
    %c1_55 = arith.constant 1 : index
    %c0_56 = arith.constant 0 : index
    %c0_57 = arith.constant 0 : index
    %c0_58 = arith.constant 0 : index
    %53 = vector.load %arg7[%c1_55, %c0_56, %c0_57, %c0_58] : memref<9x2x9x16xbf16, #tpu.memory_space<vmem>>, vector<8x1x9x16xbf16>
    %54 = vector.shape_cast %53 : vector<8x1x9x16xbf16> to vector<8x9x16xbf16>
    %55 = vector.extract_strided_slice %54 {offsets = [0, 0, 0], sizes = [8, 8, 16], strides = [1, 1, 1]} : vector<8x9x16xbf16> to vector<8x8x16xbf16>
    %56 = vector.extract_strided_slice %54 {offsets = [0, 1, 0], sizes = [8, 8, 16], strides = [1, 1, 1]} : vector<8x9x16xbf16> to vector<8x8x16xbf16>
    %57 = tpu.concatenate %47, %48, %51, %52, %55, %56 in 2 : vector<8x8x16xbf16>, vector<8x8x16xbf16>, vector<8x8x16xbf16>, vector<8x8x16xbf16>, vector<8x8x16xbf16>, vector<8x8x16xbf16> -> vector<8x8x96xbf16>
    %58 = vector.shape_cast %57 : vector<8x8x96xbf16> to vector<64x96xbf16>
    %c0_59 = arith.constant 0 : index
    %c0_60 = arith.constant 0 : index
    %59 = vector.load %arg2[%c0_59, %c0_60] : memref<96x8xbf16, #tpu.memory_space<vmem>>, vector<96x8xbf16>
    %cst_61 = arith.constant dense<0.000000e+00> : vector<64x8xf32>
    %60 = tpu.matmul %58, %59, %cst_61 {dimension_numbers = #tpu.dot_dimension_numbers<[1], [0], [0], [1], [0, 0, 1, 1], [], []>} : vector<64x96xbf16>, vector<96x8xbf16>, vector<64x8xf32> -> vector<64x8xf32>
    %cst_62 = arith.constant dense<0.000000e+00> : vector<8xf32>
    %61 = vector.multi_reduction <add>, %60, %cst_62 [0] : vector<64x8xf32> to vector<8xf32>
    %62 = vector.shape_cast %61 : vector<8xf32> to vector<1x8xf32>
    %63 = arith.mulf %60, %60 : vector<64x8xf32>
    %cst_63 = arith.constant dense<0.000000e+00> : vector<8xf32>
    %64 = vector.multi_reduction <add>, %63, %cst_63 [0] : vector<64x8xf32> to vector<8xf32>
    %65 = vector.shape_cast %64 : vector<8xf32> to vector<1x8xf32>
    %66 = tpu.concatenate %62, %65 in 0 : vector<1x8xf32>, vector<1x8xf32> -> vector<2x8xf32>
    %67 = vector.shape_cast %66 : vector<2x8xf32> to vector<1x2x8xf32>
    %c0_64 = arith.constant 0 : index
    %c0_65 = arith.constant 0 : index
    %c0_66 = arith.constant 0 : index
    %68 = vector.load %arg6[%c0_64, %c0_65, %c0_66] : memref<1x2x8xf32, #tpu.memory_space<vmem>>, vector<1x2x8xf32>
    tpu.vector_store %arg6[%c0_64, %c0_65, %c0_66], %67 {strides = array<i32>} : memref<1x2x8xf32, #tpu.memory_space<vmem>>, vector<1x2x8xf32>,
    %69 = arith.truncf %60 : vector<64x8xf32> to vector<64x8xbf16>
    %70 = vector.shape_cast %69 : vector<64x8xbf16> to vector<1x64x8xbf16>
    %c0_67 = arith.constant 0 : index
    %c0_68 = arith.constant 0 : index
    %c0_69 = arith.constant 0 : index
    %71 = vector.load %arg5[%c0_67, %c0_68, %c0_69] : memref<1x64x8xbf16, #tpu.memory_space<vmem>>, vector<1x64x8xbf16>
    tpu.vector_store %arg5[%c0_67, %c0_68, %c0_69], %70 {strides = array<i32>} : memref<1x64x8xbf16, #tpu.memory_space<vmem>>, vector<1x64x8xbf16>,
    return
  }
  func.func @transform_0(%arg0: i32) -> (i32, i32, i32, i32, i32) {
    %c0_i32 = arith.constant 0 : i32
    %c0_i32_0 = arith.constant 0 : i32
    %c0_i32_1 = arith.constant 0 : i32
    %c0_i32_2 = arith.constant 0 : i32
    %c0_i32_3 = arith.constant 0 : i32
    return %arg0, %c0_i32, %c0_i32_0, %c0_i32_1, %c0_i32_2 : i32, i32, i32, i32, i32
  }
  func.func @transform_1(%arg0: i32) -> (i32, i32) {
    %c0_i32 = arith.constant 0 : i32
    %c0_i32_0 = arith.constant 0 : i32
    %c0_i32_1 = arith.constant 0 : i32
    return %c0_i32, %c0_i32_0 : i32, i32
  }
  func.func @transform_2(%arg0: i32) -> (i32, i32, i32, i32) {
    %c0_i32 = arith.constant 0 : i32
    %c0_i32_0 = arith.constant 0 : i32
    %c0_i32_1 = arith.constant 0 : i32
    %c0_i32_2 = arith.constant 0 : i32
    %c0_i32_3 = arith.constant 0 : i32
    return %c0_i32, %c0_i32_0, %c0_i32_1, %c0_i32_2 : i32, i32, i32, i32
  }
  func.func @transform_3(%arg0: i32) -> (i32, i32, i32, i32) {
    %c0_i32 = arith.constant 0 : i32
    %c0_i32_0 = arith.constant 0 : i32
    %c0_i32_1 = arith.constant 0 : i32
    %c0_i32_2 = arith.constant 0 : i32
    %c0_i32_3 = arith.constant 0 : i32
    return %c0_i32, %c0_i32_0, %c0_i32_1, %c0_i32_2 : i32, i32, i32, i32
  }
  func.func @transform_4(%arg0: i32) -> (i32, i32, i32) {
    %c0_i32 = arith.constant 0 : i32
    %c0_i32_0 = arith.constant 0 : i32
    %c0_i32_1 = arith.constant 0 : i32
    return %arg0, %c0_i32, %c0_i32_0 : i32, i32, i32
  }
  func.func @transform_5(%arg0: i32) -> (i32, i32, i32) {
    %c0_i32 = arith.constant 0 : i32
    %c0_i32_0 = arith.constant 0 : i32
    %c0_i32_1 = arith.constant 0 : i32
    return %arg0, %c0_i32, %c0_i32_0 : i32, i32, i32
  }
}

module attributes {stable_mosaic.version = 11 : i64} {
  func.func @_bn_act_kernel(%arg0: i32, %arg1: memref<1x8x64xbf16, #tpu.memory_space<vmem>>, %arg2: memref<1x1x64xf32, #tpu.memory_space<vmem>>, %arg3: memref<1x1x64xf32, #tpu.memory_space<vmem>>, %arg4: memref<1x8x64xf32, #tpu.memory_space<vmem>>) attributes {dimension_semantics = [#tpu.dimension_semantics<parallel>], iteration_bounds = array<i64: 2>, scalar_prefetch = 0 : i64, scratch_operands = 0 : i64, tpu.core_type = #tpu.core_type<tc>, window_params = [{transform_indices = @transform_0, window_bounds = array<i64: 1, 8, 64>}, {pipeline_mode = #tpu.pipeline_mode<synchronous>, transform_indices = @transform_1, window_bounds = array<i64: 1, 1, 64>}, {pipeline_mode = #tpu.pipeline_mode<synchronous>, transform_indices = @transform_2, window_bounds = array<i64: 1, 1, 64>}, {transform_indices = @transform_3, window_bounds = array<i64: 1, 8, 64>}]} {
    %c0 = arith.constant 0 : index
    %c0_0 = arith.constant 0 : index
    %c0_1 = arith.constant 0 : index
    %0 = vector.load %arg1[%c0, %c0_0, %c0_1] : memref<1x8x64xbf16, #tpu.memory_space<vmem>>, vector<1x8x64xbf16>
    %1 = arith.extf %0 : vector<1x8x64xbf16> to vector<1x8x64xf32>
    %c0_2 = arith.constant 0 : index
    %c0_3 = arith.constant 0 : index
    %c0_4 = arith.constant 0 : index
    %2 = vector.load %arg2[%c0_2, %c0_3, %c0_4] : memref<1x1x64xf32, #tpu.memory_space<vmem>>, vector<1x1x64xf32>
    %3 = vector.broadcast %2 : vector<1x1x64xf32> to vector<1x8x64xf32>
    %4 = arith.mulf %1, %3 : vector<1x8x64xf32>
    %c0_5 = arith.constant 0 : index
    %c0_6 = arith.constant 0 : index
    %c0_7 = arith.constant 0 : index
    %5 = vector.load %arg3[%c0_5, %c0_6, %c0_7] : memref<1x1x64xf32, #tpu.memory_space<vmem>>, vector<1x1x64xf32>
    %6 = vector.broadcast %5 : vector<1x1x64xf32> to vector<1x8x64xf32>
    %7 = arith.addf %4, %6 : vector<1x8x64xf32>
    %cst = arith.constant 0.000000e+00 : f32
    %8 = vector.broadcast %cst : f32 to vector<1x8x64xf32>
    %9 = arith.cmpf ogt, %7, %8 : vector<1x8x64xf32>
    %cst_8 = arith.constant 0.00999999977 : f32
    %10 = vector.broadcast %cst_8 : f32 to vector<1x8x64xf32>
    %11 = arith.mulf %10, %7 : vector<1x8x64xf32>
    %12 = arith.select %9, %7, %11 : vector<1x8x64xi1>, vector<1x8x64xf32>
    %c0_9 = arith.constant 0 : index
    %c0_10 = arith.constant 0 : index
    %c0_11 = arith.constant 0 : index
    %13 = vector.load %arg4[%c0_9, %c0_10, %c0_11] : memref<1x8x64xf32, #tpu.memory_space<vmem>>, vector<1x8x64xf32>
    tpu.vector_store %arg4[%c0_9, %c0_10, %c0_11], %12 {strides = array<i32>} : memref<1x8x64xf32, #tpu.memory_space<vmem>>, vector<1x8x64xf32>,
    return
  }
  func.func @transform_0(%arg0: i32) -> (i32, i32, i32) {
    %c0_i32 = arith.constant 0 : i32
    %c0_i32_0 = arith.constant 0 : i32
    %c0_i32_1 = arith.constant 0 : i32
    return %arg0, %c0_i32, %c0_i32_0 : i32, i32, i32
  }
  func.func @transform_1(%arg0: i32) -> (i32, i32, i32) {
    %c0_i32 = arith.constant 0 : i32
    %c0_i32_0 = arith.constant 0 : i32
    %c0_i32_1 = arith.constant 0 : i32
    %c0_i32_2 = arith.constant 0 : i32
    return %c0_i32, %c0_i32_0, %c0_i32_1 : i32, i32, i32
  }
  func.func @transform_2(%arg0: i32) -> (i32, i32, i32) {
    %c0_i32 = arith.constant 0 : i32
    %c0_i32_0 = arith.constant 0 : i32
    %c0_i32_1 = arith.constant 0 : i32
    %c0_i32_2 = arith.constant 0 : i32
    return %c0_i32, %c0_i32_0, %c0_i32_1 : i32, i32, i32
  }
  func.func @transform_3(%arg0: i32) -> (i32, i32, i32) {
    %c0_i32 = arith.constant 0 : i32
    %c0_i32_0 = arith.constant 0 : i32
    %c0_i32_1 = arith.constant 0 : i32
    return %arg0, %c0_i32, %c0_i32_0 : i32, i32, i32
  }
}

</mosaic_0001>

<bundles_post_ra>
// kernel: squeeze.4
= control target key start
LH: loop header
LB: loop body
LE: loop exit
PB: predicated region body
PF: predicated region fallthrough
CT: control target
= control target key end

     0   :  { %vm8_vm0 = vcmask 64512   ;;  %s42_s0 = inlined_call_operand.vmem [shape: f32[16], index: 0, kind: input, shape index: {}]   ;;  %s43_s1 = inlined_call_operand.vmem [shape: f32[2,8], index: 1, kind: output, shape index: {}]  }
   0x1   :  { %v5_v0 = vld [vmem:[%s42_s0] sm:$0x1]  ;;  %s25_s0 = smov 120  }
   0x2   :  { %6 = vst [vmem:[#allocation1] sm:$0x1] %v5_v0 }
   0x9   :  { %v10_v1 = vld [vmem:[#allocation1] sm:$0x1]  }
   0xa   :  { %v7_v2 = vld [vmem:[#allocation1] sm:$0x1]   ;;  %11 = vrot.lane.b32.xlu0 %v10_v1, %s25_s0 }
   0xb   :  { %9 = vst.msk [vmem:[#allocation0] sm:$0x1] %vm8_vm0, %v7_v2  }
  0x7c   :  { %v12_v3 = vpop.permute.xlu0 %11  }
  0x7d   :  { %15 = vst.msk [vmem:[#allocation0 + $0x1] sm:$0x1] %vm8_vm0, %v12_v3  }
  0x84   :  { %v20_v4 = vld [vmem:[#allocation0] sm:$0x3] }
  0x85   :  { %23 = vst [vmem:[%s43_s1] sm:$0x3] %v20_v4 }

// kernel: tile.33
= control target key start
LH: loop header
LB: loop body
LE: loop exit
PB: predicated region body
PF: predicated region fallthrough
CT: control target
= control target key end

     0   :  { %s22_s0 = inlined_call_operand.vmem [shape: f32[8], index: 0, kind: input, shape index: {}]   ;;  %s23_s1 = inlined_call_operand.vmem [shape: f32[8,8], index: 1, kind: output, shape index: {}]  }
   0x1   :  { %v4_v0 = vld [vmem:[%s22_s0] ss:$0 sm:$0xff] }
   0x2   :  { %5 = vst [vmem:[%s23_s1] sm:$0xff] %v4_v0 }

// kernel: tile.34
= control target key start
LH: loop header
LB: loop body
LE: loop exit
PB: predicated region body
PF: predicated region fallthrough
CT: control target
= control target key end

     0   :  { %s69_s10 = smov 56   ;;  %s70_s11 = smov 40   ;;  %vm3_vm0 = vcmask 64512   ;;  %vm9_vm1 = vcmask 523712   ;;  %vm15_vm2 = vcmask 458112   ;;  %vm21_vm3 = vcmask 392512   ;;  %s113_s0 = inlined_call_operand.vmem [shape: f32[8,8], index: 0, kind: input, shape index: {}]   ;;  %s114_s1 = inlined_call_operand.vmem [shape: f32[1,1,64], index: 1, kind: output, shape index: {}]  }
   0x1   :  { %v55_v0 = vld [vmem:[%s113_s0 + $0x7] sm:$0x1]   ;;  %v57_v1 = vld [vmem:[%s113_s0 + $0x5] sm:$0x1]   ;;  %v56_v2 = vld [vmem:[%s113_s0 + $0x6] sm:$0x1]  }
   0x2   :  { %7 = vrot.lane.b32.xlu0 %v55_v0, %s69_s10  ;;  %19 = vrot.lane.b32.xlu1 %v57_v1, %s70_s11  ;;  %v58_v3 = vld [vmem:[%s113_s0 + $0x4] sm:$0x1]   ;;  %v2_v4 = vld [vmem:[%s113_s0] sm:$0x1]   ;;  %s71_s18 = smov 48   ;;  %s72_s19 = smov 32  }
   0x3   :  { %4 = vst.msk [vmem:[#allocation0] sm:$0x1] %vm3_vm0, %v2_v4   ;;  %v59_v5 = vld [vmem:[%s113_s0 + $0x3] sm:$0x1]   ;;  %v60_v6 = vld [vmem:[%s113_s0 + $0x2] sm:$0x1]  }
   0x4   :  { %s73_s24 = smov 24   ;;  %s74_s25 = smov 16   ;;  %v61_v7 = vld [vmem:[%s113_s0 + $0x1] sm:$0x1]   ;;  %vm27_vm4 = vcmask 326912   ;;  %vm33_vm5 = vcmask 261312  }
   0x5   :  { %s75_s0 = smov 8   ;;  %vm39_vm6 = vcmask 195712   ;;  %vm45_vm7 = vcmask 130112  }
   0x6   :  { %13 = vrot.lane.b32.xlu0 %v56_v2, %s71_s18  ;;  %25 = vrot.lane.b32.xlu1 %v58_v3, %s72_s19 }
   0xa   :  { %31 = vrot.lane.b32.xlu0 %v59_v5, %s73_s24  ;;  %37 = vrot.lane.b32.xlu1 %v60_v6, %s74_s25 }
   0xe   :  { %43 = vrot.lane.b32.xlu0 %v61_v7, %s75_s0 }
  0x74   :  { %v8_v8 = vpop.permute.xlu0 %7   ;;  %v20_v9 = vpop.permute.xlu1 %19  }
  0x75   :  { %10 = vst.msk [vmem:[#allocation0] sm:$0x1] %vm9_vm1, %v8_v8  }
  0x78   :  { %v14_v10 = vpop.permute.xlu0 %13   ;;  %v26_v11 = vpop.permute.xlu1 %25  }
  0x79   :  { %16 = vst.msk [vmem:[#allocation0] sm:$0x1] %vm15_vm2, %v14_v10  }
  0x7a   :  { %22 = vst.msk [vmem:[#allocation0] sm:$0x1] %vm21_vm3, %v20_v9  }
  0x7b   :  { %28 = vst.msk [vmem:[#allocation0] sm:$0x1] %vm27_vm4, %v26_v11  }
  0x7c   :  { %v32_v12 = vpop.permute.xlu0 %31   ;;  %v38_v13 = vpop.permute.xlu1 %37  }
  0x7d   :  { %34 = vst.msk [vmem:[#allocation0] sm:$0x1] %vm33_vm5, %v32_v12  }
  0x7e   :  { %40 = vst.msk [vmem:[#allocation0] sm:$0x1] %vm39_vm6, %v38_v13  }
  0x80   :  { %v44_v14 = vpop.permute.xlu0 %43  }
  0x81   :  { %46 = vst.msk [vmem:[#allocation0] sm:$0x1] %vm45_vm7, %v44_v14  }
  0x88   :  { %v51_v15 = vld [vmem:[#allocation0] sm:$0x1] }
  0x89   :  { %54 = vst [vmem:[%s114_s1] sm:$0x1] %v51_v15 }

// kernel: discrim_block_forward.5
= control target key start
LH: loop header
LB: loop body
LE: loop exit
PB: predicated region body
PF: predicated region fallthrough
CT: control target
= control target key end

     0   :  { %s289_s12 = smov 0   ;;  %s306_s0 = inlined_call_operand.vmem [shape: bf16[2,8,64], index: 0, kind: input, shape index: {}]   ;;  %s307_s1 = inlined_call_operand.vmem [shape: f32[1,1,64], index: 1, kind: input, shape index: {}]   ;;  %s308_s2 = inlined_call_operand.vmem [shape: f32[1,1,64], index: 2, kind: input, shape index: {}]   ;;  %s309_s3 = inlined_call_operand.vmem [shape: f32[2,8,64], index: 3, kind: output, shape index: {}]  }
   0x1 LB: > { %s242_s13 = sadd.s32 4294967295, %s267_s12   ;;  %p246_p0 = scmp.ge.s32.totalorder %s267_s12, 1  ;;  %s267_s12 = sphi %s289_s12, %s13_s12  }
   0x2   : > { %p136_p1 = scmp.lt.s32.totalorder %s267_s12, 3 }
   0x4   : > { %p137_p2 = pnand %p246_p0, %p136_p1 }
   0x5   : > { %p158_p3 = scmp.lt.s32.totalorder (!%p137_p2), %s242_s13, 1 }
   0x6   : > { %140 = sbr.rel (%p137_p2) target bundleno = 25 (0x19), region = 32 }
   0xb   : > { %s311_s13 = smov (!%p158_p3, %s242_s13), 1  ;;  %v249_v1 = vld [vmem:[%s307_s1] ss:$0 sm:$0xff]  ;;  %vm187_vm1 = vcmask 523264  }
   0xc   : > { %s247_s14 = sshll.u32 %s311_s13, 2  ;;  %v250_v3 = vld [vmem:[%s308_s2] ss:$0 sm:$0xff]  ;;  %s248_s22 = sshll.u32 %s311_s13, 3 }
   0xd   : > { %s161_s17 = scalar_lea.vmem %s306_s0, %s247_s14  ;;  %s165_s25 = scalar_lea.vmem %s309_s3, %s248_s22 }
   0xe   : > { %v166_v0 = vld [vmem:[%s161_s17] sm:$0xf] }
   0xf   : > { %v167_v2 = vunpack.c.l.bf16 %v166_v0 }
  0x11   : > { %v175_v4 = vmul.f32 %v249_v1, %v167_v2 }
  0x13   : > { %v183_v5 = vadd.f32 %v250_v3, %v175_v4 }
  0x15   : > { %vm184_vm0 = vcmp.gt.f32.partialorder %v183_v5, 0.0  ;;  %v185_v6 = vmul.f32 0.01, %v183_v5 }
  0x17   : > { %v186_v7 = vsel %vm184_vm0, %v183_v5, %v185_v6 }
  0x18   : > { %188 = vst.msk [vmem:[%s165_s25] sm:$0xff] %vm187_vm1, %v186_v7 }
  0x19 PF: > { %s13_s12 = sadd.s32 1, %s267_s12  }
  0x1a   : > { %p10_p4 = scmp.ge.s32.totalorder %s13_s12, 4  }
  0x1c   :  { %12 = sbr.rel (!%p10_p4) target bundleno = 1 (0x1), region = 62 }

// kernel: discrim_block_forward.3
= control target key start
LH: loop header
LB: loop body
LE: loop exit
PB: predicated region body
PF: predicated region fallthrough
CT: control target
= control target key end

     0   :  { %s2053_s12 = smov 0   ;;  %s2510_s0 = inlined_call_operand.vmem [shape: bf16[2,18,9,8], index: 0, kind: input, shape index: {}]   ;;  %s2511_s1 = inlined_call_operand.vmem [shape: bf16[48,16], index: 1, kind: input, shape index: {}]   ;;  %s2512_s2 = inlined_call_operand.vmem [shape: bf16[2,128,16], index: 2, kind: output, shape index: {0}]   ;;  %s2513_s3 = inlined_call_operand.vmem [shape: f32[2,2,16], index: 3, kind: output, shape index: {1}]  }
   0x1 LB: > { %s1677_s13 = sadd.s32 4294967295, %s2026_s12   ;;  %p1681_p0 = scmp.ge.s32.totalorder %s2026_s12, 1  ;;  %s2026_s12 = sphi %s2053_s12, %s14_s12  }
   0x2   : > { %p140_p1 = scmp.lt.s32.totalorder %s2026_s12, 3 }
   0x4   : > { %p141_p2 = pnand %p1681_p0, %p140_p1 }
   0x5   : > { %p168_p3 = scmp.lt.s32.totalorder (!%p141_p2), %s1677_s13, 1  ;;  %s2028_s18 = smov (!%p141_p2), 16  }
   0x6   : > { %144 = sbr.rel (%p141_p2) target bundleno = 516 (0x204), region = 28  ;;  %s2029_s19 = smov (!%p141_p2), 8  }
   0x7   : > { %s2030_s22 = smov (!%p141_p2), 24   ;;  %s2031_s25 = smov (!%p141_p2), 32  }
   0x8   : > { %s2032_s28 = smov (!%p141_p2), 40  }
   0xb   : > { %s2515_s13 = smov (!%p168_p3, %s1677_s13), 1  ;;  %v2009_v59 = vld [vmem:[%s2511_s1 + $0x10] sm:$0xff]   ;;  %vm1049_vm0 = vcmask 64512   ;;  %vm1098_vm1 = vcmask 130048   ;;  %vm1131_vm2 = vcmask 195584   ;;  %vm1164_vm3 = vcmask 261120  }
   0xc   : > { %s1923_s14 = smul.u32 144, %s2515_s13  ;;  %1895 = vmatprep.subr.bf16.mxu0 %v2009_v59  ;;  %1917 = vmatprep.subr.bf16.mxu1 %v2009_v59  ;;  %vm1197_vm4 = vcmask 326656   ;;  %vm1294_vm5 = vcmask 392192   ;;  %s1867_s29 = sshll.u32 %s2515_s13, 6  ;;  %vm1574_vm6 = vcmask 125952   ;;  %vm1506_vm7 = vcmask 1040384  }
   0xd   : > { %1896 = vmatpush3.bf16.msra.mxu0 %v2009_v59  ;;  %1920 = vmatpush3.bf16.msra.mxu1 %v2009_v59  ;;  %s2437_s5 = scalar_lea.vmem %s2512_s2, %s1867_s29  ;;  %s1685_s6 = sshll.u32 %s2515_s13, 1  ;;  %vm1508_vm8 = vcmask 123904  }
   0xe   : > { %s2067_s17 = scalar_lea.vmem %s2510_s0, %s1923_s14  ;;  %s181_s9 = scalar_lea.vmem %s2513_s3, %s1685_s6 }
   0xf   : > { %v1687_v0 = vld [vmem:[%s2067_s17 + $0x10] sm:$0xf]  ;;  %v1703_v1 = vld [vmem:[%s2067_s17 + $0x14] sm:$0x1]  ;;  %v1686_v2 = vld [vmem:[%s2067_s17 + $0x8] sm:$0xf] }
  0x10   : > { %v1767_v3 = vcombine.low %v1687_v0, %v1687_v0  ;;  %v1702_v4 = vld [vmem:[%s2067_s17 + $0xc] sm:$0x1]  ;;  %v1766_v5 = vcombine.low %v1686_v2, %v1686_v2  ;;  %v1689_v6 = vld [vmem:[%s2067_s17 + $0x20] sm:$0xf]  ;;  %v1705_v7 = vld [vmem:[%s2067_s17 + $0x24] sm:$0x1]  ;;  %v1783_v10 = vcombine.low %v1687_v0, %v1703_v1 }
  0x11   : > { %v1688_v8 = vld [vmem:[%s2067_s17 + $0x18] sm:$0xf]  ;;  %v2077_v9 = vld [vmem:[%s2067_s17 + $0x10] sm:$0xf]  ;;  %v1769_v11 = vcombine.low %v1689_v6, %v1689_v6  ;;  %v201_v13 = vld [vmem:[%s2067_s17 + $0x14] sm:$0x1]  ;;  %v1782_v19 = vcombine.low %v1686_v2, %v1702_v4  ;;  %v1785_v29 = vcombine.low %v1689_v6, %v1705_v7 }
  0x12   : > { %555 = vrot.lane.b32.xlu1 %v1767_v3, %s2028_s18  ;;  %553 = vrot.lane.b32.xlu0 %v1766_v5, %s2028_s18  ;;  %v1768_v12 = vcombine.low %v1688_v8, %v1688_v8  ;;  %v2083_v14 = vld [vmem:[%s2067_s17] sm:$0xf]  ;;  %v1704_v15 = vld [vmem:[%s2067_s17 + $0x1c] sm:$0x1]  ;;  %v1752_v16 = vcombine.low %v2077_v9, %v201_v13  ;;  %v643_v28 = vshll.u32 %v1783_v10, 16  ;;  %v641_v44 = vshrl.u32 %v1783_v10, 16 }
  0x13   : > { %v199_v17 = vld [vmem:[%s2067_s17 + $0x4] sm:$0x1]  ;;  %v2089_v18 = vld [vmem:[%s2067_s17 + $0x18] sm:$0xf]  ;;  %v202_v21 = vld [vmem:[%s2067_s17 + $0x1c] sm:$0x1]  ;;  %v1784_v32 = vcombine.low %v1688_v8, %v1704_v15 }
  0x14   : > { %v1750_v20 = vcombine.low %v2083_v14, %v199_v17  ;;  %v2094_v22 = vld [vmem:[%s2067_s17 + $0x8] sm:$0xf]  ;;  %v200_v23 = vld [vmem:[%s2067_s17 + $0xc] sm:$0x1]  ;;  %v376_v24 = vshrl.u32 %v1752_v16, 16  ;;  %v378_v25 = vshll.u32 %v1752_v16, 16  ;;  %v1753_v26 = vcombine.low %v2089_v18, %v202_v21 }
  0x15   : > { %v1751_v27 = vcombine.low %v2094_v22, %v200_v23  ;;  %v636_v36 = vshll.u32 %v1782_v19, 16  ;;  %v645_v46 = vrot.slane %v643_v28, 1  ;;  %v657_v47 = vshll.u32 %v1785_v29, 16  ;;  %v1735_v58 = vld [vmem:[%s2067_s17 + $0x1c] sm:$0x1]  ;;  %v2014_v4 = vld [vmem:[%s2511_s1 + $0x8] sm:$0xff]  }
  0x16   : > { %559 = vrot.lane.b32.xlu1 %v1769_v11, %s2028_s18  ;;  %557 = vrot.lane.b32.xlu0 %v1768_v12, %s2028_s18  ;;  %v362_v30 = vshrl.u32 %v1750_v20, 16  ;;  %v364_v31 = vshll.u32 %v1750_v20, 16  ;;  %v380_v33 = vrot.slane %v378_v25, 1  ;;  %v383_v34 = vshrl.u32 %v1753_v26, 16  ;;  %v1734_v60 = vld [vmem:[%s2067_s17 + $0x14] sm:$0x1] }
  0x17   : > { %v385_v35 = vshll.u32 %v1753_v26, 16  ;;  %v369_v38 = vshrl.u32 %v1751_v27, 16  ;;  %v371_v39 = vshll.u32 %v1751_v27, 16  ;;  %v634_v48 = vshrl.u32 %v1782_v19, 16  ;;  %v1719_v61 = vld [vmem:[%s2067_s17 + $0x18] sm:$0xf]  ;;  %1897 = vmatprep.subr.bf16.mxu0 %v2014_v4  ;;  %1918 = vmatprep.subr.bf16.mxu1 %v2014_v4 }
  0x18   : > { %v366_v37 = vrot.slane %v364_v31, 1  ;;  %v381_v40 = vor.u32 %v380_v33, %v376_v24  ;;  %v638_v50 = vrot.slane %v636_v36, 1  ;;  %v650_v51 = vshll.u32 %v1784_v32, 16  ;;  %v1718_v0 = vld [vmem:[%s2067_s17 + $0x10] sm:$0xf]  ;;  %1898 = vmatpush3.bf16.msra.mxu0 %v2014_v4  ;;  %1921 = vmatpush3.bf16.msra.mxu1 %v2014_v4  ;;  %v2019_v36 = vld [vmem:[%s2511_s1] sm:$0xff]  }
  0x19   : > { %v387_v41 = vrot.slane %v385_v35, 1  ;;  %v373_v43 = vrot.slane %v371_v39, 1  ;;  %v646_v52 = vor.u32 %v645_v46, %v641_v44  ;;  %v655_v53 = vshrl.u32 %v1785_v29, 16  ;;  %v1737_v3 = vld [vmem:[%s2067_s17 + $0x2c] sm:$0x1]  ;;  %1899 = vmatprep.subr.bf16.mxu0 %v2019_v36  ;;  %1919 = vmatprep.subr.bf16.mxu1 %v2019_v36 }
  0x1a   : > { %v367_v42 = vor.u32 %v366_v37, %v362_v30  ;;  %477 = vrot.lane.b32.xlu1 %v381_v40, %s2029_s19  ;;  %v659_v54 = vrot.slane %v657_v47, 1  ;;  %v639_v55 = vor.u32 %v638_v50, %v634_v48  ;;  %v648_v56 = vshrl.u32 %v1784_v32, 16  ;;  %v1736_v5 = vld [vmem:[%s2067_s17 + $0x24] sm:$0x1]  ;;  %v1721_v6 = vld [vmem:[%s2067_s17 + $0x28] sm:$0xf] }
  0x1b   : > { %v388_v45 = vor.u32 %v387_v41, %v383_v34  ;;  %v374_v49 = vor.u32 %v373_v43, %v369_v38  ;;  %v652_v57 = vrot.slane %v650_v51, 1  ;;  %v1815_v63 = vcombine.low %v1719_v61, %v1735_v58  ;;  %v1720_v10 = vld [vmem:[%s2067_s17 + $0x20] sm:$0xf]  ;;  %v2124_v16 = vld [vmem:[%s2067_s17 + $0x28] sm:$0xf] }
  0x1c   : > { %473 = vrot.lane.b32.xlu0 %v367_v42, %s2029_s19  ;;  %v660_v62 = vor.u32 %v659_v54, %v655_v53  ;;  %v1814_v2 = vcombine.low %v1718_v0, %v1734_v60  ;;  %v1799_v7 = vcombine.low %v1719_v61, %v1719_v61  ;;  %v1817_v8 = vcombine.low %v1721_v6, %v1737_v3  ;;  %v204_v17 = vld [vmem:[%s2067_s17 + $0x2c] sm:$0x1]  ;;  %v2128_v19 = vld [vmem:[%s2067_s17 + $0x20] sm:$0xf]  ;;  %v203_v20 = vld [vmem:[%s2067_s17 + $0x24] sm:$0x1] }
  0x1d   : > { %v653_v1 = vor.u32 %v652_v57, %v648_v56  ;;  %v915_v11 = vshll.u32 %v1815_v63, 16  ;;  %v1798_v12 = vcombine.low %v1718_v0, %v1718_v0  ;;  %v1816_v13 = vcombine.low %v1720_v10, %v1736_v5  ;;  %v2134_v28 = vld [vmem:[%s2067_s17 + $0x38] sm:$0xf]  ;;  %v206_v33 = vld [vmem:[%s2067_s17 + $0x3c] sm:$0x1]  ;;  %1900 = vmatpush3.bf16.msra.mxu0 %v2019_v36  ;;  %1922 = vmatpush3.bf16.msra.mxu1 %v2019_v36 }
  0x1e   : > { %479 = vrot.lane.b32.xlu1 %v388_v45, %s2029_s19  ;;  %v908_v15 = vshll.u32 %v1814_v2, 16  ;;  %v1801_v21 = vcombine.low %v1721_v6, %v1721_v6  ;;  %v1800_v23 = vcombine.low %v1720_v10, %v1720_v10  ;;  %v913_v24 = vshrl.u32 %v1815_v63, 16  ;;  %v2140_v34 = vld [vmem:[%s2067_s17 + $0x30] sm:$0xf]  ;;  %v205_v35 = vld [vmem:[%s2067_s17 + $0x34] sm:$0x1] }
  0x1f   : > { %v917_v25 = vrot.slane %v915_v11, 1  ;;  %v929_v26 = vshll.u32 %v1817_v8, 16  ;;  %v1755_v27 = vcombine.low %v2124_v16, %v204_v17  ;;  %v906_v29 = vshrl.u32 %v1814_v2, 16  ;;  %v1707_v61 = vld [vmem:[%s2067_s17 + $0x34] sm:$0x1] }
  0x20   : > { %475 = vrot.lane.b32.xlu0 %v374_v49, %s2029_s19  ;;  %v910_v30 = vrot.slane %v908_v15, 1  ;;  %v922_v31 = vshll.u32 %v1816_v13, 16  ;;  %v1754_v32 = vcombine.low %v2128_v19, %v203_v20  ;;  %v927_v37 = vshrl.u32 %v1817_v8, 16  ;;  %v1691_v63 = vld [vmem:[%s2067_s17 + $0x30] sm:$0xf] }
  0x21   : > { %v920_v38 = vshrl.u32 %v1816_v13, 16  ;;  %v918_v39 = vor.u32 %v917_v25, %v913_v24  ;;  %v931_v40 = vrot.slane %v929_v26, 1  ;;  %v399_v41 = vshll.u32 %v1755_v27, 16  ;;  %v1690_v2 = vld [vmem:[%s2067_s17 + $0x28] sm:$0xf] }
  0x22   : > { %747 = vrot.lane.b32.xlu1 %v646_v52, %s2030_s22  ;;  %v1757_v42 = vcombine.low %v2134_v28, %v206_v33  ;;  %v911_v43 = vor.u32 %v910_v30, %v906_v29  ;;  %v924_v44 = vrot.slane %v922_v31, 1  ;;  %v392_v45 = vshll.u32 %v1754_v32, 16  ;;  %v1709_v5 = vld [vmem:[%s2067_s17 + $0x44] sm:$0x1]  ;;  %v1708_v6 = vld [vmem:[%s2067_s17 + $0x3c] sm:$0x1] }
  0x23   : > { %v1756_v46 = vcombine.low %v2140_v34, %v205_v35  ;;  %v932_v47 = vor.u32 %v931_v40, %v927_v37  ;;  %v397_v48 = vshrl.u32 %v1755_v27, 16  ;;  %v401_v49 = vrot.slane %v399_v41, 1  ;;  %v1692_v11 = vld [vmem:[%s2067_s17 + $0x38] sm:$0xf]  ;;  %v1739_v37 = vld [vmem:[%s2067_s17 + $0x3c] sm:$0x1] }
  0x24   : > { %745 = vrot.lane.b32.xlu0 %v639_v55, %s2030_s22  ;;  %v413_v50 = vshll.u32 %v1757_v42, 16  ;;  %v925_v51 = vor.u32 %v924_v44, %v920_v38  ;;  %v390_v52 = vshrl.u32 %v1754_v32, 16  ;;  %v394_v53 = vrot.slane %v392_v45, 1  ;;  %v1738_v38 = vld [vmem:[%s2067_s17 + $0x34] sm:$0x1] }
  0x25   : > { %v406_v54 = vshll.u32 %v1756_v46, 16  ;;  %v402_v55 = vor.u32 %v401_v49, %v397_v48  ;;  %v411_v56 = vshrl.u32 %v1757_v42, 16  ;;  %v404_v59 = vshrl.u32 %v1756_v46, 16  ;;  %v1722_v42 = vld [vmem:[%s2067_s17 + $0x30] sm:$0xf] }
  0x26   : > { %751 = vrot.lane.b32.xlu1 %v660_v62, %s2030_s22  ;;  %v415_v57 = vrot.slane %v413_v50, 1  ;;  %v395_v58 = vor.u32 %v394_v53, %v390_v52  ;;  %v1706_v62 = vld [vmem:[%s2067_s17 + $0x2c] sm:$0x1]  ;;  %v1771_v8 = vcombine.low %v1691_v63, %v1691_v63  ;;  %v1770_v13 = vcombine.low %v1690_v2, %v1690_v2  ;;  %v1740_v46 = vld [vmem:[%s2067_s17 + $0x44] sm:$0x1] }
  0x27   : > { %v408_v60 = vrot.slane %v406_v54, 1  ;;  %v1786_v4 = vcombine.low %v1690_v2, %v1706_v62  ;;  %v1788_v15 = vcombine.low %v1692_v11, %v1708_v6  ;;  %v1772_v25 = vcombine.low %v1692_v11, %v1692_v11  ;;  %v1741_v45 = vld [vmem:[%s2067_s17 + $0x4c] sm:$0x1]  ;;  %v1724_v50 = vld [vmem:[%s2067_s17 + $0x40] sm:$0xf] }
  0x28   : > { %749 = vrot.lane.b32.xlu0 %v653_v1, %s2030_s22  ;;  %v416_v0 = vor.u32 %v415_v57, %v411_v56  ;;  %v1787_v1 = vcombine.low %v1691_v63, %v1707_v61  ;;  %v1818_v44 = vcombine.low %v1722_v42, %v1738_v38  ;;  %v1802_v52 = vcombine.low %v1722_v42, %v1722_v42  ;;  %v208_v56 = vld [vmem:[%s2067_s17 + $0x4c] sm:$0x1]  ;;  %v2187_v57 = vld [vmem:[%s2067_s17 + $0x40] sm:$0xf]  ;;  %v210_v6 = vld [vmem:[%s2067_s17 + $0x5c] sm:$0x1] }
  0x29   : > { %v409_v3 = vor.u32 %v408_v60, %v404_v59  ;;  %v664_v17 = vshll.u32 %v1786_v4, 16  ;;  %v662_v26 = vshrl.u32 %v1786_v4, 16  ;;  %v678_v29 = vshll.u32 %v1788_v15, 16  ;;  %v1710_v42 = vld [vmem:[%s2067_s17 + $0x4c] sm:$0x1] }
  0x2a   : > { %827 = vrot.lane.b32.xlu1 %v1799_v7, %s2031_s25  ;;  %v1693_v7 = vld [vmem:[%s2067_s17 + $0x40] sm:$0xf]  ;;  %v676_v35 = vshrl.u32 %v1788_v15, 16  ;;  %v1820_v53 = vcombine.low %v1724_v50, %v1740_v46  ;;  %v936_v54 = vshll.u32 %v1818_v44, 16  ;;  %v1804_v60 = vcombine.low %v1724_v50, %v1724_v50  ;;  %v1694_v46 = vld [vmem:[%s2067_s17 + $0x48] sm:$0xf] }
  0x2b   : > { %v1789_v10 = vcombine.low %v1693_v7, %v1709_v5  ;;  %v1773_v20 = vcombine.low %v1693_v7, %v1693_v7  ;;  %v666_v27 = vrot.slane %v664_v17, 1  ;;  %v680_v36 = vrot.slane %v678_v29, 1  ;;  %v2199_v7 = vld [vmem:[%s2067_s17 + $0x50] sm:$0xf]  ;;  %v1712_v50 = vld [vmem:[%s2067_s17 + $0x5c] sm:$0x1] }
  0x2c   : > { %825 = vrot.lane.b32.xlu0 %v1798_v12, %s2031_s25  ;;  %v671_v12 = vshll.u32 %v1787_v1, 16  ;;  %v934_v2 = vshrl.u32 %v1818_v44, 16  ;;  %v950_v4 = vshll.u32 %v1820_v53, 16  ;;  %v948_v11 = vshrl.u32 %v1820_v53, 16 }
  0x2d   : > { %v685_v24 = vshll.u32 %v1789_v10, 16  ;;  %v683_v31 = vshrl.u32 %v1789_v10, 16  ;;  %v667_v33 = vor.u32 %v666_v27, %v662_v26 }
  0x2e   : > { %831 = vrot.lane.b32.xlu1 %v1801_v21, %s2031_s25  ;;  %v669_v21 = vshrl.u32 %v1787_v1, 16  ;;  %v2193_v1 = vld [vmem:[%s2067_s17 + $0x58] sm:$0xf] }
  0x2f   : > { %v687_v32 = vrot.slane %v685_v24, 1  ;;  %v1761_v17 = vcombine.low %v2193_v1, %v210_v6 }
  0x30   : > { %829 = vrot.lane.b32.xlu0 %v1800_v23, %s2031_s25  ;;  %v673_v23 = vrot.slane %v671_v12, 1 }
  0x31   : > { %v688_v40 = vor.u32 %v687_v32, %v683_v31  ;;  %v441_v29 = vshll.u32 %v1761_v17, 16 }
  0x32   : > { %1019 = vrot.lane.b32.xlu1 %v918_v39, %s2032_s28  ;;  %v674_v30 = vor.u32 %v673_v23, %v669_v21  ;;  %v1723_v39 = vld [vmem:[%s2067_s17 + $0x38] sm:$0xf]  ;;  %v952_v21 = vrot.slane %v950_v4, 1 }
  0x33   : > { %v1819_v41 = vcombine.low %v1723_v39, %v1739_v37  ;;  %v1803_v48 = vcombine.low %v1723_v39, %v1723_v39  ;;  %v443_v37 = vrot.slane %v441_v29, 1  ;;  %v1744_v29 = vld [vmem:[%s2067_s17 + $0x64] sm:$0x1] }
  0x34   : > { %1017 = vrot.lane.b32.xlu0 %v911_v43, %s2032_s28  ;;  %v681_v43 = vor.u32 %v680_v36, %v676_v35  ;;  %v439_v36 = vshrl.u32 %v1761_v17, 16  ;;  %v1742_v17 = vld [vmem:[%s2067_s17 + $0x54] sm:$0x1] }
  0x35   : > { %v941_v61 = vshrl.u32 %v1819_v41, 16 }
  0x36   : > { %1023 = vrot.lane.b32.xlu1 %v932_v47, %s2032_s28  ;;  %v1725_v47 = vld [vmem:[%s2067_s17 + $0x48] sm:$0xf]  ;;  %v444_v44 = vor.u32 %v443_v37, %v439_v36 }
  0x37   : > { %v1821_v49 = vcombine.low %v1725_v47, %v1741_v45  ;;  %v1805_v59 = vcombine.low %v1725_v47, %v1725_v47 }
  0x38   : > { %1021 = vrot.lane.b32.xlu0 %v925_v51, %s2032_s28  ;;  %v943_v51 = vshll.u32 %v1819_v41, 16  ;;  %v1711_v41 = vld [vmem:[%s2067_s17 + $0x54] sm:$0x1] }
  0x39   : > { %v957_v63 = vshll.u32 %v1821_v49, 16  ;;  %v955_v10 = vshrl.u32 %v1821_v49, 16  ;;  %v1713_v49 = vld [vmem:[%s2067_s17 + $0x64] sm:$0x1] }
  0x3a   : > { %483 = vrot.lane.b32.xlu1 %v402_v55, %s2029_s19  ;;  %v2183_v55 = vld [vmem:[%s2067_s17 + $0x48] sm:$0xf]  ;;  %v945_v62 = vrot.slane %v943_v51, 1  ;;  %v1697_v51 = vld [vmem:[%s2067_s17 + $0x60] sm:$0xf] }
  0x3b   : > { %v1793_v53 = vcombine.low %v1697_v51, %v1713_v49  ;;  %v2249_v49 = vld [vmem:[%s2067_s17 + $0x78] sm:$0xf] }
  0x3c   : > { %481 = vrot.lane.b32.xlu0 %v395_v58, %s2029_s19  ;;  %v207_v58 = vld [vmem:[%s2067_s17 + $0x44] sm:$0x1]  ;;  %v946_v12 = vor.u32 %v945_v62, %v941_v61  ;;  %v1777_v61 = vcombine.low %v1697_v51, %v1697_v51 }
  0x3d   : > { %v1758_v5 = vcombine.low %v2187_v57, %v207_v58  ;;  %v1774_v58 = vcombine.low %v1694_v46, %v1694_v46 }
  0x3e   : > { %487 = vrot.lane.b32.xlu1 %v416_v0, %s2029_s19  ;;  %v1759_v0 = vcombine.low %v2183_v55, %v208_v56 }
  0x3f   : > { %v420_v23 = vshll.u32 %v1758_v5, 16  ;;  %v418_v31 = vshrl.u32 %v1758_v5, 16 }
  0x40   : > { %485 = vrot.lane.b32.xlu0 %v409_v3, %s2029_s19  ;;  %v938_v3 = vrot.slane %v936_v54, 1  ;;  %v427_v15 = vshll.u32 %v1759_v0, 16  ;;  %v425_v26 = vshrl.u32 %v1759_v0, 16  ;;  %v1696_v54 = vld [vmem:[%s2067_s17 + $0x58] sm:$0xf]  ;;  %v713_v0 = vshll.u32 %v1793_v53, 16 }
  0x41   : > { %v422_v32 = vrot.slane %v420_v23, 1 }
  0x42   : > { %563 = vrot.lane.b32.xlu1 %v1771_v8, %s2028_s18  ;;  %v209_v8 = vld [vmem:[%s2067_s17 + $0x54] sm:$0x1]  ;;  %v429_v27 = vrot.slane %v427_v15, 1  ;;  %v1743_v15 = vld [vmem:[%s2067_s17 + $0x5c] sm:$0x1] }
  0x43   : > { %v1760_v24 = vcombine.low %v2199_v7, %v209_v8  ;;  %v423_v38 = vor.u32 %v422_v32, %v418_v31  ;;  %v711_v8 = vshrl.u32 %v1793_v53, 16 }
  0x44   : > { %561 = vrot.lane.b32.xlu0 %v1770_v13, %s2028_s18  ;;  %v959_v13 = vrot.slane %v957_v63, 1  ;;  %v430_v35 = vor.u32 %v429_v27, %v425_v26  ;;  %v1745_v27 = vld [vmem:[%s2067_s17 + $0x6c] sm:$0x1] }
  0x45   : > { %v432_v39 = vshrl.u32 %v1760_v24, 16 }
  0x46   : > { %567 = vrot.lane.b32.xlu1 %v1773_v20, %s2028_s18  ;;  %v939_v20 = vor.u32 %v938_v3, %v934_v2  ;;  %v1776_v2 = vcombine.low %v1696_v54, %v1696_v54 }
  0x48   : > { %565 = vrot.lane.b32.xlu0 %v1772_v25, %s2028_s18  ;;  %v960_v25 = vor.u32 %v959_v13, %v955_v10  ;;  %v715_v10 = vrot.slane %v713_v0, 1 }
  0x4a   : > { %755 = vrot.lane.b32.xlu1 %v674_v30, %s2030_s22  ;;  %v953_v30 = vor.u32 %v952_v21, %v948_v11  ;;  %v716_v21 = vor.u32 %v715_v10, %v711_v8 }
  0x4c   : > { %753 = vrot.lane.b32.xlu0 %v667_v33, %s2030_s22  ;;  %v434_v33 = vshll.u32 %v1760_v24, 16  ;;  %v1726_v24 = vld [vmem:[%s2067_s17 + $0x50] sm:$0xf] }
  0x4d   : > { %v1822_v26 = vcombine.low %v1726_v24, %v1742_v17  ;;  %v1806_v36 = vcombine.low %v1726_v24, %v1726_v24 }
  0x4e   : > { %759 = vrot.lane.b32.xlu1 %v688_v40, %s2030_s22  ;;  %v436_v40 = vrot.slane %v434_v33, 1  ;;  %v1728_v33 = vld [vmem:[%s2067_s17 + $0x60] sm:$0xf] }
  0x4f   : > { %v1824_v37 = vcombine.low %v1728_v33, %v1744_v29 }
  0x50   : > { %757 = vrot.lane.b32.xlu0 %v681_v43, %s2030_s22  ;;  %v1695_v43 = vld [vmem:[%s2067_s17 + $0x50] sm:$0xf]  ;;  %v437_v47 = vor.u32 %v436_v40, %v432_v39  ;;  %v2239_v39 = vld [vmem:[%s2067_s17 + $0x68] sm:$0xf]  ;;  %v212_v40 = vld [vmem:[%s2067_s17 + $0x6c] sm:$0x1] }
  0x51   : > { %v1791_v45 = vcombine.low %v1695_v43, %v1711_v41  ;;  %v2243_v41 = vld [vmem:[%s2067_s17 + $0x60] sm:$0xf] }
  0x52   : > { %835 = vrot.lane.b32.xlu1 %v1803_v48, %s2031_s25  ;;  %v1790_v48 = vcombine.low %v1694_v46, %v1710_v42  ;;  %v211_v42 = vld [vmem:[%s2067_s17 + $0x64] sm:$0x1] }
  0x53   : > { %v699_v56 = vshll.u32 %v1791_v45, 16  ;;  %v697_v62 = vshrl.u32 %v1791_v45, 16  ;;  %v1762_v53 = vcombine.low %v2243_v41, %v211_v42 }
  0x54   : > { %833 = vrot.lane.b32.xlu0 %v1802_v52, %s2031_s25  ;;  %v1775_v52 = vcombine.low %v1695_v43, %v1695_v43  ;;  %v690_v3 = vshrl.u32 %v1790_v48, 16 }
  0x55   : > { %v701_v63 = vrot.slane %v699_v56, 1  ;;  %v2255_v56 = vld [vmem:[%s2067_s17 + $0x70] sm:$0xf]  ;;  %v446_v17 = vshrl.u32 %v1762_v53, 16 }
  0x56   : > { %839 = vrot.lane.b32.xlu1 %v1805_v59, %s2031_s25  ;;  %v1792_v59 = vcombine.low %v1696_v54, %v1712_v50  ;;  %v962_v50 = vshrl.u32 %v1822_v26, 16  ;;  %v214_v54 = vld [vmem:[%s2067_s17 + $0x7c] sm:$0x1] }
  0x57   : > { %v702_v6 = vor.u32 %v701_v63, %v697_v62  ;;  %v1765_v0 = vcombine.low %v2249_v49, %v214_v54 }
  0x58   : > { %837 = vrot.lane.b32.xlu0 %v1804_v60, %s2031_s25  ;;  %v692_v60 = vshll.u32 %v1790_v48, 16  ;;  %v706_v5 = vshll.u32 %v1792_v59, 16  ;;  %v1763_v48 = vcombine.low %v2239_v39, %v212_v40 }
  0x59   : > { %v467_v24 = vshrl.u32 %v1765_v0, 16 }
  0x5a   : > { %1027 = vrot.lane.b32.xlu1 %v946_v12, %s2032_s28  ;;  %v694_v4 = vrot.slane %v692_v60, 1  ;;  %v704_v12 = vshrl.u32 %v1792_v59, 16  ;;  %v708_v13 = vrot.slane %v706_v5, 1  ;;  %v976_v60 = vshrl.u32 %v1824_v37, 16 }
  0x5b   : > { %v455_v63 = vshll.u32 %v1763_v48, 16  ;;  %v453_v8 = vshrl.u32 %v1763_v48, 16 }
  0x5c   : > { %1025 = vrot.lane.b32.xlu0 %v939_v20, %s2032_s28  ;;  %v695_v11 = vor.u32 %v694_v4, %v690_v3  ;;  %v1727_v20 = vld [vmem:[%s2067_s17 + $0x58] sm:$0xf]  ;;  %v448_v4 = vshll.u32 %v1762_v53, 16 }
  0x5d   : > { %v1823_v23 = vcombine.low %v1727_v20, %v1743_v15  ;;  %v1807_v31 = vcombine.low %v1727_v20, %v1727_v20  ;;  %v457_v10 = vrot.slane %v455_v63, 1 }
  0x5e   : > { %1031 = vrot.lane.b32.xlu1 %v960_v25, %s2032_s28  ;;  %v709_v25 = vor.u32 %v708_v13, %v704_v12  ;;  %v450_v20 = vrot.slane %v448_v4, 1 }
  0x5f   : > { %v969_v45 = vshrl.u32 %v1823_v23, 16 }
  0x60   : > { %1029 = vrot.lane.b32.xlu0 %v953_v30, %s2032_s28  ;;  %v1729_v30 = vld [vmem:[%s2067_s17 + $0x68] sm:$0xf]  ;;  %v451_v29 = vor.u32 %v450_v20, %v446_v17 }
  0x61   : > { %v1825_v32 = vcombine.low %v1729_v30, %v1745_v27  ;;  %v1809_v43 = vcombine.low %v1729_v30, %v1729_v30 }
  0x62   : > { %491 = vrot.lane.b32.xlu1 %v430_v35, %s2029_s19  ;;  %v971_v35 = vshll.u32 %v1823_v23, 16  ;;  %v458_v23 = vor.u32 %v457_v10, %v453_v8 }
  0x63   : > { %v983_v59 = vshrl.u32 %v1825_v32, 16 }
  0x64   : > { %489 = vrot.lane.b32.xlu0 %v423_v38, %s2029_s19  ;;  %v964_v38 = vshll.u32 %v1822_v26, 16  ;;  %v973_v46 = vrot.slane %v971_v35, 1  ;;  %v1699_v35 = vld [vmem:[%s2067_s17 + $0x70] sm:$0xf] }
  0x65   : > { %v1779_v48 = vcombine.low %v1699_v35, %v1699_v35 }
  0x66   : > { %495 = vrot.lane.b32.xlu1 %v444_v44, %s2029_s19  ;;  %v1808_v44 = vcombine.low %v1728_v33, %v1728_v33  ;;  %v966_v51 = vrot.slane %v964_v38, 1  ;;  %v1714_v33 = vld [vmem:[%s2067_s17 + $0x6c] sm:$0x1]  ;;  %v1698_v38 = vld [vmem:[%s2067_s17 + $0x68] sm:$0xf] }
  0x67   : > { %v1794_v42 = vcombine.low %v1698_v38, %v1714_v33  ;;  %v1778_v53 = vcombine.low %v1698_v38, %v1698_v38  ;;  %v1730_v33 = vld [vmem:[%s2067_s17 + $0x70] sm:$0xf]  ;;  %v1748_v38 = vld [vmem:[%s2067_s17 + $0x84] sm:$0x1] }
  0x68   : > { %493 = vrot.lane.b32.xlu0 %v437_v47, %s2029_s19  ;;  %v985_v47 = vshll.u32 %v1825_v32, 16  ;;  %v1715_v32 = vld [vmem:[%s2067_s17 + $0x74] sm:$0x1] }
  0x6a   : > { %571 = vrot.lane.b32.xlu1 %v1775_v52, %s2028_s18  ;;  %v978_v52 = vshll.u32 %v1824_v37, 16  ;;  %v987_v62 = vrot.slane %v985_v47, 1  ;;  %v1795_v37 = vcombine.low %v1699_v35, %v1715_v32  ;;  %v1701_v47 = vld [vmem:[%s2067_s17 + $0x80] sm:$0xf]  ;;  %v1749_v35 = vld [vmem:[%s2067_s17 + $0x8c] sm:$0x1] }
  0x6c   : > { %569 = vrot.lane.b32.xlu0 %v1774_v58, %s2028_s18  ;;  %v213_v58 = vld [vmem:[%s2067_s17 + $0x74] sm:$0x1]  ;;  %v980_v3 = vrot.slane %v978_v52, 1  ;;  %v727_v52 = vshll.u32 %v1795_v37, 16 }
  0x6d   : > { %v1764_v5 = vcombine.low %v2255_v56, %v213_v58  ;;  %v720_v58 = vshll.u32 %v1794_v42, 16 }
  0x6e   : > { %575 = vrot.lane.b32.xlu1 %v1777_v61, %s2028_s18  ;;  %v974_v61 = vor.u32 %v973_v46, %v969_v45  ;;  %v981_v15 = vor.u32 %v980_v3, %v976_v60  ;;  %v1716_v45 = vld [vmem:[%s2067_s17 + $0x7c] sm:$0x1]  ;;  %v729_v63 = vrot.slane %v727_v52, 1  ;;  %v718_v3 = vshrl.u32 %v1794_v42, 16  ;;  %v1733_v42 = vld [vmem:[%s2067_s17 + $0x88] sm:$0xf] }
  0x6f   : > { %v460_v30 = vshrl.u32 %v1764_v5, 16  ;;  %v722_v4 = vrot.slane %v720_v58, 1 }
  0x70   : > { %573 = vrot.lane.b32.xlu0 %v1776_v2, %s2028_s18  ;;  %v967_v2 = vor.u32 %v966_v51, %v962_v50  ;;  %v1700_v51 = vld [vmem:[%s2067_s17 + $0x78] sm:$0xf] }
  0x71   : > { %v1796_v54 = vcombine.low %v1700_v51, %v1716_v45  ;;  %v723_v17 = vor.u32 %v722_v4, %v718_v3  ;;  %v1829_v45 = vcombine.low %v1733_v42, %v1749_v35 }
  0x72   : > { %763 = vrot.lane.b32.xlu1 %v702_v6, %s2030_s22  ;;  %v988_v6 = vor.u32 %v987_v62, %v983_v59  ;;  %v725_v62 = vshrl.u32 %v1795_v37, 16 }
  0x73   : > { %v732_v20 = vshrl.u32 %v1796_v54, 16  ;;  %v1013_v3 = vshll.u32 %v1829_v45, 16 }
  0x74   : > { %761 = vrot.lane.b32.xlu0 %v695_v11, %s2030_s22  ;;  %v469_v11 = vshll.u32 %v1765_v0, 16  ;;  %v730_v10 = vor.u32 %v729_v63, %v725_v62  ;;  %v1813_v62 = vcombine.low %v1733_v42, %v1733_v42 }
  0x76   : > { %767 = vrot.lane.b32.xlu1 %v716_v21, %s2030_s22  ;;  %v462_v21 = vshll.u32 %v1764_v5, 16  ;;  %v734_v5 = vshll.u32 %v1796_v54, 16 }
  0x78   : > { %765 = vrot.lane.b32.xlu0 %v709_v25, %s2030_s22  ;;  %v471_v25 = vrot.slane %v469_v11, 1 }
  0x7a   : > { %843 = vrot.lane.b32.xlu1 %v1807_v31, %s2031_s25  ;;  %v464_v31 = vrot.slane %v462_v21, 1  ;;  %v736_v21 = vrot.slane %v734_v5, 1 }
  0x7c   : > { %841 = vrot.lane.b32.xlu0 %v1806_v36, %s2031_s25  ;;  %v472_v36 = vor.u32 %v471_v25, %v467_v24  ;;  %v465_v40 = vor.u32 %v464_v31, %v460_v30  ;;  %v1746_v25 = vld [vmem:[%s2067_s17 + $0x74] sm:$0x1]  ;;  %v1731_v30 = vld [vmem:[%s2067_s17 + $0x78] sm:$0xf] }
  0x7d   : > { %v1826_v37 = vcombine.low %v1730_v33, %v1746_v25 }
  0x7e   : > { %847 = vrot.lane.b32.xlu1 %v1809_v43, %s2031_s25  ;;  %v1717_v43 = vld [vmem:[%s2067_s17 + $0x84] sm:$0x1] }
  0x7f   : > { %v1797_v50 = vcombine.low %v1701_v47, %v1717_v43  ;;  %v992_v54 = vshll.u32 %v1826_v37, 16  ;;  %v990_v4 = vshrl.u32 %v1826_v37, 16 }
  0x80   : > { %845 = vrot.lane.b32.xlu0 %v1808_v44, %s2031_s25 }
  0x81   : > { %v741_v0 = vshll.u32 %v1797_v50, 16  ;;  %v739_v11 = vshrl.u32 %v1797_v50, 16 }
  0x82   : > { %1035 = vrot.lane.b32.xlu1 %v974_v61, %s2032_s28  ;;  %v1781_v61 = vcombine.low %v1701_v47, %v1701_v47  ;;  %v1732_v47 = vld [vmem:[%s2067_s17 + $0x80] sm:$0xf] }
  0x83   : > { %v1828_v50 = vcombine.low %v1732_v47, %v1748_v38 }
  0x84   : > { %1033 = vrot.lane.b32.xlu0 %v967_v2, %s2032_s28  ;;  %v2264_v12 = vpop.permute.xlu1 %555  ;;  %v2266_v13 = vpop.permute.xlu0 %553  ;;  %v1780_v2 = vcombine.low %v1700_v51, %v1700_v51 }
  0x85   : > { %v1006_v5 = vshll.u32 %v1828_v50, 16 }
  0x86   : > { %1039 = vrot.lane.b32.xlu1 %v988_v6, %s2032_s28 }
  0x88   : > { %1037 = vrot.lane.b32.xlu0 %v981_v15, %s2032_s28  ;;  %v2270_v26 = vpop.permute.xlu1 %559  ;;  %v2272_v27 = vpop.permute.xlu0 %557  ;;  %v743_v15 = vrot.slane %v741_v0, 1  ;;  %v1812_v0 = vcombine.low %v1732_v47, %v1732_v47 }
  0x8a   : > { %499 = vrot.lane.b32.xlu1 %v458_v23, %s2029_s19  ;;  %v1747_v23 = vld [vmem:[%s2067_s17 + $0x7c] sm:$0x1]  ;;  %v744_v31 = vor.u32 %v743_v15, %v739_v11  ;;  %v994_v11 = vrot.slane %v992_v54, 1 }
  0x8b   : > { %v1827_v32 = vcombine.low %v1731_v30, %v1747_v23  ;;  %v1015_v23 = vrot.slane %v1013_v3, 1 }
  0x8c   : > { %497 = vrot.lane.b32.xlu0 %v451_v29, %s2029_s19  ;;  %v2281_v44 = vpop.permute.xlu1 %477 }
  0x8d   : > { %v999_v51 = vshll.u32 %v1827_v32, 16 }
  0x8e   : > { %v2284_v46 = vpop.permute.xlu0 %473  ;;  %503 = vrot.lane.b32.xlu1 %v472_v36, %s2029_s19  ;;  %v737_v36 = vor.u32 %v736_v21, %v732_v20  ;;  %v1011_v21 = vshrl.u32 %v1829_v45, 16 }
  0x8f   : > { %v1052_v58 = vsel %vm1049_vm0, %v2083_v14, %v2284_v46 }
  0x90   : > { %501 = vrot.lane.b32.xlu0 %v465_v40, %s2029_s19  ;;  %v2290_v59 = vpop.permute.xlu1 %479 }
  0x91   : > { %v1061_v14 = vsel %vm1049_vm0, %v2089_v18, %v2290_v59 }
  0x92   : > { %v476_v60 = vpop.permute.xlu0 %475  ;;  %579 = vrot.lane.b32.xlu1 %v1779_v48, %s2028_s18  ;;  %v1811_v48 = vcombine.low %v1731_v30, %v1731_v30  ;;  %v1106_v25 = vsel %vm1098_vm1, %v1061_v14, %v2270_v26 }
  0x93   : > { %v1055_v52 = vsel %vm1049_vm0, %v2094_v22, %v476_v60  ;;  %v1001_v60 = vrot.slane %v999_v51, 1 }
  0x94   : > { %577 = vrot.lane.b32.xlu0 %v1778_v53, %s2028_s18  ;;  %v748_v6 = vpop.permute.xlu1 %747  ;;  %v1810_v53 = vcombine.low %v1730_v33, %v1730_v33  ;;  %v1102_v22 = vsel %vm1098_vm1, %v1055_v52, %v2264_v12  ;;  %v1058_v12 = vsel %vm1049_vm0, %v2077_v9, %v2281_v44  ;;  %v1008_v44 = vrot.slane %v1006_v5, 1 }
  0x95   : > { %v1135_v46 = vsel %vm1131_vm2, %v1102_v22, %v748_v6  ;;  %v995_v33 = vor.u32 %v994_v11, %v990_v4 }
  0x96   : > { %v746_v8 = vpop.permute.xlu0 %745  ;;  %583 = vrot.lane.b32.xlu1 %v1781_v61, %s2028_s18 }
  0x98   : > { %581 = vrot.lane.b32.xlu0 %v1780_v2, %s2028_s18  ;;  %v2297_v24 = vpop.permute.xlu1 %751  ;;  %v997_v2 = vshrl.u32 %v1827_v32, 16 }
  0x9a   : > { %v2300_v29 = vpop.permute.xlu0 %749  ;;  %771 = vrot.lane.b32.xlu1 %v730_v10, %s2030_s22  ;;  %v1100_v10 = vsel %vm1098_vm1, %v1052_v58, %v2266_v13  ;;  %v1004_v13 = vshrl.u32 %v1828_v50, 16  ;;  %v1002_v9 = vor.u32 %v1001_v60, %v997_v2 }
  0x9b   : > { %v1133_v15 = vsel %vm1131_vm2, %v1100_v10, %v746_v8  ;;  %v1139_v8 = vsel %vm1131_vm2, %v1106_v25, %v2297_v24 }
  0x9c   : > { %769 = vrot.lane.b32.xlu0 %v723_v17, %s2030_s22  ;;  %v828_v40 = vpop.permute.xlu1 %827 }
  0x9d   : > { %v1168_v17 = vsel %vm1164_vm3, %v1135_v46, %v828_v40 }
  0x9e   : > { %v826_v43 = vpop.permute.xlu0 %825  ;;  %775 = vrot.lane.b32.xlu1 %v744_v31, %s2030_s22  ;;  %v1104_v31 = vsel %vm1098_vm1, %v1058_v12, %v2272_v27  ;;  %v1016_v27 = vor.u32 %v1015_v23, %v1011_v21 }
  0x9f   : > { %v1166_v18 = vsel %vm1164_vm3, %v1133_v15, %v826_v43  ;;  %v1137_v35 = vsel %vm1131_vm2, %v1104_v31, %v2300_v29  ;;  %v1009_v43 = vor.u32 %v1008_v44, %v1004_v13 }
  0xa0   : > { %773 = vrot.lane.b32.xlu0 %v737_v36, %s2030_s22  ;;  %v832_v61 = vpop.permute.xlu1 %831 }
  0xa1   : > { %v1172_v26 = vsel %vm1164_vm3, %v1139_v8, %v832_v61 }
  0xa2   : > { %v830_v63 = vpop.permute.xlu0 %829  ;;  %851 = vrot.lane.b32.xlu1 %v1811_v48, %s2031_s25 }
  0xa3   : > { %v1170_v37 = vsel %vm1164_vm3, %v1137_v35, %v830_v63 }
  0xa4   : > { %849 = vrot.lane.b32.xlu0 %v1810_v53, %s2031_s25  ;;  %v1020_v20 = vpop.permute.xlu1 %1019 }
  0xa5   : > { %v1201_v59 = vsel %vm1197_vm4, %v1168_v17, %v1020_v20 }
  0xa6   : > { %v1018_v6 = vpop.permute.xlu0 %1017  ;;  %855 = vrot.lane.b32.xlu1 %v1813_v62, %s2031_s25 }
  0xa7   : > { %v1199_v30 = vsel %vm1197_vm4, %v1166_v18, %v1018_v6 }
  0xa8   : > { %853 = vrot.lane.b32.xlu0 %v1812_v0, %s2031_s25  ;;  %v1830_v32 = vcombine.low %v1199_v30, %v1201_v59  ;;  %v1024_v36 = vpop.permute.xlu1 %1023 }
  0xa9   : > { %v1205_v38 = vsel %vm1197_vm4, %v1172_v26, %v1024_v36 }
  0xaa   : > { %1901 = vmatprep.mubr.msk.bf16.mxu0 %vm1294_vm5, %v1830_v32  ;;  %v1022_v24 = vpop.permute.xlu0 %1021  ;;  %1043 = vrot.lane.b32.xlu1 %v1002_v9, %s2032_s28 }
  0xab   : > { %v1203_v40 = vsel %vm1197_vm4, %v1170_v37, %v1022_v24 }
  0xac   : > { %v1831_v42 = vcombine.low %v1203_v40, %v1205_v38  ;;  %1041 = vrot.lane.b32.xlu0 %v995_v33, %s2032_s28  ;;  %v484_v29 = vpop.permute.xlu1 %483 }
  0xad   : > { %v1067_v3 = vsel %vm1049_vm0, %v2124_v16, %v484_v29 }
  0xae   : > { %1902 = vmatmul.mubr.msk.bf16.vlgmr.msra.gmra.mxu0 %vm1294_vm5, %v1831_v42  ;;  %v482_v45 = vpop.permute.xlu0 %481  ;;  %1047 = vrot.lane.b32.xlu1 %v1016_v27, %s2032_s28 }
  0xaf   : > { %v1064_v60 = vsel %vm1049_vm0, %v2128_v19, %v482_v45 }
  0xb0   : > { %1045 = vrot.lane.b32.xlu0 %v1009_v43, %s2032_s28  ;;  %v488_v47 = vpop.permute.xlu1 %487 }
  0xb1   : > { %v1073_v12 = vsel %vm1049_vm0, %v2134_v28, %v488_v47 }
  0xb2   : > { %v486_v48 = vpop.permute.xlu0 %485 }
  0xb3   : > { %v1070_v19 = vsel %vm1049_vm0, %v2140_v34, %v486_v48 }
  0xb4   : > { %v564_v50 = vpop.permute.xlu1 %563 }
  0xb5   : > { %v1110_v4 = vsel %vm1098_vm1, %v1067_v3, %v564_v50 }
  0xb6   : > { %v562_v51 = vpop.permute.xlu0 %561 }
  0xb7   : > { %v1108_v5 = vsel %vm1098_vm1, %v1064_v60, %v562_v51 }
  0xb8   : > { %v568_v52 = vpop.permute.xlu1 %567 }
  0xb9   : > { %v1114_v20 = vsel %vm1098_vm1, %v1073_v12, %v568_v52 }
  0xba   : > { %v566_v53 = vpop.permute.xlu0 %565 }
  0xbb   : > { %v1112_v18 = vsel %vm1098_vm1, %v1070_v19, %v566_v53 }
  0xbc   : > { %v756_v54 = vpop.permute.xlu1 %755 }
  0xbd   : > { %v1143_v14 = vsel %vm1131_vm2, %v1110_v4, %v756_v54 }
  0xbe   : > { %v754_v58 = vpop.permute.xlu0 %753 }
  0xbf   : > { %v1141_v46 = vsel %vm1131_vm2, %v1108_v5, %v754_v58 }
  0xc0   : > { %v760_v61 = vpop.permute.xlu1 %759 }
  0xc1   : > { %v1147_v59 = vsel %vm1131_vm2, %v1114_v20, %v760_v61 }
  0xc2   : > { %v758_v62 = vpop.permute.xlu0 %757 }
  0xc3   : > { %v1145_v23 = vsel %vm1131_vm2, %v1112_v18, %v758_v62 }
  0xc4   : > { %v836_v63 = vpop.permute.xlu1 %835 }
  0xc5   : > { %v1176_v10 = vsel %vm1164_vm3, %v1143_v14, %v836_v63 }
  0xc6   : > { %v834_v0 = vpop.permute.xlu0 %833 }
  0xc7   : > { %v1174_v16 = vsel %vm1164_vm3, %v1141_v46, %v834_v0 }
  0xc8   : > { %v840_v2 = vpop.permute.xlu1 %839 }
  0xc9   : > { %v1180_v28 = vsel %vm1164_vm3, %v1147_v59, %v840_v2 }
  0xca   : > { %v838_v22 = vpop.permute.xlu0 %837 }
  0xcb   : > { %v1178_v25 = vsel %vm1164_vm3, %v1145_v23, %v838_v22 }
  0xcc   : > { %v1028_v11 = vpop.permute.xlu1 %1027 }
  0xcd   : > { %v1209_v15 = vsel %vm1197_vm4, %v1176_v10, %v1028_v11 }
  0xce   : > { %v1026_v17 = vpop.permute.xlu0 %1025 }
  0xcf   : > { %v1207_v21 = vsel %vm1197_vm4, %v1174_v16, %v1026_v17 }
  0xd0   : > { %v1832_v6 = vcombine.low %v1207_v21, %v1209_v15  ;;  %v1032_v13 = vpop.permute.xlu1 %1031 }
  0xd1   : > { %v1213_v30 = vsel %vm1197_vm4, %v1180_v28, %v1032_v13 }
  0xd2   : > { %1905 = vmatprep.mubr.msk.bf16.mxu0 %vm1294_vm5, %v1832_v6  ;;  %v1030_v34 = vpop.permute.xlu0 %1029 }
  0xd3   : > { %v1211_v9 = vsel %vm1197_vm4, %v1178_v25, %v1030_v34 }
  0xd4   : > { %v1833_v44 = vcombine.low %v1211_v9, %v1213_v30  ;;  %v492_v8 = vpop.permute.xlu1 %491 }
  0xd5   : > { %v1079_v45 = vsel %vm1049_vm0, %v2183_v55, %v492_v8 }
  0xd6   : > { %1906 = vmatmul.mubr.msk.bf16.gmra.mxu0 %vm1294_vm5, %v1833_v44  ;;  %v490_v31 = vpop.permute.xlu0 %489 }
  0xd7   : > { %v1076_v48 = vsel %vm1049_vm0, %v2187_v57, %v490_v31 }
  0xd8   : > { %v496_v32 = vpop.permute.xlu1 %495 }
  0xd9   : > { %v1085_v61 = vsel %vm1049_vm0, %v2193_v1, %v496_v32 }
  0xda   : > { %v494_v33 = vpop.permute.xlu0 %493 }
  0xdb   : > { %v1082_v57 = vsel %vm1049_vm0, %v2199_v7, %v494_v33 }
  0xdc   : > { %v572_v35 = vpop.permute.xlu1 %571 }
  0xdd   : > { %v1118_v50 = vsel %vm1098_vm1, %v1079_v45, %v572_v35 }
  0xde   : > { %v570_v26 = vpop.permute.xlu0 %569 }
  0xdf   : > { %v1116_v51 = vsel %vm1098_vm1, %v1076_v48, %v570_v26 }
  0xe0   : > { %v576_v36 = vpop.permute.xlu1 %575 }
  0xe1   : > { %v1122_v0 = vsel %vm1098_vm1, %v1085_v61, %v576_v36 }
  0xe2   : > { %v574_v37 = vpop.permute.xlu0 %573 }
  0xe3   : > { %v1120_v3 = vsel %vm1098_vm1, %v1082_v57, %v574_v37 }
  0xe4   : > { %v764_v38 = vpop.permute.xlu1 %763 }
  0xe5   : > { %v1151_v52 = vsel %vm1131_vm2, %v1118_v50, %v764_v38 }
  0xe6   : > { %v762_v24 = vpop.permute.xlu0 %761 }
  0xe7   : > { %v1149_v53 = vsel %vm1131_vm2, %v1116_v51, %v762_v24 }
  0xe8   : > { %v768_v40 = vpop.permute.xlu1 %767 }
  0xe9   : > { %v1155_v22 = vsel %vm1131_vm2, %v1122_v0, %v768_v40 }
  0xea   : > { %v766_v27 = vpop.permute.xlu0 %765 }
  0xeb   : > { %v1153_v4 = vsel %vm1131_vm2, %v1120_v3, %v766_v27 }
  0xec   : > { %v844_v42 = vpop.permute.xlu1 %843 }
  0xed   : > { %v1184_v54 = vsel %vm1164_vm3, %v1151_v52, %v844_v42 }
  0xee   : > { %v842_v43 = vpop.permute.xlu0 %841 }
  0xef   : > { %v1182_v55 = vsel %vm1164_vm3, %v1149_v53, %v842_v43 }
  0xf0   : > { %v848_v29 = vpop.permute.xlu1 %847 }
  0xf1   : > { %v1188_v1 = vsel %vm1164_vm3, %v1155_v22, %v848_v29 }
  0xf2   : > { %v846_v47 = vpop.permute.xlu0 %845 }
  0xf3   : > { %v1186_v14 = vsel %vm1164_vm3, %v1153_v4, %v846_v47 }
  0xf4   : > { %v1036_v58 = vpop.permute.xlu1 %1035 }
  0xf5   : > { %v1217_v62 = vsel %vm1197_vm4, %v1184_v54, %v1036_v58 }
  0xf6   : > { %v1034_v63 = vpop.permute.xlu0 %1033 }
  0xf7   : > { %v1215_v2 = vsel %vm1197_vm4, %v1182_v55, %v1034_v63 }
  0xf8   : > { %v1834_v60 = vcombine.low %v1215_v2, %v1217_v62  ;;  %v1040_v5 = vpop.permute.xlu1 %1039 }
  0xf9   : > { %v1221_v46 = vsel %vm1197_vm4, %v1188_v1, %v1040_v5 }
  0xfa   : > { %1909 = vmatprep.mubr.msk.bf16.mxu1 %vm1294_vm5, %v1834_v60  ;;  %v1038_v7 = vpop.permute.xlu0 %1037 }
  0xfb   : > { %v1219_v10 = vsel %vm1197_vm4, %v1186_v14, %v1038_v7 }
  0xfc   : > { %v1835_v11 = vcombine.low %v1219_v10, %v1221_v46  ;;  %v500_v12 = vpop.permute.xlu1 %499 }
  0xfd   : > { %v1091_v34 = vsel %vm1049_vm0, %v2239_v39, %v500_v12 }
  0xfe   : > { %1910 = vmatmul.mubr.msk.bf16.vlgmr.msra.gmra.mxu1 %vm1294_vm5, %v1835_v11  ;;  %v498_v16 = vpop.permute.xlu0 %497 }
  0xff   : > { %v1088_v44 = vsel %vm1049_vm0, %v2243_v41, %v498_v16 }
 0x100   : > { %v504_v15 = vpop.permute.xlu1 %503 }
 0x101   : > { %v1097_v36 = vsel %vm1049_vm0, %v2249_v49, %v504_v15 }
 0x102   : > { %v502_v17 = vpop.permute.xlu0 %501 }
 0x103   : > { %v1094_v41 = vsel %vm1049_vm0, %v2255_v56, %v502_v17 }
 0x104   : > { %v580_v19 = vpop.permute.xlu1 %579 }
 0x105   : > { %v1126_v8 = vsel %vm1098_vm1, %v1091_v34, %v580_v19 }
 0x106   : > { %v578_v20 = vpop.permute.xlu0 %577 }
 0x107   : > { %v1124_v31 = vsel %vm1098_vm1, %v1088_v44, %v578_v20 }
 0x108   : > { %v584_v21 = vpop.permute.xlu1 %583 }
 0x109   : > { %v1130_v24 = vsel %vm1098_vm1, %v1097_v36, %v584_v21 }
 0x10a   : > { %v582_v18 = vpop.permute.xlu0 %581 }
 0x10b   : > { %v1128_v27 = vsel %vm1098_vm1, %v1094_v41, %v582_v18 }
 0x10c   : > { %v772_v59 = vpop.permute.xlu1 %771 }
 0x10d   : > { %v1159_v32 = vsel %vm1131_vm2, %v1126_v8, %v772_v59 }
 0x10e   : > { %v770_v6 = vpop.permute.xlu0 %769 }
 0x10f   : > { %v1157_v33 = vsel %vm1131_vm2, %v1124_v31, %v770_v6 }
 0x110   : > { %v776_v23 = vpop.permute.xlu1 %775 }
 0x111   : > { %v1163_v42 = vsel %vm1131_vm2, %v1130_v24, %v776_v23 }
 0x112   : > { %v774_v28 = vpop.permute.xlu0 %773 }
 0x113   : > { %v1161_v49 = vsel %vm1131_vm2, %v1128_v27, %v774_v28 }
 0x114   : > { %v852_v13 = vpop.permute.xlu1 %851 }
 0x115   : > { %v1192_v35 = vsel %vm1164_vm3, %v1159_v32, %v852_v13 }
 0x116   : > { %v850_v25 = vpop.permute.xlu0 %849 }
 0x117   : > { %v1190_v39 = vsel %vm1164_vm3, %v1157_v33, %v850_v25 }
 0x118   : > { %v856_v30 = vpop.permute.xlu1 %855 }
 0x119   : > { %v1196_v29 = vsel %vm1164_vm3, %v1163_v42, %v856_v30 }
 0x11a   : > { %v854_v9 = vpop.permute.xlu0 %853 }
 0x11b   : > { %v1194_v47 = vsel %vm1164_vm3, %v1161_v49, %v854_v9 }
 0x11c   : > { %v1044_v26 = vpop.permute.xlu1 %1043 }
 0x11d   : > { %v1225_v37 = vsel %vm1197_vm4, %v1192_v35, %v1044_v26 }
 0x11e   : > { %v1042_v38 = vpop.permute.xlu0 %1041 }
 0x11f   : > { %v1223_v40 = vsel %vm1197_vm4, %v1190_v39, %v1042_v38 }
 0x120   : > { %v1836_v43 = vcombine.low %v1223_v40, %v1225_v37  ;;  %v1048_v45 = vpop.permute.xlu1 %1047 }
 0x121   : > { %v1229_v48 = vsel %vm1197_vm4, %v1196_v29, %v1048_v45 }
 0x122   : > { %1913 = vmatprep.mubr.msk.bf16.mxu1 %vm1294_vm5, %v1836_v43  ;;  %v1046_v56 = vpop.permute.xlu0 %1045 }
 0x123   : > { %v1227_v50 = vsel %vm1197_vm4, %v1194_v47, %v1046_v56 }
 0x124   : > { %v1837_v51 = vcombine.low %v1227_v50, %v1229_v48 }
 0x126   : > { %1914 = vmatmul.mubr.msk.bf16.gmra.mxu1 %vm1294_vm5, %v1837_v51 }
 0x16e   : > { %v1903_v52 = vpop.f32.mrf.mxu0 }
 0x16f   : > { %v1870_v53 = vpack.c.bf16 %v1903_v52, %v1903_v52  ;;  %v1455_v63 = vmul.f32 %v1903_v52, %v1903_v52  ;;  %v1419_v4 = vsel %vm1098_vm1, %v1903_v52, 0.0 }
 0x170   : > { %v1353_v54 = vpop.f32.mrf.mxu0 }
 0x171   : > { %1577 = vst.msk [vmem:[%s2437_s5 + $0x8] sm:$0xf] %vm1574_vm6, %v1870_v53  ;;  %v1868_v58 = vpack.c.bf16 %v1353_v54, %v1353_v54  ;;  %v1453_v55 = vmul.f32 %v1353_v54, %v1353_v54  ;;  %v1416_v0 = vsel %vm1098_vm1, %v1353_v54, 0.0  ;;  %v1472_v10 = vsel %vm1098_vm1, %v1455_v63, 0.0 }
 0x172   : > { %v1904_v61 = vpop.f32.mrf.mxu0 }
 0x173   : > { %1575 = vst.msk [vmem:[%s2437_s5] sm:$0xf] %vm1574_vm6, %v1868_v58  ;;  %v1871_v62 = vpack.c.bf16 %v1904_v61, %v1904_v61  ;;  %v1469_v1 = vsel %vm1098_vm1, %v1453_v55, 0.0  ;;  %v1456_v5 = vmul.f32 %v1904_v61, %v1904_v61  ;;  %v1421_v11 = vsel %vm1098_vm1, %v1904_v61, 0.0 }
 0x174   : > { %v1356_v57 = vpop.f32.mrf.mxu0 }
 0x175   : > { %1578 = vst.msk [vmem:[%s2437_s5 + $0xc] sm:$0xf] %vm1574_vm6, %v1871_v62  ;;  %v1417_v2 = vsel %vm1098_vm1, %v1356_v57, 0.0  ;;  %v1454_v3 = vmul.f32 %v1356_v57, %v1356_v57  ;;  %v1869_v22 = vpack.c.bf16 %v1356_v57, %v1356_v57  ;;  %v1474_v15 = vsel %vm1098_vm1, %v1456_v5, 0.0 }
 0x176   : > { %v1418_v60 = vadd.f32 %v1417_v2, %v1416_v0 }
 0x177   : > { %v1470_v14 = vsel %vm1098_vm1, %v1454_v3, 0.0  ;;  %1576 = vst.msk [vmem:[%s2437_s5 + $0x4] sm:$0xf] %vm1574_vm6, %v1869_v22 }
 0x178   : > { %v1420_v46 = vadd.f32 %v1419_v4, %v1418_v60  ;;  %v1471_v7 = vadd.f32 %v1470_v14, %v1469_v1 }
 0x17a   : > { %v1473_v12 = vadd.f32 %v1472_v10, %v1471_v7  ;;  %v1422_v16 = vadd.f32 %v1421_v11, %v1420_v46 }
 0x17c   : > { %v1475_v17 = vadd.f32 %v1474_v15, %v1473_v12 }
 0x196   : > { %v1907_v19 = vpop.f32.mrf.mxu0 }
 0x197   : > { %v1874_v20 = vpack.c.bf16 %v1907_v19, %v1907_v19  ;;  %v1459_v9 = vmul.f32 %v1907_v19, %v1907_v19  ;;  %v1427_v33 = vsel %vm1098_vm1, %v1907_v19, 0.0 }
 0x198   : > { %v1369_v21 = vpop.f32.mrf.mxu0 }
 0x199   : > { %1581 = vst.msk [vmem:[%s2437_s5 + $0x18] sm:$0xf] %vm1574_vm6, %v1874_v20  ;;  %v1423_v18 = vsel %vm1098_vm1, %v1369_v21, 0.0  ;;  %v1457_v59 = vmul.f32 %v1369_v21, %v1369_v21  ;;  %v1872_v6 = vpack.c.bf16 %v1369_v21, %v1369_v21  ;;  %v1480_v37 = vsel %vm1098_vm1, %v1459_v9, 0.0 }
 0x19a   : > { %v1424_v23 = vadd.f32 %v1423_v18, %v1422_v16  ;;  %v1908_v28 = vpop.f32.mrf.mxu0 }
 0x19b   : > { %v1476_v13 = vsel %vm1098_vm1, %v1457_v59, 0.0  ;;  %1579 = vst.msk [vmem:[%s2437_s5 + $0x10] sm:$0xf] %vm1574_vm6, %v1872_v6  ;;  %v1875_v25 = vpack.c.bf16 %v1908_v28, %v1908_v28  ;;  %v1460_v35 = vmul.f32 %v1908_v28, %v1908_v28  ;;  %v1429_v38 = vsel %vm1098_vm1, %v1908_v28, 0.0 }
 0x19c   : > { %v1477_v30 = vadd.f32 %v1476_v13, %v1475_v17  ;;  %v1372_v34 = vpop.f32.mrf.mxu0 }
 0x19d   : > { %1582 = vst.msk [vmem:[%s2437_s5 + $0x1c] sm:$0xf] %vm1574_vm6, %v1875_v25  ;;  %v1425_v44 = vsel %vm1098_vm1, %v1372_v34, 0.0  ;;  %v1458_v8 = vmul.f32 %v1372_v34, %v1372_v34  ;;  %v1873_v31 = vpack.c.bf16 %v1372_v34, %v1372_v34  ;;  %v1482_v40 = vsel %vm1098_vm1, %v1460_v35, 0.0 }
 0x19e   : > { %v1426_v32 = vadd.f32 %v1425_v44, %v1424_v23 }
 0x19f   : > { %v1478_v26 = vsel %vm1098_vm1, %v1458_v8, 0.0  ;;  %1580 = vst.msk [vmem:[%s2437_s5 + $0x14] sm:$0xf] %vm1574_vm6, %v1873_v31 }
 0x1a0   : > { %v1428_v36 = vadd.f32 %v1427_v33, %v1426_v32  ;;  %v1479_v39 = vadd.f32 %v1478_v26, %v1477_v30 }
 0x1a2   : > { %v1481_v41 = vadd.f32 %v1480_v37, %v1479_v39  ;;  %v1430_v24 = vadd.f32 %v1429_v38, %v1428_v36 }
 0x1a4   : > { %v1483_v27 = vadd.f32 %v1482_v40, %v1481_v41 }
 0x1be   : > { %v1911_v42 = vpop.f32.mrf.mxu1 }
 0x1bf   : > { %v1878_v43 = vpack.c.bf16 %v1911_v42, %v1911_v42  ;;  %v1463_v63 = vmul.f32 %v1911_v42, %v1911_v42  ;;  %v1435_v0 = vsel %vm1098_vm1, %v1911_v42, 0.0 }
 0x1c0   : > { %v1385_v49 = vpop.f32.mrf.mxu1 }
 0x1c1   : > { %1585 = vst.msk [vmem:[%s2437_s5 + $0x28] sm:$0xf] %vm1574_vm6, %v1878_v43  ;;  %v1876_v29 = vpack.c.bf16 %v1385_v49, %v1385_v49  ;;  %v1461_v50 = vmul.f32 %v1385_v49, %v1385_v49  ;;  %v1431_v51 = vsel %vm1098_vm1, %v1385_v49, 0.0  ;;  %v1488_v22 = vsel %vm1098_vm1, %v1463_v63, 0.0 }
 0x1c2   : > { %v1912_v45 = vpop.f32.mrf.mxu1  ;;  %v1432_v58 = vadd.f32 %v1431_v51, %v1430_v24 }
 0x1c3   : > { %1583 = vst.msk [vmem:[%s2437_s5 + $0x20] sm:$0xf] %vm1574_vm6, %v1876_v29  ;;  %v1879_v47 = vpack.c.bf16 %v1912_v45, %v1912_v45  ;;  %v1484_v53 = vsel %vm1098_vm1, %v1461_v50, 0.0  ;;  %v1464_v60 = vmul.f32 %v1912_v45, %v1912_v45  ;;  %v1437_v14 = vsel %vm1098_vm1, %v1912_v45, 0.0 }
 0x1c4   : > { %v1388_v48 = vpop.f32.mrf.mxu1  ;;  %v1485_v55 = vadd.f32 %v1484_v53, %v1483_v27 }
 0x1c5   : > { %1586 = vst.msk [vmem:[%s2437_s5 + $0x2c] sm:$0xf] %vm1574_vm6, %v1879_v47  ;;  %v1877_v56 = vpack.c.bf16 %v1388_v48, %v1388_v48  ;;  %v1462_v52 = vmul.f32 %v1388_v48, %v1388_v48  ;;  %v1433_v54 = vsel %vm1098_vm1, %v1388_v48, 0.0  ;;  %v1490_v16 = vsel %vm1098_vm1, %v1464_v60, 0.0 }
 0x1c6   : > { %v1434_v62 = vadd.f32 %v1433_v54, %v1432_v58 }
 0x1c7   : > { %1584 = vst.msk [vmem:[%s2437_s5 + $0x24] sm:$0xf] %vm1574_vm6, %v1877_v56  ;;  %v1486_v61 = vsel %vm1098_vm1, %v1462_v52, 0.0 }
 0x1c8   : > { %v1487_v57 = vadd.f32 %v1486_v61, %v1485_v55  ;;  %v1436_v2 = vadd.f32 %v1435_v0, %v1434_v62 }
 0x1ca   : > { %v1489_v1 = vadd.f32 %v1488_v22, %v1487_v57  ;;  %v1438_v11 = vadd.f32 %v1437_v14, %v1436_v2 }
 0x1cc   : > { %v1491_v20 = vadd.f32 %v1490_v16, %v1489_v1 }
 0x1e6   : > { %v1915_v3 = vpop.f32.mrf.mxu1 }
 0x1e7   : > { %v1882_v4 = vpack.c.bf16 %v1915_v3, %v1915_v3  ;;  %v1467_v18 = vmul.f32 %v1915_v3, %v1915_v3  ;;  %v1443_v25 = vsel %vm1098_vm1, %v1915_v3, 0.0 }
 0x1e8   : > { %v1401_v5 = vpop.f32.mrf.mxu1 }
 0x1e9   : > { %1589 = vst.msk [vmem:[%s2437_s5 + $0x38] sm:$0xf] %vm1574_vm6, %v1882_v4  ;;  %v1439_v46 = vsel %vm1098_vm1, %v1401_v5, 0.0  ;;  %v1465_v7 = vmul.f32 %v1401_v5, %v1401_v5  ;;  %v1880_v10 = vpack.c.bf16 %v1401_v5, %v1401_v5  ;;  %v1496_v8 = vsel %vm1098_vm1, %v1467_v18, 0.0 }
 0x1ea   : > { %v1916_v12 = vpop.f32.mrf.mxu1  ;;  %v1440_v19 = vadd.f32 %v1439_v46, %v1438_v11 }
 0x1eb   : > { %v1492_v15 = vsel %vm1098_vm1, %v1465_v7, 0.0  ;;  %1587 = vst.msk [vmem:[%s2437_s5 + $0x30] sm:$0xf] %vm1574_vm6, %v1880_v10  ;;  %v1883_v17 = vpack.c.bf16 %v1916_v12, %v1916_v12  ;;  %v1468_v30 = vmul.f32 %v1916_v12, %v1916_v12  ;;  %v1445_v31 = vsel %vm1098_vm1, %v1916_v12, 0.0 }
 0x1ec   : > { %v1404_v21 = vpop.f32.mrf.mxu1  ;;  %v1493_v28 = vadd.f32 %v1492_v15, %v1491_v20 }
 0x1ed   : > { %1590 = vst.msk [vmem:[%s2437_s5 + $0x3c] sm:$0xf] %vm1574_vm6, %v1883_v17  ;;  %v1441_v59 = vsel %vm1098_vm1, %v1404_v21, 0.0  ;;  %v1466_v6 = vmul.f32 %v1404_v21, %v1404_v21  ;;  %v1881_v23 = vpack.c.bf16 %v1404_v21, %v1404_v21  ;;  %v1498_v35 = vsel %vm1098_vm1, %v1468_v30, 0.0 }
 0x1ee   : > { %v1442_v13 = vadd.f32 %v1441_v59, %v1440_v19 }
 0x1ef   : > { %v1494_v34 = vsel %vm1098_vm1, %v1466_v6, 0.0  ;;  %1588 = vst.msk [vmem:[%s2437_s5 + $0x34] sm:$0xf] %vm1574_vm6, %v1881_v23 }
 0x1f0   : > { %v1444_v9 = vadd.f32 %v1443_v25, %v1442_v13  ;;  %v1495_v44 = vadd.f32 %v1494_v34, %v1493_v28 }
 0x1f2   : > { %v1446_v32 = vadd.f32 %v1445_v31, %v1444_v9  ;;  %v1497_v33 = vadd.f32 %v1496_v8, %v1495_v44 }
 0x1f4   : > { %v1447_v26 = vrot.slane %v1446_v32, 4  ;;  %v1499_v36 = vadd.f32 %v1498_v35, %v1497_v33 }
 0x1f6   : > { %v1448_v39 = vadd.f32 %v1447_v26, %v1446_v32  ;;  %v1500_v37 = vrot.slane %v1499_v36, 4 }
 0x1f8   : > { %v1449_v38 = vrot.slane %v1448_v39, 2  ;;  %v1501_v41 = vadd.f32 %v1500_v37, %v1499_v36 }
 0x1fa   : > { %v1450_v24 = vadd.f32 %v1449_v38, %v1448_v39  ;;  %v1502_v40 = vrot.slane %v1501_v41, 2 }
 0x1fc   : > { %v1451_v27 = vrot.slane %v1450_v24, 1  ;;  %v1503_v42 = vadd.f32 %v1502_v40, %v1501_v41 }
 0x1fe   : > { %v1504_v43 = vrot.slane %v1503_v42, 1  ;;  %v1452_v49 = vadd.f32 %v1451_v27, %v1450_v24 }
 0x200   : > { %v1505_v29 = vadd.f32 %v1504_v43, %v1503_v42 }
 0x202   : > { %v1507_v45 = vsel %vm1506_vm7, %v1452_v49, %v1505_v29 }
 0x203   : > { %1509 = vst.msk [vmem:[%s181_s9] sm:$0x3] %vm1508_vm8, %v1507_v45 }
 0x204 PF: > { %s14_s12 = sadd.s32 1, %s2026_s12  }
 0x205   : > { %p11_p4 = scmp.ge.s32.totalorder %s14_s12, 4  }
 0x207   :  { %13 = sbr.rel (!%p11_p4) target bundleno = 1 (0x1), region = 72 }

// kernel: discrim_block_forward.4
= control target key start
LH: loop header
LB: loop body
LE: loop exit
PB: predicated region body
PF: predicated region fallthrough
CT: control target
= control target key end

     0   :  { %s1974_s18 = smov 0   ;;  %s2631_s0 = inlined_call_operand.vmem [shape: bf16[2,8,2,8,16], index: 0, kind: input, shape index: {}]   ;;  %s2632_s1 = inlined_call_operand.vmem [shape: bf16[96,8], index: 1, kind: input, shape index: {}]   ;;  %s2633_s2 = inlined_call_operand.vmem [shape: bf16[1,1,1,16], index: 2, kind: input, shape index: {}]   ;;  %s2634_s3 = inlined_call_operand.vmem [shape: bf16[1,1,1,16], index: 3, kind: input, shape index: {}]   ;;  %s2635_s4 = inlined_call_operand.vmem [shape: bf16[2,64,8], index: 4, kind: output, shape index: {0}]   ;;  %s2636_s5 = inlined_call_operand.vmem [shape: f32[2,2,8], index: 5, kind: output, shape index: {1}]  }
   0x1 LB: > { %s1740_s19 = sadd.s32 4294967295, %s1934_s18   ;;  %p1744_p0 = scmp.ge.s32.totalorder %s1934_s18, 1  ;;  %s1934_s18 = sphi %s1974_s18, %s16_s18  }
   0x2   : > { %p190_p1 = scmp.lt.s32.totalorder %s1934_s18, 3 }
   0x4   : > { %p191_p2 = pnand %p1744_p0, %p190_p1 }
   0x5   : > { %p222_p3 = scmp.lt.s32.totalorder (!%p191_p2), %s1740_s19, 1  ;;  %s1936_s28 = smov (!%p191_p2), 8  }
   0x6   : > { %194 = sbr.rel (%p191_p2) target bundleno = 636 (0x27c), region = 36  ;;  %s1937_s29 = smov (!%p191_p2), 120  }
   0x7   : > { %s1939_s30 = smov (!%p191_p2), 16   ;;  %s1940_s6 = smov (!%p191_p2), 32  }
   0x8   : > { %s1941_s7 = smov (!%p191_p2), 64   ;;  %s1942_s20 = smov (!%p191_p2), 48  }
   0x9   : > { %s1943_s23 = smov (!%p191_p2), 80  }
   0xb   : > { %v254_v0 = vld [vmem:[%s2633_s2] sm:$0x1]  ;;  %v258_v1 = vlaneseq  ;;  %vm352_vm0 = vcmask 122880   ;;  %vm353_vm1 = vsmask.f32 256  ;;  %s2644_s19 = smov (!%p222_p3, %s1740_s19), 1 }
   0xc   : > { %v278_v2 = vld [vmem:[%s2634_s3] sm:$0x1]  ;;  %v389_v3 = vld [vmem:[#allocation2 + $0x30] sm:$0x1]  ;;  %v256_v4 = vpack.i.b16 %v254_v0, %v254_v0  ;;  %vm1991_vm2 = vmand %vm352_vm0, %vm353_vm1  ;;  %s1814_s24 = sshll.u32 %s2644_s19, 6  ;;  %vm350_vm0 = vcmask 125952  }
   0xd   : > { %v259_v5 = vshrl.u32 %v258_v1, 7  ;;  %v280_v6 = vpack.i.b16 %v278_v2, %v278_v2  ;;  %v377_v8 = vld [vmem:[#allocation2 + $0x10] sm:$0x1]  ;;  %v390_v9 = vsel %vm1991_vm2, 0, %v389_v3  ;;  %v383_v11 = vld [vmem:[#allocation2 + $0x20] sm:$0x1]  ;;  %s2005_s27 = scalar_lea.vmem %s2631_s0, %s1814_s24 }
   0xe   : > { %v378_v10 = vsel %vm1991_vm2, 0, %v377_v8  ;;  %391 = vst [vmem:[#allocation2 + $0x30] sm:$0x1] %v390_v9  ;;  %v384_v13 = vsel %vm1991_vm2, 0, %v383_v11  ;;  %v243_v14 = vld [vmem:[%s2005_s27 + $0x14] sm:$0xf] }
   0xf   : > { %v260_v12 = vsub.s32 0, %v259_v5  ;;  %379 = vst [vmem:[#allocation2 + $0x10] sm:$0x1] %v378_v10  ;;  %385 = vst [vmem:[#allocation2 + $0x20] sm:$0x1] %v384_v13  ;;  %s1815_s24 = sshll.u32 %s2644_s19, 5 }
  0x10   : > { %v239_v17 = vld [vmem:[%s2005_s27 + $0x4] sm:$0xf]  ;;  %v241_v18 = vld [vmem:[%s2005_s27 + $0xc] sm:$0xf]  ;;  %v238_v19 = vld [vmem:[%s2005_s27] sm:$0xf] }
  0x11   : > { %v2008_v15 = vrot.slane %v256_v4, %v260_v12  ;;  %v2010_v16 = vrot.slane %v280_v6, %v260_v12  ;;  %v240_v20 = vld [vmem:[%s2005_s27 + $0x8] sm:$0xf]  ;;  %v242_v21 = vld [vmem:[%s2005_s27 + $0x10] sm:$0xf]  ;;  %v244_v26 = vld [vmem:[%s2005_s27 + $0x18] sm:$0xf] }
  0x12   : > { %v245_v27 = vld [vmem:[%s2005_s27 + $0x1c] sm:$0xf]  ;;  %v247_v49 = vld [vmem:[%s2005_s27 + $0x24] sm:$0xf]  ;;  %v249_v50 = vld [vmem:[%s2005_s27 + $0x2c] sm:$0xf] }
  0x13   : > { %v267_v22 = vmul.bf16 %v2008_v15, %v243_v14  ;;  %v263_v23 = vmul.bf16 %v2008_v15, %v239_v17  ;;  %v265_v24 = vmul.bf16 %v2008_v15, %v241_v18  ;;  %v262_v25 = vmul.bf16 %v2008_v15, %v238_v19  ;;  %v251_v61 = vld [vmem:[%s2005_s27 + $0x34] sm:$0xf]  ;;  %v246_v10 = vld [vmem:[%s2005_s27 + $0x20] sm:$0xf] }
  0x14   : > { %v264_v28 = vmul.bf16 %v2008_v15, %v240_v20  ;;  %v266_v29 = vmul.bf16 %v2008_v15, %v242_v21  ;;  %v268_v35 = vmul.bf16 %v2008_v15, %v244_v26  ;;  %v269_v36 = vmul.bf16 %v2008_v15, %v245_v27  ;;  %v248_v20 = vld [vmem:[%s2005_s27 + $0x28] sm:$0xf]  ;;  %v250_v27 = vld [vmem:[%s2005_s27 + $0x30] sm:$0xf] }
  0x15   : > { %v291_v30 = vadd.bf16 %v2010_v16, %v267_v22  ;;  %v287_v31 = vadd.bf16 %v2010_v16, %v263_v23  ;;  %v289_v32 = vadd.bf16 %v2010_v16, %v265_v24  ;;  %v286_v33 = vadd.bf16 %v2010_v16, %v262_v25 }
  0x16   : > { %v288_v34 = vadd.bf16 %v2010_v16, %v264_v28  ;;  %v290_v43 = vadd.bf16 %v2010_v16, %v266_v29  ;;  %v292_v44 = vadd.bf16 %v2010_v16, %v268_v35  ;;  %v293_v48 = vadd.bf16 %v2010_v16, %v269_v36 }
  0x17   : > { %vm307_vm3 = vcmp.gt.bf16.partialorder %v291_v30, 0  ;;  %v323_v37 = vmul.bf16 1009007652, %v291_v30  ;;  %vm303_vm4 = vcmp.gt.bf16.partialorder %v287_v31, 0  ;;  %v319_v38 = vmul.bf16 1009007652, %v287_v31 }
  0x18   : > { %vm305_vm5 = vcmp.gt.bf16.partialorder %v289_v32, 0  ;;  %v321_v39 = vmul.bf16 1009007652, %v289_v32  ;;  %vm302_vm6 = vcmp.gt.bf16.partialorder %v286_v33, 0  ;;  %v318_v40 = vmul.bf16 1009007652, %v286_v33 }
  0x19   : > { %v2032_v41 = vsel %vm307_vm3, %v291_v30, %v323_v37  ;;  %v335_v42 = vsel %vm303_vm4, %v287_v31, %v319_v38  ;;  %v320_v47 = vmul.bf16 1009007652, %v288_v34  ;;  %vm304_vm7 = vcmp.gt.bf16.partialorder %v288_v34, 0  ;;  %v252_v37 = vld [vmem:[%s2005_s27 + $0x38] sm:$0xf] }
  0x1a   : > { %698 = vrot.lane.b32.xlu1 %v2032_v41, %s1936_s28  ;;  %694 = vrot.lane.b32.xlu0 %v335_v42, %s1936_s28  ;;  %v337_v45 = vsel %vm305_vm5, %v289_v32, %v321_v39  ;;  %v2039_v46 = vsel %vm302_vm6, %v286_v33, %v318_v40  ;;  %vm306_vm8 = vcmp.gt.bf16.partialorder %v290_v43, 0  ;;  %v322_v51 = vmul.bf16 1009007652, %v290_v43  ;;  %v380_v38 = vld [vmem:[#allocation2 + $0x18] sm:$0x1] }
  0x1b   : > { %v2047_v52 = vsel %vm304_vm7, %v288_v34, %v320_v47  ;;  %vm308_vm9 = vcmp.gt.bf16.partialorder %v292_v44, 0  ;;  %v324_v53 = vmul.bf16 1009007652, %v292_v44  ;;  %v325_v54 = vmul.bf16 1009007652, %v293_v48 }
  0x1c   : > { %v2049_v55 = vsel %vm306_vm8, %v290_v43, %v322_v51  ;;  %vm309_vm10 = vcmp.gt.bf16.partialorder %v293_v48, 0  ;;  %v271_v56 = vmul.bf16 %v2008_v15, %v247_v49  ;;  %v273_v57 = vmul.bf16 %v2008_v15, %v249_v50  ;;  %v395_v43 = vld [vmem:[#allocation2 + $0x40] sm:$0x1]  ;;  %v401_v47 = vld [vmem:[#allocation2 + $0x50] sm:$0x1] }
  0x1d   : > { %v728_v58 = vshrl.u32 %v335_v42, 16  ;;  %v2060_v62 = vsel %vm308_vm9, %v292_v44, %v324_v53  ;;  %v2062_v63 = vsel %vm309_vm10, %v293_v48, %v325_v54  ;;  %v731_v2 = vshll.u32 %v335_v42, 16  ;;  %v392_v42 = vld [vmem:[#allocation2 + $0x38] sm:$0x1]  ;;  %v431_v48 = vld [vmem:[#allocation2 + $0x14] sm:$0x1] }
  0x1e   : > { %696 = vrot.lane.b32.xlu0 %v337_v45, %s1936_s28  ;;  %487 = vrot.lane.b32.xlu1 %v2039_v46, %s1936_s28  ;;  %v295_v59 = vadd.bf16 %v2010_v16, %v271_v56  ;;  %v297_v60 = vadd.bf16 %v2010_v16, %v273_v57  ;;  %v275_v3 = vmul.bf16 %v2008_v15, %v251_v61  ;;  %v736_v5 = vshrl.u32 %v337_v45, 16  ;;  %v407_v53 = vld [vmem:[#allocation2 + $0x60] sm:$0x1]  ;;  %v443_v61 = vld [vmem:[#allocation2 + $0x34] sm:$0x1] }
  0x1f   : > { %v730_v4 = vrot.slane %v728_v58, 7  ;;  %v744_v11 = vshrl.u32 %v2032_v41, 16  ;;  %v739_v13 = vshll.u32 %v337_v45, 16  ;;  %v270_v19 = vmul.bf16 %v2008_v15, %v246_v10 }
  0x20   : > { %vm311_vm11 = vcmp.gt.bf16.partialorder %v295_v59, 0  ;;  %v327_v0 = vmul.bf16 1009007652, %v295_v59  ;;  %vm313_vm12 = vcmp.gt.bf16.partialorder %v297_v60, 0  ;;  %v329_v1 = vmul.bf16 1009007652, %v297_v60 }
  0x21   : > { %v299_v9 = vadd.bf16 %v2010_v16, %v275_v3  ;;  %v738_v12 = vrot.slane %v736_v5, 7  ;;  %v734_v14 = vrot.slane %v730_v4, 4  ;;  %v733_v17 = vor.u32 %v731_v2, %v730_v4  ;;  %v404_v2 = vld [vmem:[#allocation2 + $0x58] sm:$0x1]  ;;  %v359_v3 = vld [vmem:[#allocation2 + $0xc] sm:$0x1] }
  0x22   : > { %489 = vrot.lane.b32.xlu0 %v2047_v52, %s1936_s28  ;;  %491 = vrot.lane.b32.xlu1 %v2049_v55, %s1936_s28  ;;  %v2069_v6 = vsel %vm311_vm11, %v295_v59, %v327_v0  ;;  %v2071_v8 = vsel %vm313_vm12, %v297_v60, %v329_v1  ;;  %v746_v21 = vrot.slane %v744_v11, 7  ;;  %v747_v22 = vshll.u32 %v2032_v41, 16  ;;  %v386_v41 = vld [vmem:[#allocation2 + $0x28] sm:$0x1]  ;;  %v413_v59 = vld [vmem:[#allocation2 + $0x70] sm:$0x1] }
  0x23   : > { %v331_v18 = vmul.bf16 1009007652, %v299_v9  ;;  %vm315_vm13 = vcmp.gt.bf16.partialorder %v299_v9, 0  ;;  %v741_v23 = vor.u32 %v739_v13, %v738_v12  ;;  %v272_v24 = vmul.bf16 %v2008_v15, %v248_v20  ;;  %v437_v60 = vld [vmem:[#allocation2 + $0x24] sm:$0x1] }
  0x24   : > { %v294_v26 = vadd.bf16 %v2010_v16, %v270_v19  ;;  %v522_v28 = vshrl.u32 %v2039_v46, 16  ;;  %v742_v29 = vrot.slane %v738_v12, 4  ;;  %v749_v30 = vor.u32 %v747_v22, %v746_v21  ;;  %v398_v0 = vld [vmem:[#allocation2 + $0x48] sm:$0x1]  ;;  %v355_v4 = vld [vmem:[#allocation2 + $0x4] sm:$0x1] }
  0x25   : > { %v2086_v25 = vsel %vm315_vm13, %v299_v9, %v331_v18  ;;  %v296_v31 = vadd.bf16 %v2010_v16, %v272_v24  ;;  %v274_v33 = vmul.bf16 %v2008_v15, %v250_v27  ;;  %v530_v34 = vshrl.u32 %v2047_v52, 16  ;;  %v434_v5 = vld [vmem:[#allocation2 + $0x1c] sm:$0x1]  ;;  %v440_v19 = vld [vmem:[#allocation2 + $0x2c] sm:$0x1] }
  0x26   : > { %493 = vrot.lane.b32.xlu0 %v2060_v62, %s1936_s28  ;;  %700 = vrot.lane.b32.xlu1 %v2062_v63, %s1936_s28  ;;  %v326_v32 = vmul.bf16 1009007652, %v294_v26  ;;  %vm310_vm14 = vcmp.gt.bf16.partialorder %v294_v26, 0  ;;  %v2097_v35 = vrot.slane %v522_v28, 7  ;;  %v525_v36 = vshll.u32 %v2039_v46, 16 }
  0x27   : > { %v750_v39 = vrot.slane %v746_v21, 4  ;;  %v328_v40 = vmul.bf16 1009007652, %v296_v31  ;;  %vm312_vm15 = vcmp.gt.bf16.partialorder %v296_v31, 0  ;;  %v2106_v45 = vadd.bf16 %v2010_v16, %v274_v33  ;;  %v410_v22 = vld [vmem:[#allocation2 + $0x68] sm:$0x1] }
  0x28   : > { %v2103_v44 = vsel %vm310_vm14, %v294_v26, %v326_v32  ;;  %v2108_v46 = vrot.slane %v530_v34, 7  ;;  %v533_v49 = vshll.u32 %v2047_v52, 16  ;;  %v538_v50 = vshrl.u32 %v2049_v55, 16  ;;  %v446_v24 = vld [vmem:[#allocation2 + $0x3c] sm:$0x1] }
  0x29   : > { %v541_v51 = vshll.u32 %v2049_v55, 16  ;;  %v546_v54 = vshrl.u32 %v2060_v62, 16  ;;  %v527_v56 = vor.u32 %v525_v36, %v2097_v35  ;;  %v528_v57 = vrot.slane %v2097_v35, 4  ;;  %v449_v34 = vld [vmem:[#allocation2 + $0x44] sm:$0x1] }
  0x2a   : > { %702 = vrot.lane.b32.xlu0 %v2069_v6, %s1936_s28  ;;  %704 = vrot.lane.b32.xlu1 %v2071_v8, %s1936_s28  ;;  %v276_v58 = vmul.bf16 %v2008_v15, %v252_v37  ;;  %v2121_v52 = vsel %vm312_vm15, %v296_v31, %v328_v40  ;;  %v381_v1 = vsel %vm1991_vm2, 0, %v380_v38  ;;  %v330_v9 = vmul.bf16 1009007652, %v2106_v45  ;;  %v253_v36 = vld [vmem:[%s2005_s27 + $0x3c] sm:$0xf]  ;;  %s2590_s27 = scalar_lea.vmem %s2635_s4, %s1815_s24 }
  0x2b   : > { %v1938_v10 = vmov 0   ;;  %382 = vst [vmem:[#allocation2 + $0x18] sm:$0x1] %v381_v1  ;;  %v387_v11 = vsel %vm1991_vm2, 0, %v386_v41  ;;  %v393_v12 = vsel %vm1991_vm2, 0, %v392_v42  ;;  %v396_v13 = vsel %vm1991_vm2, 0, %v395_v43 }
  0x2c   : > { %351 = vst.msk [vmem:[#allocation2] sm:$0xf] %vm350_vm0, %v1938_v10  ;;  %358 = vst.msk [vmem:[#allocation2 + $0x8] sm:$0xf] %vm350_vm0, %v1938_v10  ;;  %vm314_vm3 = vcmp.gt.bf16.partialorder %v2106_v45, 0  ;;  %v432_v18 = vsel %vm1991_vm2, 0, %v431_v48  ;;  %v535_v20 = vor.u32 %v533_v49, %v2108_v46  ;;  %v2141_v21 = vadd.bf16 %v2010_v16, %v276_v58 }
  0x2d   : > { %367 = vst.msk [vmem:[#allocation2 + $0x88] sm:$0xf] %vm350_vm0, %v1938_v10  ;;  %363 = vst.msk [vmem:[#allocation2 + $0x80] sm:$0xf] %vm350_vm0, %v1938_v10  ;;  %v414_v26 = vsel %vm1991_vm2, 0, %v413_v59  ;;  %v438_v27 = vsel %vm1991_vm2, 0, %v437_v60  ;;  %v2184_v48 = vsel %vm314_vm3, %v2106_v45, %v330_v9 }
  0x2e   : > { %793 = vrot.lane.b32.xlu0 %v734_v14, %s1937_s29  ;;  %791 = vrot.lane.b32.xlu1 %v733_v17, %s1937_s29  ;;  %388 = vst [vmem:[#allocation2 + $0x28] sm:$0x1] %v387_v11  ;;  %394 = vst [vmem:[#allocation2 + $0x38] sm:$0x1] %v393_v12  ;;  %v402_v14 = vsel %vm1991_vm2, 0, %v401_v47  ;;  %v408_v17 = vsel %vm1991_vm2, 0, %v407_v53  ;;  %v277_v53 = vmul.bf16 %v2008_v15, %v253_v36 }
  0x2f   : > { %397 = vst [vmem:[#allocation2 + $0x40] sm:$0x1] %v396_v13  ;;  %403 = vst [vmem:[#allocation2 + $0x50] sm:$0x1] %v402_v14  ;;  %v444_v28 = vsel %vm1991_vm2, 0, %v443_v61  ;;  %v360_v31 = vsel %vm1991_vm2, 0, %v359_v3 }
  0x30   : > { %409 = vst [vmem:[#allocation2 + $0x60] sm:$0x1] %v408_v17  ;;  %433 = vst [vmem:[#allocation2 + $0x14] sm:$0x1] %v432_v18  ;;  %v356_v32 = vsel %vm1991_vm2, 0, %v355_v4  ;;  %v435_v33 = vsel %vm1991_vm2, 0, %v434_v5  ;;  %v301_v1 = vadd.bf16 %v2010_v16, %v277_v53 }
  0x31   : > { %415 = vst [vmem:[#allocation2 + $0x70] sm:$0x1] %v414_v26  ;;  %439 = vst [vmem:[#allocation2 + $0x24] sm:$0x1] %v438_v27  ;;  %v411_v37 = vsel %vm1991_vm2, 0, %v410_v22  ;;  %v447_v40 = vsel %vm1991_vm2, 0, %v446_v24 }
  0x32   : > { %706 = vrot.lane.b32.xlu0 %v2086_v25, %s1936_s28  ;;  %795 = vrot.lane.b32.xlu1 %v741_v23, %s1937_s29  ;;  %v416_v23 = vld [vmem:[#allocation2 + $0x78] sm:$0x1]  ;;  %445 = vst [vmem:[#allocation2 + $0x34] sm:$0x1] %v444_v28  ;;  %361 = vst [vmem:[#allocation2 + $0xc] sm:$0x1] %v360_v31 }
  0x33   : > { %357 = vst [vmem:[#allocation2 + $0x4] sm:$0x1] %v356_v32  ;;  %436 = vst [vmem:[#allocation2 + $0x1c] sm:$0x1] %v435_v33  ;;  %v417_v38 = vsel %vm1991_vm2, 0, %v416_v23  ;;  %v540_v41 = vrot.slane %v538_v50, 7 }
  0x34   : > { %v536_v42 = vrot.slane %v2108_v46, 4  ;;  %v332_v43 = vmul.bf16 1009007652, %v2141_v21  ;;  %412 = vst [vmem:[#allocation2 + $0x68] sm:$0x1] %v411_v37  ;;  %v450_v47 = vsel %vm1991_vm2, 0, %v449_v34 }
  0x35   : > { %418 = vst [vmem:[#allocation2 + $0x78] sm:$0x1] %v417_v38  ;;  %448 = vst [vmem:[#allocation2 + $0x3c] sm:$0x1] %v447_v40  ;;  %v371_v46 = vld [vmem:[#allocation2] sm:$0x1]  ;;  %v543_v60 = vor.u32 %v541_v51, %v540_v41 }
  0x36   : > { %797 = vrot.lane.b32.xlu0 %v742_v29, %s1937_s29  ;;  %799 = vrot.lane.b32.xlu1 %v749_v30, %s1937_s29  ;;  %v399_v29 = vsel %vm1991_vm2, 0, %v398_v0  ;;  %v405_v30 = vsel %vm1991_vm2, 0, %v404_v2  ;;  %v374_v49 = vld [vmem:[#allocation2 + $0x8] sm:$0x1]  ;;  %451 = vst [vmem:[#allocation2 + $0x44] sm:$0x1] %v450_v47 }
  0x37   : > { %400 = vst [vmem:[#allocation2 + $0x48] sm:$0x1] %v399_v29  ;;  %406 = vst [vmem:[#allocation2 + $0x58] sm:$0x1] %v405_v30  ;;  %v422_v50 = vld [vmem:[#allocation2 + $0x88] sm:$0x1] }
  0x38   : > { %v375_v35 = vsel %vm1991_vm2, 0, %v374_v49  ;;  %v455_v58 = vld [vmem:[#allocation2 + $0x54] sm:$0x1]  ;;  %vm316_vm4 = vcmp.gt.bf16.partialorder %v2141_v21, 0  ;;  %v548_v15 = vrot.slane %v546_v54, 7  ;;  %v549_v59 = vshll.u32 %v2060_v62, 16 }
  0x39   : > { %376 = vst [vmem:[#allocation2 + $0x8] sm:$0x1] %v375_v35  ;;  %v456_v45 = vsel %vm1991_vm2, 0, %v455_v58  ;;  %v419_v61 = vld [vmem:[#allocation2 + $0x80] sm:$0x1]  ;;  %v2205_v0 = vsel %vm316_vm4, %v2141_v21, %v332_v43  ;;  %v752_v4 = vshrl.u32 %v2062_v63, 16 }
  0x3a   : > { %801 = vrot.lane.b32.xlu0 %v750_v39, %s1937_s29  ;;  %495 = vrot.lane.b32.xlu1 %v2103_v44, %s1936_s28  ;;  %v441_v39 = vsel %vm1991_vm2, 0, %v440_v19  ;;  %457 = vst [vmem:[#allocation2 + $0x54] sm:$0x1] %v456_v45  ;;  %v428_v2 = vld [vmem:[#allocation2 + $0xc] sm:$0x1]  ;;  %v420_v55 = vsel %vm1991_vm2, 0, %v419_v61  ;;  %v551_v5 = vor.u32 %v549_v59, %v548_v15 }
  0x3b   : > { %442 = vst [vmem:[#allocation2 + $0x2c] sm:$0x1] %v441_v39  ;;  %v425_v3 = vld [vmem:[#allocation2 + $0x4] sm:$0x1]  ;;  %v429_v54 = vsel %vm1991_vm2, 0, %v428_v2  ;;  %v544_v16 = vrot.slane %v540_v41, 4 }
  0x3c   : > { %v426_v62 = vsel %vm1991_vm2, 0, %v425_v3  ;;  %430 = vst [vmem:[#allocation2 + $0xc] sm:$0x1] %v429_v54  ;;  %v461_v51 = vld [vmem:[#allocation2 + $0x64] sm:$0x1]  ;;  %vm317_vm5 = vcmp.gt.bf16.partialorder %v301_v1, 0 }
  0x3d   : > { %427 = vst [vmem:[#allocation2 + $0x4] sm:$0x1] %v426_v62  ;;  %421 = vst [vmem:[#allocation2 + $0x80] sm:$0x1] %v420_v55  ;;  %v462_v9 = vsel %vm1991_vm2, 0, %v461_v51  ;;  %v754_v13 = vrot.slane %v752_v4, 7 }
  0x3e   : > { %497 = vrot.lane.b32.xlu0 %v2121_v52, %s1936_s28  ;;  %585 = vrot.lane.b32.xlu1 %v527_v56, %s1937_s29  ;;  %v372_v56 = vsel %vm1991_vm2, 0, %v371_v46  ;;  %v333_v10 = vmul.bf16 1009007652, %v301_v1  ;;  %463 = vst [vmem:[#allocation2 + $0x64] sm:$0x1] %v462_v9  ;;  %v755_v14 = vshll.u32 %v2062_v63, 16 }
  0x3f   : > { %373 = vst [vmem:[#allocation2] sm:$0x1] %v372_v56  ;;  %v467_v11 = vld [vmem:[#allocation2 + $0x74] sm:$0x1]  ;;  %v760_v17 = vshrl.u32 %v2069_v6, 16  ;;  %v552_v18 = vrot.slane %v548_v15, 4 }
  0x40   : > { %v468_v12 = vsel %vm1991_vm2, 0, %v467_v11  ;;  %v2226_v19 = vsel %vm317_vm5, %v301_v1, %v333_v10  ;;  %v763_v22 = vshll.u32 %v2069_v6, 16  ;;  %v768_v24 = vshrl.u32 %v2071_v8, 16  ;;  %v458_v27 = vld [vmem:[#allocation2 + $0x5c] sm:$0x1] }
  0x41   : > { %469 = vst [vmem:[#allocation2 + $0x74] sm:$0x1] %v468_v12  ;;  %v762_v23 = vrot.slane %v760_v17, 7  ;;  %v757_v63 = vor.u32 %v755_v14, %v754_v13  ;;  %v758_v26 = vrot.slane %v754_v13, 4  ;;  %v459_v28 = vsel %vm1991_vm2, 0, %v458_v27  ;;  %v1924_v27 = vld [vmem:[%s2632_s1 + $0x18] sm:$0xff]  }
  0x42   : > { %587 = vrot.lane.b32.xlu0 %v528_v57, %s1937_s29  ;;  %589 = vrot.lane.b32.xlu1 %v535_v20, %s1937_s29  ;;  %v423_v57 = vsel %vm1991_vm2, 0, %v422_v50  ;;  %v452_v20 = vld [vmem:[#allocation2 + $0x4c] sm:$0x1]  ;;  %v771_v29 = vshll.u32 %v2071_v8, 16  ;;  %460 = vst [vmem:[#allocation2 + $0x5c] sm:$0x1] %v459_v28 }
  0x43   : > { %424 = vst [vmem:[#allocation2 + $0x88] sm:$0x1] %v423_v57  ;;  %v453_v21 = vsel %vm1991_vm2, 0, %v452_v20  ;;  %v770_v30 = vrot.slane %v768_v24, 7  ;;  %v776_v6 = vshrl.u32 %v2086_v25, 16  ;;  %v765_v31 = vor.u32 %v763_v22, %v762_v23 }
  0x44   : > { %454 = vst [vmem:[#allocation2 + $0x4c] sm:$0x1] %v453_v21  ;;  %v766_v32 = vrot.slane %v762_v23, 4  ;;  %v464_v33 = vld [vmem:[#allocation2 + $0x6c] sm:$0x1]  ;;  %v779_v36 = vshll.u32 %v2086_v25, 16 }
  0x45   : > { %v465_v34 = vsel %vm1991_vm2, 0, %v464_v33  ;;  %v778_v37 = vrot.slane %v776_v6, 7  ;;  %v554_v8 = vshrl.u32 %v2103_v44, 16  ;;  %v773_v38 = vor.u32 %v771_v29, %v770_v30  ;;  %v364_v40 = vld [vmem:[#allocation2 + $0x84] sm:$0x1] }
  0x46   : > { %591 = vrot.lane.b32.xlu0 %v536_v42, %s1937_s29  ;;  %499 = vrot.lane.b32.xlu1 %v2184_v48, %s1936_s28  ;;  %466 = vst [vmem:[#allocation2 + $0x6c] sm:$0x1] %v465_v34  ;;  %v774_v39 = vrot.slane %v770_v30, 4  ;;  %v470_v41 = vld [vmem:[#allocation2 + $0x7c] sm:$0x1]  ;;  %v365_v42 = vsel %vm1991_vm2, 0, %v364_v40 }
  0x47   : > { %v471_v43 = vsel %vm1991_vm2, 0, %v470_v41  ;;  %366 = vst [vmem:[#allocation2 + $0x84] sm:$0x1] %v365_v42  ;;  %v557_v25 = vshll.u32 %v2103_v44, 16  ;;  %v556_v47 = vrot.slane %v554_v8, 7  ;;  %v562_v46 = vshrl.u32 %v2121_v52, 16 }
  0x48   : > { %472 = vst [vmem:[#allocation2 + $0x7c] sm:$0x1] %v471_v43  ;;  %v781_v49 = vor.u32 %v779_v36, %v778_v37  ;;  %v782_v50 = vrot.slane %v778_v37, 4  ;;  %v565_v53 = vshll.u32 %v2121_v52, 16  ;;  %v570_v35 = vshrl.u32 %v2184_v48, 16 }
  0x49   : > { %v564_v56 = vrot.slane %v562_v46, 7  ;;  %v559_v44 = vor.u32 %v557_v25, %v556_v47  ;;  %v560_v57 = vrot.slane %v556_v47, 4  ;;  %v578_v15 = vshrl.u32 %v2205_v0, 16  ;;  %v2265_v1 = vld [vmem:[#allocation2] sm:$0xf] }
  0x4a   : > { %501 = vrot.lane.b32.xlu0 %v2205_v0, %s1936_s28  ;;  %593 = vrot.lane.b32.xlu1 %v543_v60, %s1937_s29  ;;  %v572_v59 = vrot.slane %v570_v35, 7  ;;  %v573_v60 = vshll.u32 %v2184_v48, 16  ;;  %v888_v2 = vld [vmem:[#allocation2 + $0x4] sm:$0x1]  ;;  %v581_v54 = vshll.u32 %v2205_v0, 16  ;;  %v784_v62 = vshrl.u32 %v2226_v19, 16 }
  0x4b   : > { %v567_v52 = vor.u32 %v565_v53, %v564_v56  ;;  %v568_v61 = vrot.slane %v564_v56, 4  ;;  %v580_v3 = vrot.slane %v578_v15, 7  ;;  %v1750_v51 = vcombine.low %v2265_v1, %v888_v2  ;;  %v842_v28 = vld [vmem:[#allocation2 + $0x14] sm:$0x1] }
  0x4c   : > { %v575_v55 = vor.u32 %v573_v60, %v572_v59  ;;  %v576_v48 = vrot.slane %v572_v59, 4  ;;  %v787_v4 = vshll.u32 %v2226_v19, 16  ;;  %vm512_vm6 = vcmask 126016   ;;  %v854_v25 = vld [vmem:[#allocation2 + $0x34] sm:$0x1] }
  0x4d   : > { %v584_v9 = vrot.slane %v580_v3, 4  ;;  %v978_v0 = vshll.u32 %v1750_v51, 16  ;;  %v976_v12 = vshrl.u32 %v1750_v51, 16  ;;  %vm639_vm7 = vcmask 57344   ;;  %v647_v60 = vld [vmem:[#allocation2 + $0x1c] sm:$0x1] }
  0x4e   : > { %595 = vrot.lane.b32.xlu0 %v544_v16, %s1937_s29  ;;  %597 = vrot.lane.b32.xlu1 %v551_v5, %s1937_s29  ;;  %v473_v58 = vld [vmem:[#allocation2 + $0x84] sm:$0x1]  ;;  %v786_v16 = vrot.slane %v784_v62, 7  ;;  %v583_v5 = vor.u32 %v581_v54, %v580_v3  ;;  %vm633_vm8 = vcmask 60416   ;;  %vm634_vm9 = vsmask.f32 7938  ;;  %vm2291_vm10 = vmand %vm639_vm7, %vm353_vm1 }
  0x4f   : > { %v474_v45 = vsel %vm1991_vm2, 0, %v473_v58  ;;  %v980_v13 = vrot.slane %v978_v0, 1  ;;  %vm2296_vm11 = vmand %vm633_vm8, %vm634_vm9  ;;  %vm1319_vm1 = vcmask 130048   ;;  %vm1361_vm12 = vcmask 392192  }
  0x50   : > { %475 = vst [vmem:[#allocation2 + $0x84] sm:$0x1] %v474_v45  ;;  %v789_v10 = vor.u32 %v787_v4, %v786_v16  ;;  %v790_v11 = vrot.slane %v786_v16, 4  ;;  %v653_v16 = vld [vmem:[#allocation2 + $0x2c] sm:$0x1]  ;;  %vm1378_vm13 = vcmask 523264  }
  0x51   : > { %v981_v14 = vor.u32 %v980_v13, %v976_v12  ;;  %v659_v13 = vld [vmem:[#allocation2 + $0x3c] sm:$0x1]  ;;  %vm1395_vm14 = vcmask 654336   ;;  %vm1480_vm15 = vcmask 785408   ;;  %vm1558_vm0 = vcmask 64512  }
  0x52   : > { %599 = vrot.lane.b32.xlu0 %v552_v18, %s1937_s29  ;;  %708 = vrot.lane.b32.xlu1 %v2226_v19, %s1936_s28  ;;  %s1749_s28 = sshll.u32 %s2644_s19, 1  ;;  %vm1609_vm3 = vcmask 1040384   ;;  %vm1611_vm4 = vcmask 58368  }
  0x56   : > { %803 = vrot.lane.b32.xlu0 %v757_v63, %s1937_s29  ;;  %805 = vrot.lane.b32.xlu1 %v758_v26, %s1937_s29 }
  0x5a   : > { %807 = vrot.lane.b32.xlu0 %v765_v31, %s1937_s29  ;;  %809 = vrot.lane.b32.xlu1 %v766_v32, %s1937_s29 }
  0x5e   : > { %811 = vrot.lane.b32.xlu0 %v773_v38, %s1937_s29  ;;  %813 = vrot.lane.b32.xlu1 %v774_v39, %s1937_s29  ;;  %v848_v38 = vld [vmem:[#allocation2 + $0x24] sm:$0x1] }
  0x62   : > { %815 = vrot.lane.b32.xlu0 %v781_v49, %s1937_s29  ;;  %817 = vrot.lane.b32.xlu1 %v782_v50, %s1937_s29 }
  0x66   : > { %601 = vrot.lane.b32.xlu0 %v559_v44, %s1937_s29  ;;  %603 = vrot.lane.b32.xlu1 %v560_v57, %s1937_s29  ;;  %v641_v44 = vld [vmem:[#allocation2 + $0xc] sm:$0x1] }
  0x6a   : > { %605 = vrot.lane.b32.xlu0 %v567_v52, %s1937_s29  ;;  %607 = vrot.lane.b32.xlu1 %v568_v61, %s1937_s29 }
  0x6e   : > { %609 = vrot.lane.b32.xlu0 %v575_v55, %s1937_s29  ;;  %611 = vrot.lane.b32.xlu1 %v576_v48, %s1937_s29 }
  0x72   : > { %613 = vrot.lane.b32.xlu0 %v583_v5, %s1937_s29  ;;  %615 = vrot.lane.b32.xlu1 %v584_v9, %s1937_s29 }
  0x76   : > { %819 = vrot.lane.b32.xlu0 %v789_v10, %s1937_s29  ;;  %821 = vrot.lane.b32.xlu1 %v790_v11, %s1937_s29 }
  0x7a   : > { %1031 = vrot.lane.b32.xlu0 %v981_v14, %s1939_s30 }
  0x8c   : > { %v699_v17 = vpop.permute.xlu1 %698  ;;  %v695_v18 = vpop.permute.xlu0 %694 }
  0x8d   : > { %721 = vst.msk [vmem:[#allocation2 + $0x30] sm:$0xf] %vm512_vm6, %v699_v17  ;;  %719 = vst.msk [vmem:[#allocation2 + $0x10] sm:$0xf] %vm512_vm6, %v695_v18 }
  0x90   : > { %v697_v19 = vpop.permute.xlu0 %696  ;;  %v488_v20 = vpop.permute.xlu1 %487 }
  0x91   : > { %720 = vst.msk [vmem:[#allocation2 + $0x20] sm:$0xf] %vm512_vm6, %v697_v19  ;;  %513 = vst.msk [vmem:[#allocation2 + $0x8] sm:$0xf] %vm512_vm6, %v488_v20 }
  0x94   : > { %v490_v21 = vpop.permute.xlu0 %489  ;;  %v492_v22 = vpop.permute.xlu1 %491  ;;  %v839_v6 = vld [vmem:[#allocation2 + $0x10] sm:$0xf] }
  0x95   : > { %514 = vst.msk [vmem:[#allocation2 + $0x18] sm:$0xf] %vm512_vm6, %v490_v21  ;;  %515 = vst.msk [vmem:[#allocation2 + $0x28] sm:$0xf] %vm512_vm6, %v492_v22  ;;  %v851_v39 = vld [vmem:[#allocation2 + $0x30] sm:$0xf] }
  0x96   : > { %v860_v21 = vld [vmem:[#allocation2 + $0x44] sm:$0x1] }
  0x98   : > { %v494_v23 = vpop.permute.xlu0 %493  ;;  %v701_v24 = vpop.permute.xlu1 %700  ;;  %v845_v36 = vld [vmem:[#allocation2 + $0x20] sm:$0xf]  ;;  %v636_v53 = vld [vmem:[#allocation2 + $0x8] sm:$0xf] }
  0x99   : > { %516 = vst.msk [vmem:[#allocation2 + $0x38] sm:$0xf] %vm512_vm6, %v494_v23  ;;  %722 = vst.msk [vmem:[#allocation2 + $0x40] sm:$0xf] %vm512_vm6, %v701_v24 }
  0x9c   : > { %v703_v63 = vpop.permute.xlu0 %702  ;;  %v705_v26 = vpop.permute.xlu1 %704  ;;  %v644_v58 = vld [vmem:[#allocation2 + $0x18] sm:$0xf]  ;;  %v650_v55 = vld [vmem:[#allocation2 + $0x28] sm:$0xf] }
  0x9d   : > { %723 = vst.msk [vmem:[#allocation2 + $0x50] sm:$0xf] %vm512_vm6, %v703_v63  ;;  %724 = vst.msk [vmem:[#allocation2 + $0x60] sm:$0xf] %vm512_vm6, %v705_v26 }
  0xa0   : > { %v794_v30 = vpop.permute.xlu0 %793  ;;  %v792_v31 = vpop.permute.xlu1 %791  ;;  %v656_v0 = vld [vmem:[#allocation2 + $0x38] sm:$0xf]  ;;  %v857_v23 = vld [vmem:[#allocation2 + $0x40] sm:$0xf] }
  0xa1   : > { %v843_v32 = vsel %vm2291_vm10, %v794_v30, %v842_v28  ;;  %v840_v33 = vsel %vm2296_vm11, %v792_v31, %v839_v6 }
  0xa2   : > { %844 = vst [vmem:[#allocation2 + $0x14] sm:$0x1] %v843_v32  ;;  %841 = vst [vmem:[#allocation2 + $0x10] sm:$0xf] %v840_v33  ;;  %v866_v32 = vld [vmem:[#allocation2 + $0x54] sm:$0x1] }
  0xa4   : > { %v707_v34 = vpop.permute.xlu0 %706  ;;  %v796_v37 = vpop.permute.xlu1 %795 }
  0xa5   : > { %725 = vst.msk [vmem:[#allocation2 + $0x70] sm:$0xf] %vm512_vm6, %v707_v34  ;;  %v846_v8 = vsel %vm2296_vm11, %v796_v37, %v845_v36  ;;  %v863_v36 = vld [vmem:[#allocation2 + $0x50] sm:$0xf] }
  0xa6   : > { %847 = vst [vmem:[#allocation2 + $0x20] sm:$0xf] %v846_v8 }
  0xa8   : > { %v798_v40 = vpop.permute.xlu0 %797  ;;  %v800_v41 = vpop.permute.xlu1 %799 }
  0xa9   : > { %v849_v42 = vsel %vm2291_vm10, %v798_v40, %v848_v38  ;;  %v852_v43 = vsel %vm2296_vm11, %v800_v41, %v851_v39  ;;  %v2348_v22 = vld [vmem:[#allocation2 + $0x10] sm:$0xf] }
  0xaa   : > { %850 = vst [vmem:[#allocation2 + $0x24] sm:$0x1] %v849_v42  ;;  %853 = vst [vmem:[#allocation2 + $0x30] sm:$0xf] %v852_v43  ;;  %v1774_v6 = vcombine.low %v2348_v22, %v2348_v22  ;;  %v872_v42 = vld [vmem:[#allocation2 + $0x64] sm:$0x1] }
  0xab   : > { %v869_v43 = vld [vmem:[#allocation2 + $0x60] sm:$0xf] }
  0xac   : > { %v802_v47 = vpop.permute.xlu0 %801  ;;  %v496_v46 = vpop.permute.xlu1 %495 }
  0xad   : > { %v855_v49 = vsel %vm2291_vm10, %v802_v47, %v854_v25  ;;  %517 = vst.msk [vmem:[#allocation2 + $0x48] sm:$0xf] %vm512_vm6, %v496_v46  ;;  %v2363_v34 = vld [vmem:[#allocation2 + $0x20] sm:$0xf] }
  0xae   : > { %856 = vst [vmem:[#allocation2 + $0x34] sm:$0x1] %v855_v49  ;;  %v1775_v41 = vcombine.low %v2363_v34, %v2363_v34 }
  0xb0   : > { %v498_v50 = vpop.permute.xlu0 %497  ;;  %v586_v56 = vpop.permute.xlu1 %585 }
  0xb1   : > { %518 = vst.msk [vmem:[#allocation2 + $0x58] sm:$0xf] %vm512_vm6, %v498_v50  ;;  %v637_v35 = vsel %vm2296_vm11, %v586_v56, %v636_v53  ;;  %v2361_v33 = vld [vmem:[#allocation2 + $0x30] sm:$0xf]  ;;  %v878_v56 = vld [vmem:[#allocation2 + $0x74] sm:$0x1] }
  0xb2   : > { %638 = vst [vmem:[#allocation2 + $0x8] sm:$0xf] %v637_v35  ;;  %v1776_v40 = vcombine.low %v2361_v33, %v2361_v33  ;;  %v875_v35 = vld [vmem:[#allocation2 + $0x70] sm:$0xf] }
  0xb4   : > { %v588_v57 = vpop.permute.xlu0 %587  ;;  %v590_v45 = vpop.permute.xlu1 %589 }
  0xb5   : > { %v642_v15 = vsel %vm2291_vm10, %v588_v57, %v641_v44  ;;  %v645_v59 = vsel %vm2296_vm11, %v590_v45, %v644_v58 }
  0xb6   : > { %643 = vst [vmem:[#allocation2 + $0xc] sm:$0x1] %v642_v15  ;;  %646 = vst [vmem:[#allocation2 + $0x18] sm:$0xf] %v645_v59  ;;  %v665_v15 = vld [vmem:[#allocation2 + $0x4c] sm:$0x1] }
  0xb7   : > { %v662_v59 = vld [vmem:[#allocation2 + $0x48] sm:$0xf] }
  0xb8   : > { %v592_v52 = vpop.permute.xlu0 %591  ;;  %v500_v61 = vpop.permute.xlu1 %499 }
  0xb9   : > { %v648_v2 = vsel %vm2291_vm10, %v592_v52, %v647_v60  ;;  %519 = vst.msk [vmem:[#allocation2 + $0x68] sm:$0xf] %vm512_vm6, %v500_v61  ;;  %v2324_v3 = vld [vmem:[#allocation2 + $0x8] sm:$0xf] }
  0xba   : > { %649 = vst [vmem:[#allocation2 + $0x1c] sm:$0x1] %v648_v2  ;;  %v1758_v54 = vcombine.low %v2324_v3, %v2324_v3 }
  0xbc   : > { %v502_v62 = vpop.permute.xlu0 %501  ;;  %1071 = vrot.lane.b32.xlu0 %v1758_v54, %s1940_s6  ;;  %v594_v48 = vpop.permute.xlu1 %593  ;;  %v671_v54 = vld [vmem:[#allocation2 + $0x5c] sm:$0x1] }
  0xbd   : > { %520 = vst.msk [vmem:[#allocation2 + $0x78] sm:$0xf] %vm512_vm6, %v502_v62  ;;  %v651_v51 = vsel %vm2296_vm11, %v594_v48, %v650_v55  ;;  %v2332_v4 = vld [vmem:[#allocation2 + $0x18] sm:$0xf] }
  0xbe   : > { %652 = vst [vmem:[#allocation2 + $0x28] sm:$0xf] %v651_v51  ;;  %v1759_v5 = vcombine.low %v2332_v4, %v2332_v4  ;;  %v668_v62 = vld [vmem:[#allocation2 + $0x58] sm:$0xf] }
  0xc0   : > { %v596_v9 = vpop.permute.xlu0 %595  ;;  %1073 = vrot.lane.b32.xlu1 %v1759_v5, %s1940_s6  ;;  %v598_v10 = vpop.permute.xlu1 %597  ;;  %v677_v5 = vld [vmem:[#allocation2 + $0x6c] sm:$0x1] }
  0xc1   : > { %v654_v11 = vsel %vm2291_vm10, %v596_v9, %v653_v16  ;;  %v657_v12 = vsel %vm2296_vm11, %v598_v10, %v656_v0  ;;  %v892_v9 = vld [vmem:[#allocation2 + $0x24] sm:$0x1]  ;;  %v674_v10 = vld [vmem:[#allocation2 + $0x68] sm:$0xf] }
  0xc2   : > { %655 = vst [vmem:[#allocation2 + $0x2c] sm:$0x1] %v654_v11  ;;  %658 = vst [vmem:[#allocation2 + $0x38] sm:$0xf] %v657_v12  ;;  %v2398_v12 = vld [vmem:[#allocation2 + $0x20] sm:$0xf] }
  0xc4   : > { %v600_v14 = vpop.permute.xlu0 %599  ;;  %v709_v17 = vpop.permute.xlu1 %708 }
  0xc5   : > { %v660_v18 = vsel %vm2291_vm10, %v600_v14, %v659_v13  ;;  %726 = vst.msk [vmem:[#allocation2 + $0x80] sm:$0xf] %vm512_vm6, %v709_v17  ;;  %v2344_v19 = vld [vmem:[#allocation2 + $0x28] sm:$0xf] }
  0xc6   : > { %661 = vst [vmem:[#allocation2 + $0x3c] sm:$0x1] %v660_v18  ;;  %v1760_v20 = vcombine.low %v2344_v19, %v2344_v19  ;;  %v1752_v18 = vcombine.low %v2398_v12, %v892_v9 }
  0xc8   : > { %v804_v24 = vpop.permute.xlu0 %803  ;;  %1075 = vrot.lane.b32.xlu0 %v1760_v20, %s1940_s6  ;;  %v806_v63 = vpop.permute.xlu1 %805  ;;  %v2407_v20 = vld [vmem:[#allocation2 + $0x10] sm:$0xf] }
  0xc9   : > { %v858_v26 = vsel %vm2296_vm11, %v804_v24, %v857_v23  ;;  %v861_v28 = vsel %vm2291_vm10, %v806_v63, %v860_v21  ;;  %v2355_v30 = vld [vmem:[#allocation2 + $0x38] sm:$0xf]  ;;  %v890_v21 = vld [vmem:[#allocation2 + $0x14] sm:$0x1]  ;;  %v683_v24 = vld [vmem:[#allocation2 + $0x7c] sm:$0x1] }
  0xca   : > { %859 = vst [vmem:[#allocation2 + $0x40] sm:$0xf] %v858_v26  ;;  %862 = vst [vmem:[#allocation2 + $0x44] sm:$0x1] %v861_v28  ;;  %v1761_v31 = vcombine.low %v2355_v30, %v2355_v30  ;;  %v904_v63 = vld [vmem:[#allocation2 + $0xc] sm:$0x1] }
  0xcb   : > { %v368_v26 = vld [vmem:[#allocation2 + $0x8c] sm:$0x1] }
  0xcc   : > { %v808_v37 = vpop.permute.xlu0 %807  ;;  %1207 = vrot.lane.b32.xlu0 %v1774_v6, %s1941_s7  ;;  %1077 = vrot.lane.b32.xlu1 %v1761_v31, %s1940_s6  ;;  %v810_v8 = vpop.permute.xlu1 %809  ;;  %v1922_v28 = vld [vmem:[%s2632_s1 + $0x28] sm:$0xff]   ;;  %v680_v6 = vld [vmem:[#allocation2 + $0x78] sm:$0xf] }
  0xcd   : > { %v864_v38 = vsel %vm2296_vm11, %v808_v37, %v863_v36  ;;  %v867_v39 = vsel %vm2291_vm10, %v810_v8, %v866_v32  ;;  %v2416_v36 = vcombine.low %v2407_v20, %v890_v21  ;;  %1834 = vmatprep.subr.bf16.mxu0 %v1922_v28  ;;  %1854 = vmatprep.subr.bf16.mxu1 %v1922_v28 }
  0xce   : > { %865 = vst [vmem:[#allocation2 + $0x50] sm:$0xf] %v864_v38  ;;  %868 = vst [vmem:[#allocation2 + $0x54] sm:$0x1] %v867_v39  ;;  %v992_v39 = vshll.u32 %v1752_v18, 16  ;;  %1835 = vmatpush3.bf16.msra.mxu0 %v1922_v28  ;;  %1860 = vmatpush3.bf16.msra.mxu1 %v1922_v28 }
  0xd0   : > { %v812_v25 = vpop.permute.xlu0 %811  ;;  %1211 = vrot.lane.b32.xlu0 %v1776_v40, %s1941_s7  ;;  %1209 = vrot.lane.b32.xlu1 %v1775_v41, %s1941_s7  ;;  %v814_v47 = vpop.permute.xlu1 %813  ;;  %v369_v40 = vsel %vm1991_vm2, 0, %v368_v26  ;;  %v2427_v41 = vcombine.low %v2324_v3, %v904_v63  ;;  %v922_v63 = vld [vmem:[#allocation2 + $0x24] sm:$0x1] }
  0xd1   : > { %v870_v46 = vsel %vm2296_vm11, %v812_v25, %v869_v43  ;;  %v873_v49 = vsel %vm2291_vm10, %v814_v47, %v872_v42  ;;  %v2381_v50 = vld [vmem:[#allocation2 + $0x40] sm:$0xf]  ;;  %v884_v25 = vld [vmem:[#allocation2 + $0x84] sm:$0x1]  ;;  %v894_v47 = vld [vmem:[#allocation2 + $0x34] sm:$0x1] }
  0xd2   : > { %871 = vst [vmem:[#allocation2 + $0x60] sm:$0xf] %v870_v46  ;;  %874 = vst [vmem:[#allocation2 + $0x64] sm:$0x1] %v873_v49  ;;  %v1777_v53 = vcombine.low %v2381_v50, %v2381_v50  ;;  %v881_v43 = vld [vmem:[#allocation2 + $0x80] sm:$0xf] }
  0xd3   : > { %370 = vst [vmem:[#allocation2 + $0x8c] sm:$0x1] %v369_v40  ;;  %v908_v46 = vld [vmem:[#allocation2 + $0x2c] sm:$0x1]  ;;  %v1923_v49 = vld [vmem:[%s2632_s1 + $0x20] sm:$0xff]   ;;  %v1114_v29 = vshll.u32 %v2427_v41, 16 }
  0xd4   : > { %v816_v44 = vpop.permute.xlu0 %815  ;;  %1213 = vrot.lane.b32.xlu1 %v1777_v53, %s1941_s7  ;;  %v818_v57 = vpop.permute.xlu1 %817  ;;  %1836 = vmatprep.subr.bf16.mxu0 %v1923_v49 }
  0xd5   : > { %v876_v58 = vsel %vm2296_vm11, %v816_v44, %v875_v35  ;;  %v879_v45 = vsel %vm2291_vm10, %v818_v57, %v878_v56  ;;  %v985_v56 = vshll.u32 %v2416_v36, 16  ;;  %v2436_v35 = vld [vmem:[#allocation2 + $0x30] sm:$0xf]  ;;  %v920_v44 = vld [vmem:[#allocation2 + $0x14] sm:$0x1]  ;;  %1855 = vmatprep.subr.bf16.mxu1 %v1923_v49  ;;  %1837 = vmatpush3.bf16.msra.mxu0 %v1923_v49 }
  0xd6   : > { %877 = vst [vmem:[#allocation2 + $0x70] sm:$0xf] %v876_v58  ;;  %880 = vst [vmem:[#allocation2 + $0x74] sm:$0x1] %v879_v45  ;;  %1861 = vmatpush3.bf16.msra.mxu1 %v1923_v49  ;;  %1838 = vmatprep.subr.bf16.mxu0 %v1924_v27 }
  0xd7   : > { %1856 = vmatprep.subr.bf16.mxu1 %v1924_v27 }
  0xd8   : > { %v602_v60 = vpop.permute.xlu0 %601  ;;  %v604_v52 = vpop.permute.xlu1 %603 }
  0xd9   : > { %v663_v61 = vsel %vm2296_vm11, %v602_v60, %v662_v59  ;;  %v666_v2 = vsel %vm2291_vm10, %v604_v52, %v665_v15  ;;  %v994_v15 = vrot.slane %v992_v39, 1  ;;  %v1753_v59 = vcombine.low %v2436_v35, %v894_v47  ;;  %v906_v60 = vld [vmem:[#allocation2 + $0x1c] sm:$0x1]  ;;  %1839 = vmatpush3.bf16.msra.mxu0 %v1924_v27  ;;  %v2486_v49 = vld [vmem:[#allocation2 + $0x60] sm:$0xf] }
  0xda   : > { %664 = vst [vmem:[#allocation2 + $0x48] sm:$0xf] %v663_v61  ;;  %667 = vst [vmem:[#allocation2 + $0x4c] sm:$0x1] %v666_v2  ;;  %v1768_v52 = vcombine.low %v2344_v19, %v908_v46  ;;  %v990_v2 = vshrl.u32 %v1752_v18, 16  ;;  %v2457_v19 = vcombine.low %v2332_v4, %v906_v60  ;;  %1862 = vmatpush3.bf16.msra.mxu1 %v1924_v27 }
  0xdb   : > { %v910_v4 = vld [vmem:[#allocation2 + $0x3c] sm:$0x1] }
  0xdc   : > { %v606_v55 = vpop.permute.xlu0 %605  ;;  %v608_v48 = vpop.permute.xlu1 %607 }
  0xdd   : > { %v669_v51 = vsel %vm2296_vm11, %v606_v55, %v668_v62  ;;  %v672_v16 = vsel %vm2291_vm10, %v608_v48, %v671_v54  ;;  %v2453_v54 = vcombine.low %v2348_v22, %v920_v44  ;;  %v995_v62 = vor.u32 %v994_v15, %v990_v2 }
  0xde   : > { %670 = vst [vmem:[#allocation2 + $0x58] sm:$0xf] %v669_v51  ;;  %673 = vst [vmem:[#allocation2 + $0x5c] sm:$0x1] %v672_v16  ;;  %v987_v48 = vrot.slane %v985_v56, 1  ;;  %v999_v51 = vshll.u32 %v1753_v59, 16 }
  0xdf   : > { %v476_v16 = vld [vmem:[#allocation2 + $0x8c] sm:$0x1]  ;;  %v1128_v22 = vshll.u32 %v1768_v52, 16  ;;  %v1248_v46 = vshrl.u32 %v2453_v54, 16 }
  0xe0   : > { %v610_v0 = vpop.permute.xlu0 %609  ;;  %v612_v11 = vpop.permute.xlu1 %611  ;;  %v1001_v21 = vrot.slane %v999_v51, 1 }
  0xe1   : > { %v675_v13 = vsel %vm2296_vm11, %v610_v0, %v674_v10  ;;  %v678_v14 = vsel %vm2291_vm10, %v612_v11, %v677_v5  ;;  %v2404_v17 = vld [vmem:[#allocation2 + $0x48] sm:$0xf]  ;;  %v924_v5 = vld [vmem:[#allocation2 + $0x34] sm:$0x1]  ;;  %v1116_v0 = vrot.slane %v1114_v29, 1  ;;  %v477_v10 = vsel %vm1991_vm2, 0, %v476_v16 }
  0xe2   : > { %676 = vst [vmem:[#allocation2 + $0x68] sm:$0xf] %v675_v13  ;;  %679 = vst [vmem:[#allocation2 + $0x6c] sm:$0x1] %v678_v14  ;;  %v1762_v23 = vcombine.low %v2404_v17, %v2404_v17  ;;  %v983_v11 = vshrl.u32 %v2416_v36, 16  ;;  %v1925_v13 = vld [vmem:[%s2632_s1 + $0x10] sm:$0xff]   ;;  %v1784_v18 = vcombine.low %v2361_v33, %v924_v5 }
  0xe3   : > { %478 = vst [vmem:[#allocation2 + $0x8c] sm:$0x1] %v477_v10  ;;  %v1112_v14 = vshrl.u32 %v2427_v41, 16  ;;  %1840 = vmatprep.subr.bf16.mxu0 %v1925_v13  ;;  %1857 = vmatprep.subr.bf16.mxu1 %v1925_v13  ;;  %v1130_v28 = vrot.slane %v1128_v22, 1  ;;  %v896_v36 = vld [vmem:[#allocation2 + $0x44] sm:$0x1] }
  0xe4   : > { %v614_v31 = vpop.permute.xlu0 %613  ;;  %1079 = vrot.lane.b32.xlu0 %v1762_v23, %s1940_s6  ;;  %v616_v32 = vpop.permute.xlu1 %615  ;;  %v988_v7 = vor.u32 %v987_v48, %v983_v11  ;;  %v1250_v23 = vshll.u32 %v2453_v54, 16  ;;  %1841 = vmatpush3.bf16.msra.mxu0 %v1925_v13  ;;  %v1926_v33 = vld [vmem:[%s2632_s1 + $0x8] sm:$0xff]   ;;  %v1264_v40 = vshll.u32 %v1784_v18, 16  ;;  %v926_v41 = vld [vmem:[#allocation2 + $0x44] sm:$0x1]  ;;  %v1262_v27 = vshrl.u32 %v1784_v18, 16 }
  0xe5   : > { %v681_v37 = vsel %vm2296_vm11, %v614_v31, %v680_v6  ;;  %v684_v8 = vsel %vm2291_vm10, %v616_v32, %v683_v24  ;;  %v2422_v38 = vld [vmem:[#allocation2 + $0x58] sm:$0xf]  ;;  %v1769_v24 = vcombine.low %v2355_v30, %v910_v4  ;;  %v1117_v26 = vor.u32 %v1116_v0, %v1112_v14  ;;  %1863 = vmatpush3.bf16.msra.mxu1 %v1925_v13  ;;  %v2476_v32 = vld [vmem:[#allocation2 + $0x40] sm:$0xf]  ;;  %v898_v29 = vld [vmem:[#allocation2 + $0x54] sm:$0x1] }
  0xe6   : > { %682 = vst [vmem:[#allocation2 + $0x78] sm:$0xf] %v681_v37  ;;  %685 = vst [vmem:[#allocation2 + $0x7c] sm:$0x1] %v684_v8  ;;  %v1763_v42 = vcombine.low %v2422_v38, %v2422_v38  ;;  %v1121_v6 = vshll.u32 %v2457_v19, 16  ;;  %v997_v31 = vshrl.u32 %v1753_v59, 16  ;;  %v1783_v37 = vcombine.low %v2363_v34, %v922_v63  ;;  %1842 = vmatprep.subr.bf16.mxu0 %v1926_v33 }
  0xe7   : > { %v1126_v30 = vshrl.u32 %v1768_v52, 16  ;;  %v1252_v39 = vrot.slane %v1250_v23, 1  ;;  %1858 = vmatprep.subr.bf16.mxu1 %v1926_v33  ;;  %v1754_v47 = vcombine.low %v2476_v32, %v896_v36  ;;  %v1927_v34 = vld [vmem:[%s2632_s1] sm:$0xff]   ;;  %v1785_v56 = vcombine.low %v2381_v50, %v926_v41  ;;  %v912_v2 = vld [vmem:[#allocation2 + $0x4c] sm:$0x1] }
  0xe8   : > { %1081 = vrot.lane.b32.xlu1 %v1763_v42, %s1940_s6  ;;  %v820_v3 = vpop.permute.xlu0 %819  ;;  %v822_v53 = vpop.permute.xlu1 %821  ;;  %v1002_v8 = vor.u32 %v1001_v21, %v997_v31  ;;  %1843 = vmatpush3.bf16.msra.mxu0 %v1926_v33  ;;  %v1133_v50 = vshrl.u32 %v1769_v24, 16  ;;  %v1770_v51 = vcombine.low %v2404_v17, %v912_v2  ;;  %v2502_v0 = vld [vmem:[#allocation2 + $0x70] sm:$0xf]  ;;  %v902_v22 = vld [vmem:[#allocation2 + $0x74] sm:$0x1]  ;;  %v1255_v4 = vshrl.u32 %v1783_v37, 16 }
  0xe9   : > { %v882_v57 = vsel %vm2296_vm11, %v820_v3, %v881_v43  ;;  %v2440_v58 = vld [vmem:[#allocation2 + $0x68] sm:$0xf]  ;;  %v885_v45 = vsel %vm2291_vm10, %v822_v53, %v884_v25  ;;  %v1131_v42 = vor.u32 %v1130_v28, %v1126_v30  ;;  %v1123_v43 = vrot.slane %v1121_v6, 1  ;;  %1864 = vmatpush3.bf16.msra.mxu1 %v1926_v33  ;;  %v900_v3 = vld [vmem:[#allocation2 + $0x64] sm:$0x1]  ;;  %1844 = vmatprep.subr.bf16.mxu0 %v1927_v34 }
  0xea   : > { %883 = vst [vmem:[#allocation2 + $0x80] sm:$0xf] %v882_v57  ;;  %v1764_v61 = vcombine.low %v2440_v58, %v2440_v58  ;;  %886 = vst [vmem:[#allocation2 + $0x84] sm:$0x1] %v885_v45  ;;  %v1135_v25 = vshll.u32 %v1769_v24, 16  ;;  %v1119_v53 = vshrl.u32 %v2457_v19, 16  ;;  %v1253_v44 = vor.u32 %v1252_v39, %v1248_v46  ;;  %1859 = vmatprep.subr.bf16.mxu1 %v1927_v34 }
  0xeb   : > { %v1266_v57 = vrot.slane %v1264_v40, 1  ;;  %v1257_v45 = vshll.u32 %v1783_v37, 16  ;;  %v1006_v60 = vshll.u32 %v1754_v47, 16  ;;  %v1756_v52 = vcombine.low %v2486_v49, %v900_v3  ;;  %v916_v10 = vld [vmem:[#allocation2 + $0x6c] sm:$0x1] }
  0xec   : > { %1083 = vrot.lane.b32.xlu0 %v1764_v61, %s1940_s6  ;;  %v1124_v15 = vor.u32 %v1123_v43, %v1119_v53  ;;  %v1137_v59 = vrot.slane %v1135_v25, 1  ;;  %v2496_v61 = vld [vmem:[#allocation2 + $0x50] sm:$0xf]  ;;  %1845 = vmatpush3.bf16.msra.mxu0 %v1927_v34  ;;  %v1004_v11 = vshrl.u32 %v1754_v47, 16  ;;  %v1772_v17 = vcombine.low %v2440_v58, %v916_v10  ;;  %v914_v63 = vld [vmem:[#allocation2 + $0x5c] sm:$0x1] }
  0xed   : > { %v2459_v55 = vld [vmem:[#allocation2 + $0x78] sm:$0xf]  ;;  %1865 = vmatpush3.bf16.msra.mxu1 %v1927_v34  ;;  %v1267_v54 = vor.u32 %v1266_v57, %v1262_v27  ;;  %v1259_v19 = vrot.slane %v1257_v45, 1  ;;  %v1755_v48 = vcombine.low %v2496_v61, %v898_v29  ;;  %v1008_v5 = vrot.slane %v1006_v60, 1  ;;  %v918_v39 = vld [vmem:[#allocation2 + $0x7c] sm:$0x1] }
  0xee   : > { %v1765_v9 = vcombine.low %v2459_v55, %v2459_v55  ;;  %v1138_v16 = vor.u32 %v1137_v59, %v1133_v50  ;;  %v1142_v24 = vshll.u32 %v1770_v51, 16  ;;  %v1018_v28 = vshrl.u32 %v1756_v52, 16  ;;  %v927_v3 = vld [vmem:[#allocation2 + $0x50] sm:$0xf]  ;;  %v928_v34 = vld [vmem:[#allocation2 + $0x54] sm:$0x1] }
  0xef   : > { %v1260_v13 = vor.u32 %v1259_v19, %v1255_v4  ;;  %v1013_v18 = vshll.u32 %v1755_v48, 16  ;;  %v1009_v21 = vor.u32 %v1008_v5, %v1004_v11  ;;  %v1771_v33 = vcombine.low %v2422_v38, %v914_v63  ;;  %v931_v59 = vld [vmem:[#allocation2 + $0x70] sm:$0xf]  ;;  %v932_v60 = vld [vmem:[#allocation2 + $0x74] sm:$0x1] }
  0xf0   : > { %1035 = vrot.lane.b32.xlu0 %v995_v62, %s1939_s30  ;;  %1085 = vrot.lane.b32.xlu1 %v1765_v9, %s1940_s6  ;;  %v1271_v62 = vshll.u32 %v1785_v56, 16  ;;  %v1020_v9 = vshll.u32 %v1756_v52, 16  ;;  %v1144_v37 = vrot.slane %v1142_v24, 1  ;;  %v1011_v58 = vshrl.u32 %v1755_v48, 16  ;;  %v930_v19 = vld [vmem:[#allocation2 + $0x64] sm:$0x1]  ;;  %s235_s6 = scalar_lea.vmem %s2636_s5, %s1749_s28 }
  0xf1   : > { %v1015_v31 = vrot.slane %v1013_v18, 1  ;;  %v1140_v40 = vshrl.u32 %v1770_v51, 16  ;;  %v1773_v43 = vcombine.low %v2459_v55, %v918_v39  ;;  %v1149_v46 = vshll.u32 %v1771_v33, 16  ;;  %v934_v10 = vld [vmem:[#allocation2 + $0x84] sm:$0x1] }
  0xf2   : > { %v1273_v14 = vrot.slane %v1271_v62, 1  ;;  %v1022_v23 = vrot.slane %v1020_v9, 1  ;;  %v1154_v53 = vshrl.u32 %v1772_v17, 16  ;;  %v1147_v55 = vshrl.u32 %v1771_v33, 16  ;;  %v1032_v33 = vpop.permute.xlu0 %1031 }
  0xf3   : > { %v1016_v41 = vor.u32 %v1015_v31, %v1011_v58  ;;  %v1145_v25 = vor.u32 %v1144_v37, %v1140_v40  ;;  %v1151_v45 = vrot.slane %v1149_v46, 1  ;;  %v1778_v52 = vcombine.low %v927_v3, %v927_v3 }
  0xf4   : > { %1167 = vrot.lane.b32.xlu0 %v1117_v26, %s1942_s20  ;;  %1033 = vrot.lane.b32.xlu1 %v988_v7, %s1939_s30  ;;  %v1757_v7 = vcombine.low %v2502_v0, %v902_v22  ;;  %v1269_v26 = vshrl.u32 %v1785_v56, 16  ;;  %v1023_v30 = vor.u32 %v1022_v23, %v1018_v28  ;;  %v1786_v56 = vcombine.low %v927_v3, %v928_v34  ;;  %v933_v22 = vld [vmem:[#allocation2 + $0x80] sm:$0xf] }
  0xf5   : > { %v1152_v29 = vor.u32 %v1151_v45, %v1147_v55  ;;  %v1788_v2 = vcombine.low %v931_v59, %v932_v60  ;;  %v1161_v62 = vshrl.u32 %v1773_v43, 16  ;;  %v1780_v51 = vcombine.low %v931_v59, %v931_v59 }
  0xf6   : > { %v1274_v6 = vor.u32 %v1273_v14, %v1269_v26  ;;  %v1027_v36 = vshll.u32 %v1757_v7, 16  ;;  %v1025_v38 = vshrl.u32 %v1757_v7, 16  ;;  %v1278_v50 = vshll.u32 %v1786_v56, 16 }
  0xf7   : > { %v1292_v9 = vshll.u32 %v1788_v2, 16  ;;  %v1276_v4 = vshrl.u32 %v1786_v56, 16  ;;  %v1789_v18 = vcombine.low %v933_v22, %v934_v10  ;;  %v1781_v23 = vcombine.low %v933_v22, %v933_v22 }
  0xf8   : > { %1171 = vrot.lane.b32.xlu0 %v1131_v42, %s1942_s20  ;;  %1037 = vrot.lane.b32.xlu1 %v1002_v8, %s1939_s30  ;;  %v1156_v8 = vshll.u32 %v1772_v17, 16  ;;  %v1029_v42 = vrot.slane %v1027_v36, 1  ;;  %v1280_v5 = vrot.slane %v1278_v50, 1  ;;  %v1290_v17 = vshrl.u32 %v1788_v2, 16 }
  0xf9   : > { %v1294_v14 = vrot.slane %v1292_v9, 1  ;;  %v1299_v63 = vshll.u32 %v1789_v18, 16  ;;  %v1322_v45 = vsel %vm1319_vm1, %v2265_v1, %v1032_v33  ;;  %vm1344_vm2 = vcmask 261120  }
  0xfa   : > { %v1158_v47 = vrot.slane %v1156_v8, 1 }
  0xfb   : > { %v1301_v31 = vrot.slane %v1299_v63, 1 }
  0xfc   : > { %1303 = vrot.lane.b32.xlu0 %v1253_v44, %s1943_s23  ;;  %1169 = vrot.lane.b32.xlu1 %v1124_v15, %s1942_s20  ;;  %v1030_v44 = vor.u32 %v1029_v42, %v1025_v38  ;;  %v1159_v57 = vor.u32 %v1158_v47, %v1154_v53  ;;  %v1163_v15 = vshll.u32 %v1773_v43, 16 }
  0xfe   : > { %v1165_v27 = vrot.slane %v1163_v15, 1 }
 0x100   : > { %1307 = vrot.lane.b32.xlu0 %v1267_v54, %s1943_s23  ;;  %1173 = vrot.lane.b32.xlu1 %v1138_v16, %s1942_s20  ;;  %v929_v54 = vld [vmem:[#allocation2 + $0x60] sm:$0xf]  ;;  %v1166_v16 = vor.u32 %v1165_v27, %v1161_v62 }
 0x101   : > { %v1787_v48 = vcombine.low %v929_v54, %v930_v19  ;;  %v1779_v11 = vcombine.low %v929_v54, %v929_v54 }
 0x103   : > { %v1285_v7 = vshll.u32 %v1787_v48, 16  ;;  %v1283_v26 = vshrl.u32 %v1787_v48, 16 }
 0x104   : > { %1305 = vrot.lane.b32.xlu1 %v1260_v13, %s1943_s23  ;;  %1039 = vrot.lane.b32.xlu0 %v1009_v21, %s1939_s30  ;;  %v1281_v13 = vor.u32 %v1280_v5, %v1276_v4  ;;  %v1295_v21 = vor.u32 %v1294_v14, %v1290_v17 }
 0x105   : > { %v1287_v24 = vrot.slane %v1285_v7, 1 }
 0x107   : > { %v1288_v28 = vor.u32 %v1287_v24, %v1283_v26 }
 0x108   : > { %1309 = vrot.lane.b32.xlu1 %v1274_v6, %s1943_s23  ;;  %1043 = vrot.lane.b32.xlu0 %v1023_v30, %s1939_s30  ;;  %v1297_v6 = vshrl.u32 %v1789_v18, 16 }
 0x10a   : > { %v1302_v36 = vor.u32 %v1301_v31, %v1297_v6 }
 0x10c   : > { %1041 = vrot.lane.b32.xlu1 %v1016_v41, %s1939_s30  ;;  %1175 = vrot.lane.b32.xlu0 %v1145_v25, %s1942_s20 }
 0x110   : > { %1045 = vrot.lane.b32.xlu1 %v1030_v44, %s1939_s30  ;;  %1179 = vrot.lane.b32.xlu0 %v1159_v57, %s1942_s20 }
 0x114   : > { %1177 = vrot.lane.b32.xlu1 %v1152_v29, %s1942_s20  ;;  %1215 = vrot.lane.b32.xlu0 %v1778_v52, %s1941_s7 }
 0x118   : > { %1219 = vrot.lane.b32.xlu0 %v1780_v51, %s1941_s7  ;;  %1181 = vrot.lane.b32.xlu1 %v1166_v16, %s1942_s20 }
 0x11c   : > { %1311 = vrot.lane.b32.xlu0 %v1281_v13, %s1943_s23  ;;  %1217 = vrot.lane.b32.xlu1 %v1779_v11, %s1941_s7 }
 0x120   : > { %1315 = vrot.lane.b32.xlu0 %v1295_v21, %s1943_s23  ;;  %1221 = vrot.lane.b32.xlu1 %v1781_v23, %s1941_s7 }
 0x124   : > { %1313 = vrot.lane.b32.xlu1 %v1288_v28, %s1943_s23 }
 0x128   : > { %1317 = vrot.lane.b32.xlu1 %v1302_v36, %s1943_s23 }
 0x12e   : > { %v1072_v30 = vpop.permute.xlu0 %1071 }
 0x12f   : > { %v1346_v59 = vsel %vm1344_vm2, %v1322_v45, %v1072_v30 }
 0x132   : > { %v1074_v37 = vpop.permute.xlu1 %1073 }
 0x13a   : > { %v1076_v8 = vpop.permute.xlu0 %1075 }
 0x13e   : > { %v1078_v39 = vpop.permute.xlu1 %1077  ;;  %v1208_v58 = vpop.permute.xlu0 %1207 }
 0x142   : > { %v1210_v40 = vpop.permute.xlu1 %1209  ;;  %v1212_v41 = vpop.permute.xlu0 %1211 }
 0x146   : > { %v1214_v42 = vpop.permute.xlu1 %1213 }
 0x156   : > { %v1080_v43 = vpop.permute.xlu0 %1079 }
 0x15a   : > { %v1082_v25 = vpop.permute.xlu1 %1081 }
 0x15e   : > { %v2528_v47 = vpop.permute.xlu0 %1083 }
 0x162   : > { %v1036_v46 = vpop.permute.xlu0 %1035  ;;  %v2530_v3 = vpop.permute.xlu1 %1085 }
 0x163   : > { %v1328_v29 = vsel %vm1319_vm1, %v2398_v12, %v1036_v46 }
 0x166   : > { %v1168_v34 = vpop.permute.xlu0 %1167  ;;  %v1034_v38 = vpop.permute.xlu1 %1033 }
 0x167   : > { %v1325_v15 = vsel %vm1319_vm1, %v2407_v20, %v1034_v38  ;;  %v1363_v2 = vsel %vm1361_vm12, %v1346_v59, %v1168_v34  ;;  %v1350_v20 = vsel %vm1344_vm2, %v1328_v29, %v1076_v8 }
 0x168   : > { %v1348_v60 = vsel %vm1344_vm2, %v1325_v15, %v1074_v37  ;;  %v1380_v50 = vsel %vm1378_vm13, %v1363_v2, %v1208_v58 }
 0x16a   : > { %v1172_v53 = vpop.permute.xlu0 %1171  ;;  %v1038_v56 = vpop.permute.xlu1 %1037 }
 0x16b   : > { %v1331_v1 = vsel %vm1319_vm1, %v2436_v35, %v1038_v56  ;;  %v1367_v12 = vsel %vm1361_vm12, %v1350_v20, %v1172_v53 }
 0x16c   : > { %v1352_v54 = vsel %vm1344_vm2, %v1331_v1, %v1078_v39  ;;  %v1384_v9 = vsel %vm1378_vm13, %v1367_v12, %v1212_v41 }
 0x16e   : > { %v1304_v44 = vpop.permute.xlu0 %1303  ;;  %v1170_v57 = vpop.permute.xlu1 %1169 }
 0x16f   : > { %v1365_v27 = vsel %vm1361_vm12, %v1348_v60, %v1170_v57  ;;  %v1397_v51 = vsel %vm1395_vm14, %v1380_v50, %v1304_v44 }
 0x170   : > { %v1382_v62 = vsel %vm1378_vm13, %v1365_v27, %v1210_v40 }
 0x172   : > { %v1308_v55 = vpop.permute.xlu0 %1307  ;;  %v1174_v52 = vpop.permute.xlu1 %1173 }
 0x173   : > { %v1369_v35 = vsel %vm1361_vm12, %v1352_v54, %v1174_v52  ;;  %v1401_v11 = vsel %vm1395_vm14, %v1384_v9, %v1308_v55 }
 0x174   : > { %v1386_v10 = vsel %vm1378_vm13, %v1369_v35, %v1214_v42 }
 0x176   : > { %v1040_v19 = vpop.permute.xlu0 %1039  ;;  %v1306_v48 = vpop.permute.xlu1 %1305 }
 0x177   : > { %v1399_v16 = vsel %vm1395_vm14, %v1382_v62, %v1306_v48  ;;  %v1334_v6 = vsel %vm1319_vm1, %v2476_v32, %v1040_v19 }
 0x178   : > { %v1790_v5 = vcombine.low %v1397_v51, %v1399_v16  ;;  %v1354_v30 = vsel %vm1344_vm2, %v1334_v6, %v1080_v43 }
 0x17a   : > { %v1044_v22 = vpop.permute.xlu0 %1043  ;;  %1846 = vmatprep.mubr.msk.bf16.mxu0 %vm1480_vm15, %v1790_v5  ;;  %v1310_v4 = vpop.permute.xlu1 %1309 }
 0x17b   : > { %v1403_v13 = vsel %vm1395_vm14, %v1386_v10, %v1310_v4  ;;  %v1340_v8 = vsel %vm1319_vm1, %v2486_v49, %v1044_v22 }
 0x17c   : > { %v1791_v14 = vcombine.low %v1401_v11, %v1403_v13  ;;  %v1358_v49 = vsel %vm1344_vm2, %v1340_v8, %v2528_v47 }
 0x17e   : > { %v1176_v18 = vpop.permute.xlu0 %1175  ;;  %1847 = vmatmul.mubr.msk.bf16.vlgmr.msra.gmra.mxu0 %vm1480_vm15, %v1791_v14  ;;  %v1042_v7 = vpop.permute.xlu1 %1041 }
 0x17f   : > { %v1337_v31 = vsel %vm1319_vm1, %v2496_v61, %v1042_v7  ;;  %v1371_v39 = vsel %vm1361_vm12, %v1354_v30, %v1176_v18 }
 0x180   : > { %v1356_v37 = vsel %vm1344_vm2, %v1337_v31, %v1082_v25 }
 0x182   : > { %v1180_v17 = vpop.permute.xlu0 %1179  ;;  %v1046_v21 = vpop.permute.xlu1 %1045 }
 0x183   : > { %v1343_v58 = vsel %vm1319_vm1, %v2502_v0, %v1046_v21  ;;  %v1375_v34 = vsel %vm1361_vm12, %v1358_v49, %v1180_v17 }
 0x184   : > { %v1360_v25 = vsel %vm1344_vm2, %v1343_v58, %v2530_v3 }
 0x186   : > { %v1216_v23 = vpop.permute.xlu0 %1215  ;;  %v1178_v24 = vpop.permute.xlu1 %1177 }
 0x187   : > { %v1373_v40 = vsel %vm1361_vm12, %v1356_v37, %v1178_v24  ;;  %v1388_v32 = vsel %vm1378_vm13, %v1371_v39, %v1216_v23 }
 0x18a   : > { %v1182_v63 = vpop.permute.xlu1 %1181  ;;  %v1220_v26 = vpop.permute.xlu0 %1219 }
 0x18b   : > { %v1377_v38 = vsel %vm1361_vm12, %v1360_v25, %v1182_v63  ;;  %v1392_v53 = vsel %vm1378_vm13, %v1375_v34, %v1220_v26 }
 0x18e   : > { %v1218_v28 = vpop.permute.xlu1 %1217  ;;  %v1312_v36 = vpop.permute.xlu0 %1311 }
 0x18f   : > { %v1390_v61 = vsel %vm1378_vm13, %v1373_v40, %v1218_v28  ;;  %v1405_v42 = vsel %vm1395_vm14, %v1388_v32, %v1312_v36 }
 0x192   : > { %v1222_v33 = vpop.permute.xlu1 %1221  ;;  %v1316_v46 = vpop.permute.xlu0 %1315 }
 0x193   : > { %v1394_v56 = vsel %vm1378_vm13, %v1377_v38, %v1222_v33  ;;  %v1409_v57 = vsel %vm1395_vm14, %v1392_v53, %v1316_v46 }
 0x196   : > { %v1314_v41 = vpop.permute.xlu1 %1313 }
 0x197   : > { %v1407_v43 = vsel %vm1395_vm14, %v1390_v61, %v1314_v41 }
 0x198   : > { %v1792_v0 = vcombine.low %v1405_v42, %v1407_v43 }
 0x19a   : > { %1850 = vmatprep.mubr.msk.bf16.mxu1 %vm1480_vm15, %v1792_v0  ;;  %v1318_v44 = vpop.permute.xlu1 %1317 }
 0x19b   : > { %v1411_v47 = vsel %vm1395_vm14, %v1394_v56, %v1318_v44 }
 0x19c   : > { %v1793_v45 = vcombine.low %v1409_v57, %v1411_v47 }
 0x19e   : > { %1851 = vmatmul.mubr.msk.bf16.vlgmr.msra.gmra.mxu1 %vm1480_vm15, %v1793_v45 }
 0x23e   : > { %v1848_v3 = vpop.f32.mrf.mxu0 }
 0x23f   : > { %v1818_v15 = vpack.c.bf16 %v1848_v3, %v1848_v3  ;;  %v1582_v62 = vmul.f32 %v1848_v3, %v1848_v3  ;;  %v1562_v51 = vsel %vm1558_vm0, %v1848_v3, 0.0 }
 0x240   : > { %v1527_v59 = vpop.f32.mrf.mxu0 }
 0x241   : > { %1648 = vst.msk [vmem:[%s2590_s27 + $0x8] sm:$0xf] %vm633_vm8, %v1818_v15  ;;  %v1816_v60 = vpack.c.bf16 %v1527_v59, %v1527_v59  ;;  %v1580_v27 = vmul.f32 %v1527_v59, %v1527_v59  ;;  %v1559_v50 = vsel %vm1558_vm0, %v1527_v59, 0.0  ;;  %v1591_v5 = vsel %vm1558_vm0, %v1582_v62, 0.0 }
 0x242   : > { %v1849_v55 = vpop.f32.mrf.mxu0 }
 0x243   : > { %1646 = vst.msk [vmem:[%s2590_s27] sm:$0xf] %vm633_vm8, %v1816_v60  ;;  %v1819_v52 = vpack.c.bf16 %v1849_v55, %v1849_v55  ;;  %v1588_v48 = vsel %vm1558_vm0, %v1580_v27, 0.0  ;;  %v1583_v9 = vmul.f32 %v1849_v55, %v1849_v55  ;;  %v1564_v11 = vsel %vm1558_vm0, %v1849_v55, 0.0 }
 0x244   : > { %v1530_v29 = vpop.f32.mrf.mxu0 }
 0x245   : > { %1649 = vst.msk [vmem:[%s2590_s27 + $0xc] sm:$0xf] %vm633_vm8, %v1819_v52  ;;  %v1817_v2 = vpack.c.bf16 %v1530_v29, %v1530_v29  ;;  %v1581_v1 = vmul.f32 %v1530_v29, %v1530_v29  ;;  %v1560_v20 = vsel %vm1558_vm0, %v1530_v29, 0.0  ;;  %v1593_v21 = vsel %vm1558_vm0, %v1583_v9, 0.0 }
 0x246   : > { %v1561_v19 = vadd.f32 %v1560_v20, %v1559_v50 }
 0x247   : > { %1647 = vst.msk [vmem:[%s2590_s27 + $0x4] sm:$0xf] %vm633_vm8, %v1817_v2  ;;  %v1589_v54 = vsel %vm1558_vm0, %v1581_v1, 0.0 }
 0x248   : > { %v1590_v12 = vadd.f32 %v1589_v54, %v1588_v48  ;;  %v1563_v35 = vadd.f32 %v1562_v51, %v1561_v19 }
 0x24a   : > { %v1592_v10 = vadd.f32 %v1591_v5, %v1590_v12  ;;  %v1565_v7 = vadd.f32 %v1564_v11, %v1563_v35 }
 0x24c   : > { %v1594_v26 = vadd.f32 %v1593_v21, %v1592_v10 }
 0x25e   : > { %v1852_v16 = vpop.f32.mrf.mxu1 }
 0x25f   : > { %v1822_v22 = vpack.c.bf16 %v1852_v16, %v1852_v16  ;;  %v1586_v6 = vmul.f32 %v1852_v16, %v1852_v16  ;;  %v1570_v8 = vsel %vm1558_vm0, %v1852_v16, 0.0 }
 0x260   : > { %v1543_v4 = vpop.f32.mrf.mxu1 }
 0x261   : > { %1652 = vst.msk [vmem:[%s2590_s27 + $0x18] sm:$0xf] %vm633_vm8, %v1822_v22  ;;  %v1566_v13 = vsel %vm1558_vm0, %v1543_v4, 0.0  ;;  %v1584_v14 = vmul.f32 %v1543_v4, %v1543_v4  ;;  %v1820_v18 = vpack.c.bf16 %v1543_v4, %v1543_v4  ;;  %v1599_v61 = vsel %vm1558_vm0, %v1586_v6, 0.0 }
 0x262   : > { %v1853_v17 = vpop.f32.mrf.mxu1  ;;  %v1567_v63 = vadd.f32 %v1566_v13, %v1565_v7 }
 0x263   : > { %v1595_v23 = vsel %vm1558_vm0, %v1584_v14, 0.0  ;;  %1650 = vst.msk [vmem:[%s2590_s27 + $0x10] sm:$0xf] %vm633_vm8, %v1820_v18  ;;  %v1823_v24 = vpack.c.bf16 %v1853_v17, %v1853_v17  ;;  %v1587_v39 = vmul.f32 %v1853_v17, %v1853_v17  ;;  %v1572_v41 = vsel %vm1558_vm0, %v1853_v17, 0.0 }
 0x264   : > { %v1546_v28 = vpop.f32.mrf.mxu1  ;;  %v1596_v30 = vadd.f32 %v1595_v23, %v1594_v26 }
 0x265   : > { %1653 = vst.msk [vmem:[%s2590_s27 + $0x1c] sm:$0xf] %vm633_vm8, %v1823_v24  ;;  %v1568_v31 = vsel %vm1558_vm0, %v1546_v28, 0.0  ;;  %v1585_v36 = vmul.f32 %v1546_v28, %v1546_v28  ;;  %v1821_v33 = vpack.c.bf16 %v1546_v28, %v1546_v28  ;;  %v1601_v49 = vsel %vm1558_vm0, %v1587_v39, 0.0 }
 0x266   : > { %v1569_v37 = vadd.f32 %v1568_v31, %v1567_v63 }
 0x267   : > { %v1597_v58 = vsel %vm1558_vm0, %v1585_v36, 0.0  ;;  %1651 = vst.msk [vmem:[%s2590_s27 + $0x14] sm:$0xf] %vm633_vm8, %v1821_v33 }
 0x268   : > { %v1571_v40 = vadd.f32 %v1570_v8, %v1569_v37  ;;  %v1598_v32 = vadd.f32 %v1597_v58, %v1596_v30 }
 0x26a   : > { %v1573_v42 = vadd.f32 %v1572_v41, %v1571_v40  ;;  %v1600_v43 = vadd.f32 %v1599_v61, %v1598_v32 }
 0x26c   : > { %v1574_v25 = vrot.slane %v1573_v42, 4  ;;  %v1602_v46 = vadd.f32 %v1601_v49, %v1600_v43 }
 0x26e   : > { %v1575_v0 = vadd.f32 %v1574_v25, %v1573_v42  ;;  %v1603_v34 = vrot.slane %v1602_v46, 4 }
 0x270   : > { %v1576_v38 = vrot.slane %v1575_v0, 2  ;;  %v1604_v53 = vadd.f32 %v1603_v34, %v1602_v46 }
 0x272   : > { %v1577_v56 = vadd.f32 %v1576_v38, %v1575_v0  ;;  %v1605_v44 = vrot.slane %v1604_v53, 2 }
 0x274   : > { %v1578_v57 = vrot.slane %v1577_v56, 1  ;;  %v1606_v47 = vadd.f32 %v1605_v44, %v1604_v53 }
 0x276   : > { %v1607_v45 = vrot.slane %v1606_v47, 1  ;;  %v1579_v3 = vadd.f32 %v1578_v57, %v1577_v56 }
 0x278   : > { %v1608_v15 = vadd.f32 %v1607_v45, %v1606_v47 }
 0x27a   : > { %v1610_v59 = vsel %vm1609_vm3, %v1579_v3, %v1608_v15 }
 0x27b   : > { %1612 = vst.msk [vmem:[%s235_s6] sm:$0x3] %vm1611_vm4, %v1610_v59 }
 0x27c PF: > { %s16_s18 = sadd.s32 1, %s1934_s18  }
 0x27d   : > { %p13_p4 = scmp.ge.s32.totalorder %s16_s18, 4  }
 0x27f   :  { %15 = sbr.rel (!%p13_p4) target bundleno = 1 (0x1), region = 81 }

</bundles_post_ra>
